<compile_context>
chip_gen: v5e
topology: v5e:2x2
jax: 0.10.0
libtpu: 0.0.40
codegen_flags: <defaults>
</compile_context>

<pallas_src>
import functools

import jax
import jax.numpy as jnp
import numpy as np
from jax.experimental import pallas as pl
from jax.experimental.pallas import tpu as pltpu


EPS = 1e-6
# bf16 MXU inputs with f32 accumulation (MXU-native on v5e/v6e/v7x).
# Flip to False for strict-f32 matmuls (tighter match to the f32 reference).
USE_BF16_MXU = True
# True: recompute attn^T with a second QK matmul (preferred on v6e/v7x).
# False: XLU transpose of the logits (preferred on v5e's weaker MXU).
RECOMPUTE_ATTN_T = True
_NUM_VEC_PARAMS = 8  # norm_l w/b, norm_r w/b, bl1, br1, bl2, br2


def _padded_bytes(rows, cols, itemsize):
    """VMEM footprint of a (rows, cols) array padded to (sublane, 128) tiles."""
    sub = 8 * (4 // itemsize)  # f32 -> 8 sublanes/tile, bf16 -> 16
    return (-(-rows // sub) * sub) * (-(-cols // 128) * 128) * itemsize


def _vmem_estimate(th, w, c, mm_itemsize):
    """Per-step VMEM: pipeline buffers + body intermediates (review item)."""
    m = th * w
    blk = _padded_bytes(c, m, 4)                         # one (C, TH*W) f32 slab
    total = 4 * 2 * blk                                  # 2 in + 2 out, double buffered
    total += 4 * _padded_bytes(m, c, 4)                  # x^T and LN(x), left/right (f32)
    total += 4 * _padded_bytes(m, c, mm_itemsize)        # ql, qr, vl, vr
    total += 2 * th * _padded_bytes(w, w, 4)             # attn_l / attn_r logits (f32)
    total += 2 * th * _padded_bytes(w, w, mm_itemsize)   # softmax probabilities
    total += 4 * _padded_bytes(m, c, 4)                  # f_r2l / f_l2r + channels-first copies
    total += 2 * (4 * _padded_bytes(c, c, mm_itemsize)
                  + _padded_bytes(_NUM_VEC_PARAMS, c, 4))  # packed params (double buffered)
    return total


def _pick_tile_h(n, h, w, c, *, mm_itemsize, vmem_budget):
    """Largest TH (divisor of H) that keeps DMAs lane-dense and fits VMEM.

    Constraints:
      * TH | H and (TH*W) % 128 == 0 (unmasked, lane-dense stores) or TH == H.
      * Estimated footprint (pipeline buffers + intermediates) <= vmem_budget.
      * Keep N*(H/TH) >= 2 blocks when possible (two TensorCores on v7x).
    """
    cands = [d for d in range(1, h + 1)
             if h % d == 0 and ((d * w) % 128 == 0 or d == h)]
    fitting = [d for d in cands
               if _vmem_estimate(d, w, c, mm_itemsize) <= vmem_budget]
    if not fitting:
        fitting = [min(cands)]
    th = max(fitting)
    if n * (h // th) < 2:
        par = [d for d in fitting if n * (h // d) >= 2]
        if par:
            th = max(par)
    return th


def _scam_kernel(xl_ref, xr_ref, vecs_ref, mats_ref, out_l_ref, out_r_ref,
                 *, th, w, c, use_bf16, recompute_attn_t):
    mm_dtype = jnp.bfloat16 if use_bf16 else jnp.float32
    m = th * w

    # NCHW-native tile: channels on sublanes, TH*W pixels on lanes (lane-dense
    # DMA).  The channels-last view for LN / projections is made in-kernel with
    # 2-D transposes riding the otherwise-idle XLU slot.
    xl_cm = xl_ref[0]                     # (C, TH*W) f32
    xr_cm = xr_ref[0]
    xl = xl_cm.T                          # (TH*W, C)
    xr = xr_cm.T

    vecs = vecs_ref[...]                  # (8, C) packed per-channel vectors (f32)
    wnl, bnl = vecs[0:1], vecs[1:2]
    wnr, bnr = vecs[2:3], vecs[3:4]
    bl1, br1 = vecs[4:5], vecs[5:6]
    bl2, br2 = vecs[6:7], vecs[7:8]
    wl1 = mats_ref[0]                     # (C, C), pre-cast to MXU dtype; scale folded
    wr1 = mats_ref[1]
    wl2 = mats_ref[2]                     # gamma folded
    wr2 = mats_ref[3]                     # beta folded

    def layernorm(x, w_, b_):
        # Per-pixel normalization over the channel (lane) axis.
        mu = jnp.mean(x, axis=-1, keepdims=True)
        xc = x - mu
        var = jnp.mean(xc * xc, axis=-1, keepdims=True)
        return xc * jax.lax.rsqrt(var + EPS) * w_ + b_

    def proj(x, w_, b_):
        # 1x1 conv == (M, C) @ (C, C) matmul; weights are already mm_dtype.
        return jnp.dot(x.astype(mm_dtype), w_,
                       preferred_element_type=jnp.float32) + b_

    ql = proj(layernorm(xl, wnl, bnl), wl1, bl1).reshape(th, w, c).astype(mm_dtype)
    qr = proj(layernorm(xr, wnr, bnr), wr1, br1).reshape(th, w, c).astype(mm_dtype)
    vl = proj(xl, wl2, bl2).reshape(th, w, c).astype(mm_dtype)
    vr = proj(xr, wr2, br2).reshape(th, w, c).astype(mm_dtype)

    # TH-batched W x W cross attention over the width axis.
    attn_l = jnp.einsum("twc,tvc->twv", ql, qr, preferred_element_type=jnp.float32)
    if recompute_attn_t:
        # Second cheap MXU matmul so both softmaxes reduce along lanes (v6e/v7x).
        attn_r = jnp.einsum("tvc,twc->tvw", qr, ql, preferred_element_type=jnp.float32)
    else:
        # v5e: don't burn the weaker MXU; transpose the logits on the XLU.
        attn_r = jnp.swapaxes(attn_l, -1, -2)

    def softmax_last(a):
        # TODO(synk): if a profile shows the EUP saturating at large W on
        # v6e/v7x, compute the exp in bf16 (keep max-subtract / sum in f32).
        mx = jnp.max(a, axis=-1, keepdims=True)
        e = jnp.exp(a - mx)
        return e * pl.reciprocal(jnp.sum(e, axis=-1, keepdims=True), approx=True)

    p_r2l = softmax_last(attn_l).astype(mm_dtype)     # (TH, Wl, Wr)
    p_l2r = softmax_last(attn_r).astype(mm_dtype)     # (TH, Wr, Wl)

    f_r2l = jnp.einsum("twv,tvc->twc", p_r2l, vr, preferred_element_type=jnp.float32)
    f_l2r = jnp.einsum("tvw,twc->tvc", p_l2r, vl, preferred_element_type=jnp.float32)

    # Back to channels-first for the lane-dense stores; beta/gamma already
    # folded into vr/vl, so these are plain residual adds in the native layout.
    out_l_ref[0] = (xl_cm + f_r2l.reshape(m, c).T).astype(out_l_ref.dtype)
    out_r_ref[0] = (xr_cm + f_l2r.reshape(m, c).T).astype(out_r_ref.dtype)


def scam_pallas(x_l, x_r, params, *, use_bf16=USE_BF16_MXU,
                recompute_attn_t=RECOMPUTE_ATTN_T):
    """x_l, x_r: NCHW float32 (same layout as the PyTorch module)."""
    N, C, H, W = x_l.shape
    if W % 8 != 0:
        # TODO(synk): pad W to a multiple of 8 so the in-kernel (TH*W,C)<->(TH,W,C)
        # reshapes stay layout-free; NAFSSR-style shapes already satisfy this.
        raise NotImplementedError("scam_pallas requires W % 8 == 0")
    scale = float(C) ** (-0.5)
    mm_dtype = jnp.bfloat16 if use_bf16 else jnp.float32
    mm_itemsize = 2 if use_bf16 else 4

    # No layout transposes in the wrapper: NCHW stays NCHW, only free reshapes.
    xl = x_l.reshape(N, C, H * W)
    xr = x_r.reshape(N, C, H * W)

    def matw(w):      # Conv2d 1x1 weight (Cout, Cin) -> matmul layout (Cin, Cout)
        return jnp.transpose(w, (1, 0))

    beta = params["beta"].reshape(-1)
    gamma = params["gamma"].reshape(-1)

    # Fold: attention scale -> left Q projection; gamma -> l_proj2 (V_l);
    # beta -> r_proj2 (V_r).  All per-output-channel diagonal scalings.
    wl1 = matw(params["l_proj1_w"]) * scale
    bl1 = params["l_proj1_b"] * scale
    wr1 = matw(params["r_proj1_w"])
    br1 = params["r_proj1_b"]
    wl2 = matw(params["l_proj2_w"]) * gamma[None, :]
    bl2 = params["l_proj2_b"] * gamma
    wr2 = matw(params["r_proj2_w"]) * beta[None, :]
    br2 = params["r_proj2_b"] * beta

    # Packed params: (8, C) f32 vector table (biases add to the f32 accumulator)
    # + (4, C, C) weight stack pre-cast to the MXU dtype (halves its DMA and
    # removes in-kernel casts).
    vecs = jnp.stack([params["norm_l_w"], params["norm_l_b"],
                      params["norm_r_w"], params["norm_r_b"],
                      bl1, br1, bl2, br2], axis=0).astype(jnp.float32)
    mats = jnp.stack([wl1, wr1, wl2, wr2], axis=0).astype(mm_dtype)

    # VMEM budget: query physical capacity (v7x: 64 MiB, v5e/v6e: 128 MiB) and
    # size the row slab so pipeline buffers + body intermediates fit.
    try:
        vmem_cap = int(getattr(pltpu.get_tpu_info(), "vmem_capacity_bytes",
                               64 << 20))
    except Exception:  # not on a TPU host / interpret mode
        vmem_cap = 64 << 20
    vmem_limit = min(int(0.75 * vmem_cap), 100 << 20)
    TH = _pick_tile_h(N, H, W, C, mm_itemsize=mm_itemsize,
                      vmem_budget=int(0.85 * vmem_limit))
    grid = (N, H // TH)

    # Lane-dense blocks: last dim TH*W is a multiple of 128 (or the full H*W).
    # TODO(synk): if a profile shows exposed DMA (tiny C => little compute per
    # slab), add pipeline_mode=pl.Buffered(3) to x_spec with a smaller TH.
    x_spec = pl.BlockSpec((1, C, TH * W), lambda n, h: (n, 0, h))
    vecs_spec = pl.BlockSpec((_NUM_VEC_PARAMS, C), lambda n, h: (0, 0))
    mats_spec = pl.BlockSpec((4, C, C), lambda n, h: (0, 0, 0))

    kernel = functools.partial(_scam_kernel, th=TH, w=W, c=C,
                               use_bf16=use_bf16,
                               recompute_attn_t=recompute_attn_t)

    out_l, out_r = pl.pallas_call(
        kernel,
        out_shape=(jax.ShapeDtypeStruct((N, C, H * W), jnp.float32),
                   jax.ShapeDtypeStruct((N, C, H * W), jnp.float32)),
        grid=grid,
        in_specs=[x_spec, x_spec, vecs_spec, mats_spec],
        out_specs=(x_spec, x_spec),
        compiler_params=pltpu.CompilerParams(
            dimension_semantics=("parallel", "parallel"),
            vmem_limit_bytes=vmem_limit),
    )(xl, xr, vecs, mats)

    # Free reshapes back to NCHW 4-D (no data movement).
    return out_l.reshape(N, C, H, W), out_r.reshape(N, C, H, W)


def scam_reference(x_l, x_r, params):
    """Pure-JAX reference mirroring the PyTorch NCHW semantics exactly (f32)."""
    N, C, H, W = x_l.shape
    scale = float(C) ** (-0.5)

    def ln(x, w, b):
        mu = x.mean(axis=1, keepdims=True)
        var = ((x - mu) ** 2).mean(axis=1, keepdims=True)
        y = (x - mu) / jnp.sqrt(var + EPS)
        return w[None, :, None, None] * y + b[None, :, None, None]

    def conv1x1(x, w, b):          # w: (Cout, Cin)
        return jnp.einsum("nchw,oc->nohw", x, w) + b[None, :, None, None]

    Q_l = jnp.transpose(conv1x1(ln(x_l, params["norm_l_w"], params["norm_l_b"]),
                                params["l_proj1_w"], params["l_proj1_b"]),
                        (0, 2, 3, 1))                       # (N,H,W,C)
    Q_r = jnp.transpose(conv1x1(ln(x_r, params["norm_r_w"], params["norm_r_b"]),
                                params["r_proj1_w"], params["r_proj1_b"]),
                        (0, 2, 3, 1))                       # (N,H,W,C)
    V_l = jnp.transpose(conv1x1(x_l, params["l_proj2_w"], params["l_proj2_b"]),
                        (0, 2, 3, 1))
    V_r = jnp.transpose(conv1x1(x_r, params["r_proj2_w"], params["r_proj2_b"]),
                        (0, 2, 3, 1))

    attn = jnp.einsum("nhwc,nhvc->nhwv", Q_l, Q_r) * scale   # (N,H,Wl,Wr)
    F_r2l = jnp.einsum("nhwv,nhvc->nhwc", jax.nn.softmax(attn, axis=-1), V_r)
    attn_t = jnp.transpose(attn, (0, 1, 3, 2))
    F_l2r = jnp.einsum("nhrw,nhwc->nhrc", jax.nn.softmax(attn_t, axis=-1), V_l)

    beta = params["beta"].reshape(-1)
    gamma = params["gamma"].reshape(-1)
    F_r2l = jnp.transpose(F_r2l, (0, 3, 1, 2)) * beta[None, :, None, None]
    F_l2r = jnp.transpose(F_l2r, (0, 3, 1, 2)) * gamma[None, :, None, None]
    return x_l + F_r2l, x_r + F_l2r


def make_params(key, c):
    # Deterministic synthetic init.  Note: the PyTorch module zero-inits
    # beta/gamma; nonzero values are used here so the attention path is
    # actually exercised by the test.
    ks = jax.random.split(key, 12)
    return {
        "norm_l_w": jnp.ones((c,), jnp.float32),
        "norm_l_b": jnp.zeros((c,), jnp.float32),
        "norm_r_w": jnp.ones((c,), jnp.float32),
        "norm_r_b": jnp.zeros((c,), jnp.float32),
        "l_proj1_w": 0.2 * jax.random.normal(ks[0], (c, c), jnp.float32),
        "l_proj1_b": 0.1 * jax.random.normal(ks[1], (c,), jnp.float32),
        "r_proj1_w": 0.2 * jax.random.normal(ks[2], (c, c), jnp.float32),
        "r_proj1_b": 0.1 * jax.random.normal(ks[3], (c,), jnp.float32),
        "l_proj2_w": 0.2 * jax.random.normal(ks[4], (c, c), jnp.float32),
        "l_proj2_b": 0.1 * jax.random.normal(ks[5], (c,), jnp.float32),
        "r_proj2_w": 0.2 * jax.random.normal(ks[6], (c, c), jnp.float32),
        "r_proj2_b": 0.1 * jax.random.normal(ks[7], (c,), jnp.float32),
        "beta": 0.5 * jax.random.normal(ks[8], (c,), jnp.float32),
        "gamma": 0.5 * jax.random.normal(ks[9], (c,), jnp.float32),
    }


if __name__ == "__main__":
    N, C, H, W = 2, 8, 8, 16          # NCHW, matching the PyTorch module
    key = jax.random.PRNGKey(0)
    k_xl, k_xr, k_p = jax.random.split(key, 3)
    x_l = jax.random.normal(k_xl, (N, C, H, W), jnp.float32)
    x_r = jax.random.normal(k_xr, (N, C, H, W), jnp.float32)
    params = make_params(k_p, C)

    scam_fn = jax.jit(scam_pallas)
    out_l, out_r = scam_fn(x_l, x_r, params)
    out_l = jax.block_until_ready(out_l)
    out_r = jax.block_until_ready(out_r)

    ref_l, ref_r = scam_reference(x_l, x_r, params)
    # bf16 MXU inputs (f32 accumulate) + approx reciprocal vs an all-f32
    # reference -> relaxed tolerance.
    tol = 2.5e-2 if USE_BF16_MXU else 1e-3
    np.testing.assert_allclose(np.asarray(out_l), np.asarray(ref_l), atol=tol, rtol=tol)
    np.testing.assert_allclose(np.asarray(out_r), np.asarray(ref_r), atol=tol, rtol=tol)

    print("KERNEL_OK")
</pallas_src>

<mosaic_0001>
module attributes {stable_mosaic.version = 11 : i64} {
  func.func @_scam_kernel(%arg0: i32, %arg1: i32, %arg2: memref<1x8x128xf32, #tpu.memory_space<vmem>>, %arg3: memref<1x8x128xf32, #tpu.memory_space<vmem>>, %arg4: memref<8x8xf32, #tpu.memory_space<vmem>>, %arg5: memref<4x8x8xbf16, #tpu.memory_space<vmem>>, %arg6: memref<1x8x128xf32, #tpu.memory_space<vmem>>, %arg7: memref<1x8x128xf32, #tpu.memory_space<vmem>>) attributes {dimension_semantics = [#tpu.dimension_semantics<parallel>, #tpu.dimension_semantics<parallel>], iteration_bounds = array<i64: 2, 1>, scalar_prefetch = 0 : i64, scratch_operands = 0 : i64, tpu.core_type = #tpu.core_type<tc>, window_params = [{transform_indices = @transform_0, window_bounds = array<i64: 1, 8, 128>}, {transform_indices = @transform_1, window_bounds = array<i64: 1, 8, 128>}, {pipeline_mode = #tpu.pipeline_mode<synchronous>, transform_indices = @transform_2, window_bounds = array<i64: 8, 8>}, {pipeline_mode = #tpu.pipeline_mode<synchronous>, transform_indices = @transform_3, window_bounds = array<i64: 4, 8, 8>}, {transform_indices = @transform_4, window_bounds = array<i64: 1, 8, 128>}, {transform_indices = @transform_5, window_bounds = array<i64: 1, 8, 128>}]} {
    %c0 = arith.constant 0 : index
    %c0_0 = arith.constant 0 : index
    %c0_1 = arith.constant 0 : index
    %0 = vector.load %arg2[%c0, %c0_0, %c0_1] : memref<1x8x128xf32, #tpu.memory_space<vmem>>, vector<1x8x128xf32>
    %1 = vector.shape_cast %0 : vector<1x8x128xf32> to vector<8x128xf32>
    %c0_2 = arith.constant 0 : index
    %c0_3 = arith.constant 0 : index
    %c0_4 = arith.constant 0 : index
    %2 = vector.load %arg3[%c0_2, %c0_3, %c0_4] : memref<1x8x128xf32, #tpu.memory_space<vmem>>, vector<1x8x128xf32>
    %3 = vector.shape_cast %2 : vector<1x8x128xf32> to vector<8x128xf32>
    %4 = tpu.transpose %1, [1, 0] : vector<8x128xf32> -> vector<128x8xf32>
    %5 = tpu.transpose %3, [1, 0] : vector<8x128xf32> -> vector<128x8xf32>
    %c0_5 = arith.constant 0 : index
    %c0_6 = arith.constant 0 : index
    %6 = vector.load %arg4[%c0_5, %c0_6] : memref<8x8xf32, #tpu.memory_space<vmem>>, vector<8x8xf32>
    %7 = vector.extract_strided_slice %6 {offsets = [0, 0], sizes = [1, 8], strides = [1, 1]} : vector<8x8xf32> to vector<1x8xf32>
    %8 = vector.extract_strided_slice %6 {offsets = [1, 0], sizes = [1, 8], strides = [1, 1]} : vector<8x8xf32> to vector<1x8xf32>
    %9 = vector.extract_strided_slice %6 {offsets = [2, 0], sizes = [1, 8], strides = [1, 1]} : vector<8x8xf32> to vector<1x8xf32>
    %10 = vector.extract_strided_slice %6 {offsets = [3, 0], sizes = [1, 8], strides = [1, 1]} : vector<8x8xf32> to vector<1x8xf32>
    %11 = vector.extract_strided_slice %6 {offsets = [4, 0], sizes = [1, 8], strides = [1, 1]} : vector<8x8xf32> to vector<1x8xf32>
    %12 = vector.extract_strided_slice %6 {offsets = [5, 0], sizes = [1, 8], strides = [1, 1]} : vector<8x8xf32> to vector<1x8xf32>
    %13 = vector.extract_strided_slice %6 {offsets = [6, 0], sizes = [1, 8], strides = [1, 1]} : vector<8x8xf32> to vector<1x8xf32>
    %14 = vector.extract_strided_slice %6 {offsets = [7, 0], sizes = [1, 8], strides = [1, 1]} : vector<8x8xf32> to vector<1x8xf32>
    %c0_7 = arith.constant 0 : index
    %c0_8 = arith.constant 0 : index
    %c0_9 = arith.constant 0 : index
    %15 = vector.load %arg5[%c0_7, %c0_8, %c0_9] : memref<4x8x8xbf16, #tpu.memory_space<vmem>>, vector<1x8x8xbf16>
    %16 = vector.shape_cast %15 : vector<1x8x8xbf16> to vector<8x8xbf16>
    %c1 = arith.constant 1 : index
    %c0_10 = arith.constant 0 : index
    %c0_11 = arith.constant 0 : index
    %17 = vector.load %arg5[%c1, %c0_10, %c0_11] : memref<4x8x8xbf16, #tpu.memory_space<vmem>>, vector<1x8x8xbf16>
    %18 = vector.shape_cast %17 : vector<1x8x8xbf16> to vector<8x8xbf16>
    %c2 = arith.constant 2 : index
    %c0_12 = arith.constant 0 : index
    %c0_13 = arith.constant 0 : index
    %19 = vector.load %arg5[%c2, %c0_12, %c0_13] : memref<4x8x8xbf16, #tpu.memory_space<vmem>>, vector<1x8x8xbf16>
    %20 = vector.shape_cast %19 : vector<1x8x8xbf16> to vector<8x8xbf16>
    %c3 = arith.constant 3 : index
    %c0_14 = arith.constant 0 : index
    %c0_15 = arith.constant 0 : index
    %21 = vector.load %arg5[%c3, %c0_14, %c0_15] : memref<4x8x8xbf16, #tpu.memory_space<vmem>>, vector<1x8x8xbf16>
    %22 = vector.shape_cast %21 : vector<1x8x8xbf16> to vector<8x8xbf16>
    %cst = arith.constant dense<0.000000e+00> : vector<128xf32>
    %23 = vector.multi_reduction <add>, %4, %cst [1] : vector<128x8xf32> to vector<128xf32>
    %24 = vector.shape_cast %23 : vector<128xf32> to vector<128x1xf32>
    %cst_16 = arith.constant 8.000000e+00 : f32
    %25 = vector.broadcast %cst_16 : f32 to vector<128x1xf32>
    %26 = arith.divf %24, %25 : vector<128x1xf32>
    %27 = vector.broadcast %26 : vector<128x1xf32> to vector<128x8xf32>
    %28 = arith.subf %4, %27 : vector<128x8xf32>
    %29 = arith.mulf %28, %28 : vector<128x8xf32>
    %cst_17 = arith.constant dense<0.000000e+00> : vector<128xf32>
    %30 = vector.multi_reduction <add>, %29, %cst_17 [1] : vector<128x8xf32> to vector<128xf32>
    %31 = vector.shape_cast %30 : vector<128xf32> to vector<128x1xf32>
    %cst_18 = arith.constant 8.000000e+00 : f32
    %32 = vector.broadcast %cst_18 : f32 to vector<128x1xf32>
    %33 = arith.divf %31, %32 : vector<128x1xf32>
    %cst_19 = arith.constant 9.99999997E-7 : f32
    %34 = vector.broadcast %cst_19 : f32 to vector<128x1xf32>
    %35 = arith.addf %33, %34 : vector<128x1xf32>
    %36 = math.rsqrt %35 : vector<128x1xf32>
    %37 = vector.broadcast %36 : vector<128x1xf32> to vector<128x8xf32>
    %38 = arith.mulf %28, %37 : vector<128x8xf32>
    %39 = vector.broadcast %7 : vector<1x8xf32> to vector<128x8xf32>
    %40 = arith.mulf %38, %39 : vector<128x8xf32>
    %41 = vector.broadcast %8 : vector<1x8xf32> to vector<128x8xf32>
    %42 = arith.addf %40, %41 : vector<128x8xf32>
    %43 = arith.truncf %42 : vector<128x8xf32> to vector<128x8xbf16>
    %cst_20 = arith.constant dense<0.000000e+00> : vector<128x8xf32>
    %44 = tpu.matmul %43, %16, %cst_20 {dimension_numbers = #tpu.dot_dimension_numbers<[1], [0], [0], [1], [0, 0, 1, 1], [], []>} : vector<128x8xbf16>, vector<8x8xbf16>, vector<128x8xf32> -> vector<128x8xf32>
    %45 = vector.broadcast %11 : vector<1x8xf32> to vector<128x8xf32>
    %46 = arith.addf %44, %45 : vector<128x8xf32>
    %47 = vector.shape_cast %46 : vector<128x8xf32> to vector<8x16x8xf32>
    %48 = arith.truncf %47 : vector<8x16x8xf32> to vector<8x16x8xbf16>
    %cst_21 = arith.constant dense<0.000000e+00> : vector<128xf32>
    %49 = vector.multi_reduction <add>, %5, %cst_21 [1] : vector<128x8xf32> to vector<128xf32>
    %50 = vector.shape_cast %49 : vector<128xf32> to vector<128x1xf32>
    %cst_22 = arith.constant 8.000000e+00 : f32
    %51 = vector.broadcast %cst_22 : f32 to vector<128x1xf32>
    %52 = arith.divf %50, %51 : vector<128x1xf32>
    %53 = vector.broadcast %52 : vector<128x1xf32> to vector<128x8xf32>
    %54 = arith.subf %5, %53 : vector<128x8xf32>
    %55 = arith.mulf %54, %54 : vector<128x8xf32>
    %cst_23 = arith.constant dense<0.000000e+00> : vector<128xf32>
    %56 = vector.multi_reduction <add>, %55, %cst_23 [1] : vector<128x8xf32> to vector<128xf32>
    %57 = vector.shape_cast %56 : vector<128xf32> to vector<128x1xf32>
    %cst_24 = arith.constant 8.000000e+00 : f32
    %58 = vector.broadcast %cst_24 : f32 to vector<128x1xf32>
    %59 = arith.divf %57, %58 : vector<128x1xf32>
    %cst_25 = arith.constant 9.99999997E-7 : f32
    %60 = vector.broadcast %cst_25 : f32 to vector<128x1xf32>
    %61 = arith.addf %59, %60 : vector<128x1xf32>
    %62 = math.rsqrt %61 : vector<128x1xf32>
    %63 = vector.broadcast %62 : vector<128x1xf32> to vector<128x8xf32>
    %64 = arith.mulf %54, %63 : vector<128x8xf32>
    %65 = vector.broadcast %9 : vector<1x8xf32> to vector<128x8xf32>
    %66 = arith.mulf %64, %65 : vector<128x8xf32>
    %67 = vector.broadcast %10 : vector<1x8xf32> to vector<128x8xf32>
    %68 = arith.addf %66, %67 : vector<128x8xf32>
    %69 = arith.truncf %68 : vector<128x8xf32> to vector<128x8xbf16>
    %cst_26 = arith.constant dense<0.000000e+00> : vector<128x8xf32>
    %70 = tpu.matmul %69, %18, %cst_26 {dimension_numbers = #tpu.dot_dimension_numbers<[1], [0], [0], [1], [0, 0, 1, 1], [], []>} : vector<128x8xbf16>, vector<8x8xbf16>, vector<128x8xf32> -> vector<128x8xf32>
    %71 = vector.broadcast %12 : vector<1x8xf32> to vector<128x8xf32>
    %72 = arith.addf %70, %71 : vector<128x8xf32>
    %73 = vector.shape_cast %72 : vector<128x8xf32> to vector<8x16x8xf32>
    %74 = arith.truncf %73 : vector<8x16x8xf32> to vector<8x16x8xbf16>
    %75 = arith.truncf %4 : vector<128x8xf32> to vector<128x8xbf16>
    %cst_27 = arith.constant dense<0.000000e+00> : vector<128x8xf32>
    %76 = tpu.matmul %75, %20, %cst_27 {dimension_numbers = #tpu.dot_dimension_numbers<[1], [0], [0], [1], [0, 0, 1, 1], [], []>} : vector<128x8xbf16>, vector<8x8xbf16>, vector<128x8xf32> -> vector<128x8xf32>
    %77 = vector.broadcast %13 : vector<1x8xf32> to vector<128x8xf32>
    %78 = arith.addf %76, %77 : vector<128x8xf32>
    %79 = vector.shape_cast %78 : vector<128x8xf32> to vector<8x16x8xf32>
    %80 = arith.truncf %79 : vector<8x16x8xf32> to vector<8x16x8xbf16>
    %81 = arith.truncf %5 : vector<128x8xf32> to vector<128x8xbf16>
    %cst_28 = arith.constant dense<0.000000e+00> : vector<128x8xf32>
    %82 = tpu.matmul %81, %22, %cst_28 {dimension_numbers = #tpu.dot_dimension_numbers<[1], [0], [0], [1], [0, 0, 1, 1], [], []>} : vector<128x8xbf16>, vector<8x8xbf16>, vector<128x8xf32> -> vector<128x8xf32>
    %83 = vector.broadcast %14 : vector<1x8xf32> to vector<128x8xf32>
    %84 = arith.addf %82, %83 : vector<128x8xf32>
    %85 = vector.shape_cast %84 : vector<128x8xf32> to vector<8x16x8xf32>
    %86 = arith.truncf %85 : vector<8x16x8xf32> to vector<8x16x8xbf16>
    "tpu.trace_start"() <{level = 10 : i32, message = "twc,tvc->twv"}> : () -> ()
    %cst_29 = arith.constant dense<0.000000e+00> : vector<8x16x16xf32>
    %87 = tpu.matmul %48, %74, %cst_29 {dimension_numbers = #tpu.dot_dimension_numbers<[2], [2], [1], [1], [0, 0, 0, 1, 1, 1], [0], [0]>} : vector<8x16x8xbf16>, vector<8x16x8xbf16>, vector<8x16x16xf32> -> vector<8x16x16xf32>
    "tpu.trace_stop"() : () -> ()
    "tpu.trace_start"() <{level = 10 : i32, message = "tvc,twc->tvw"}> : () -> ()
    %cst_30 = arith.constant dense<0.000000e+00> : vector<8x16x16xf32>
    %88 = tpu.matmul %74, %48, %cst_30 {dimension_numbers = #tpu.dot_dimension_numbers<[2], [2], [1], [1], [0, 0, 0, 1, 1, 1], [0], [0]>} : vector<8x16x8xbf16>, vector<8x16x8xbf16>, vector<8x16x16xf32> -> vector<8x16x16xf32>
    "tpu.trace_stop"() : () -> ()
    %cst_31 = arith.constant dense<0xFF800000> : vector<8x16xf32>
    %89 = vector.multi_reduction <maximumf>, %87, %cst_31 [2] : vector<8x16x16xf32> to vector<8x16xf32>
    %90 = vector.shape_cast %89 : vector<8x16xf32> to vector<8x16x1xf32>
    %91 = vector.broadcast %90 : vector<8x16x1xf32> to vector<8x16x16xf32>
    %92 = arith.subf %87, %91 : vector<8x16x16xf32>
    %93 = math.exp %92 : vector<8x16x16xf32>
    %cst_32 = arith.constant dense<0.000000e+00> : vector<8x16xf32>
    %94 = vector.multi_reduction <add>, %93, %cst_32 [2] : vector<8x16x16xf32> to vector<8x16xf32>
    %95 = vector.shape_cast %94 : vector<8x16xf32> to vector<8x16x1xf32>
    %96 = tpu.reciprocal %95 {approx = true} : vector<8x16x1xf32> -> vector<8x16x1xf32>
    %97 = vector.broadcast %96 : vector<8x16x1xf32> to vector<8x16x16xf32>
    %98 = arith.mulf %93, %97 : vector<8x16x16xf32>
    %99 = arith.truncf %98 : vector<8x16x16xf32> to vector<8x16x16xbf16>
    %cst_33 = arith.constant dense<0xFF800000> : vector<8x16xf32>
    %100 = vector.multi_reduction <maximumf>, %88, %cst_33 [2] : vector<8x16x16xf32> to vector<8x16xf32>
    %101 = vector.shape_cast %100 : vector<8x16xf32> to vector<8x16x1xf32>
    %102 = vector.broadcast %101 : vector<8x16x1xf32> to vector<8x16x16xf32>
    %103 = arith.subf %88, %102 : vector<8x16x16xf32>
    %104 = math.exp %103 : vector<8x16x16xf32>
    %cst_34 = arith.constant dense<0.000000e+00> : vector<8x16xf32>
    %105 = vector.multi_reduction <add>, %104, %cst_34 [2] : vector<8x16x16xf32> to vector<8x16xf32>
    %106 = vector.shape_cast %105 : vector<8x16xf32> to vector<8x16x1xf32>
    %107 = tpu.reciprocal %106 {approx = true} : vector<8x16x1xf32> -> vector<8x16x1xf32>
    %108 = vector.broadcast %107 : vector<8x16x1xf32> to vector<8x16x16xf32>
    %109 = arith.mulf %104, %108 : vector<8x16x16xf32>
    %110 = arith.truncf %109 : vector<8x16x16xf32> to vector<8x16x16xbf16>
    "tpu.trace_start"() <{level = 10 : i32, message = "twv,tvc->twc"}> : () -> ()
    %cst_35 = arith.constant dense<0.000000e+00> : vector<8x16x8xf32>
    %111 = tpu.matmul %99, %86, %cst_35 {dimension_numbers = #tpu.dot_dimension_numbers<[2], [1], [1], [2], [0, 0, 0, 1, 1, 2], [0], [0]>} : vector<8x16x16xbf16>, vector<8x16x8xbf16>, vector<8x16x8xf32> -> vector<8x16x8xf32>
    "tpu.trace_stop"() : () -> ()
    "tpu.trace_start"() <{level = 10 : i32, message = "tvw,twc->tvc"}> : () -> ()
    %cst_36 = arith.constant dense<0.000000e+00> : vector<8x16x8xf32>
    %112 = tpu.matmul %110, %80, %cst_36 {dimension_numbers = #tpu.dot_dimension_numbers<[2], [1], [1], [2], [0, 0, 0, 1, 1, 2], [0], [0]>} : vector<8x16x16xbf16>, vector<8x16x8xbf16>, vector<8x16x8xf32> -> vector<8x16x8xf32>
    "tpu.trace_stop"() : () -> ()
    %113 = vector.shape_cast %111 : vector<8x16x8xf32> to vector<128x8xf32>
    %114 = tpu.transpose %113, [1, 0] : vector<128x8xf32> -> vector<8x128xf32>
    %115 = arith.addf %1, %114 : vector<8x128xf32>
    %c0_37 = arith.constant 0 : index
    %c0_38 = arith.constant 0 : index
    %c0_39 = arith.constant 0 : index
    %116 = vector.load %arg6[%c0_37, %c0_38, %c0_39] : memref<1x8x128xf32, #tpu.memory_space<vmem>>, vector<1x8x128xf32>
    %117 = vector.shape_cast %116 : vector<1x8x128xf32> to vector<8x128xf32>
    %118 = vector.shape_cast %115 : vector<8x128xf32> to vector<1x8x128xf32>
    tpu.vector_store %arg6[%c0_37, %c0_38, %c0_39], %118 {strides = array<i32>} : memref<1x8x128xf32, #tpu.memory_space<vmem>>, vector<1x8x128xf32>,
    %119 = vector.shape_cast %112 : vector<8x16x8xf32> to vector<128x8xf32>
    %120 = tpu.transpose %119, [1, 0] : vector<128x8xf32> -> vector<8x128xf32>
    %121 = arith.addf %3, %120 : vector<8x128xf32>
    %c0_40 = arith.constant 0 : index
    %c0_41 = arith.constant 0 : index
    %c0_42 = arith.constant 0 : index
    %122 = vector.load %arg7[%c0_40, %c0_41, %c0_42] : memref<1x8x128xf32, #tpu.memory_space<vmem>>, vector<1x8x128xf32>
    %123 = vector.shape_cast %122 : vector<1x8x128xf32> to vector<8x128xf32>
    %124 = vector.shape_cast %121 : vector<8x128xf32> to vector<1x8x128xf32>
    tpu.vector_store %arg7[%c0_40, %c0_41, %c0_42], %124 {strides = array<i32>} : memref<1x8x128xf32, #tpu.memory_space<vmem>>, vector<1x8x128xf32>,
    return
  }
  func.func @transform_0(%arg0: i32, %arg1: i32) -> (i32, i32, i32) {
    %c0_i32 = arith.constant 0 : i32
    %c0_i32_0 = arith.constant 0 : i32
    return %arg0, %c0_i32, %arg1 : i32, i32, i32
  }
  func.func @transform_1(%arg0: i32, %arg1: i32) -> (i32, i32, i32) {
    %c0_i32 = arith.constant 0 : i32
    %c0_i32_0 = arith.constant 0 : i32
    return %arg0, %c0_i32, %arg1 : i32, i32, i32
  }
  func.func @transform_2(%arg0: i32, %arg1: i32) -> (i32, i32) {
    %c0_i32 = arith.constant 0 : i32
    %c0_i32_0 = arith.constant 0 : i32
    %c0_i32_1 = arith.constant 0 : i32
    return %c0_i32, %c0_i32_0 : i32, i32
  }
  func.func @transform_3(%arg0: i32, %arg1: i32) -> (i32, i32, i32) {
    %c0_i32 = arith.constant 0 : i32
    %c0_i32_0 = arith.constant 0 : i32
    %c0_i32_1 = arith.constant 0 : i32
    %c0_i32_2 = arith.constant 0 : i32
    return %c0_i32, %c0_i32_0, %c0_i32_1 : i32, i32, i32
  }
  func.func @transform_4(%arg0: i32, %arg1: i32) -> (i32, i32, i32) {
    %c0_i32 = arith.constant 0 : i32
    %c0_i32_0 = arith.constant 0 : i32
    return %arg0, %c0_i32, %arg1 : i32, i32, i32
  }
  func.func @transform_5(%arg0: i32, %arg1: i32) -> (i32, i32, i32) {
    %c0_i32 = arith.constant 0 : i32
    %c0_i32_0 = arith.constant 0 : i32
    return %arg0, %c0_i32, %arg1 : i32, i32, i32
  }
}

</mosaic_0001>

<bundles_post_ra>
// kernel: scam_pallas.1
= control target key start
LH: loop header
LB: loop body
LE: loop exit
PB: predicated region body
PF: predicated region fallthrough
CT: control target
= control target key end

     0   :  { %s3297_s18 = smov 0   ;;  %s3299_s19 = smov 0   ;;  %s4662_s0 = inlined_call_operand.vmem [shape: f32[2,8,128], index: 0, kind: input, shape index: {}]   ;;  %s4663_s1 = inlined_call_operand.vmem [shape: f32[2,8,128], index: 1, kind: input, shape index: {}]   ;;  %s4664_s2 = inlined_call_operand.vmem [shape: f32[8,8], index: 2, kind: input, shape index: {}]   ;;  %s4665_s3 = inlined_call_operand.vmem [shape: bf16[4,8,8], index: 3, kind: input, shape index: {}]   ;;  %s4666_s4 = inlined_call_operand.vmem [shape: f32[2,8,128], index: 4, kind: output, shape index: {0}]   ;;  %s4667_s5 = inlined_call_operand.vmem [shape: f32[2,8,128], index: 5, kind: output, shape index: {1}]  }
   0x1   :  { %s3301_s20 = smov 0  }
   0x2 LB: > { %s28_s21 = sadd.s32 1, %s3260_s19  ;;  %p2945_p0 = scmp.ge.s32.totalorder %s3264_s20, 1  ;;  %s3264_s20 = sphi %s3301_s20, %s16_s20   ;;  %s3260_s19 = sphi %s3299_s19, %s4702_s19   ;;  %s3256_s18 = sphi %s3297_s18, %s4701_s18  }
   0x3   : > { %p30_p1 = scmp.ge.s32.totalorder %s28_s21, 2  ;;  %p224_p2 = scmp.lt.s32.totalorder %s3264_s20, 3 }
   0x5   : > { %s4704_s21 = smov (%p30_p1, %s28_s21), 0  ;;  %p225_p3 = pnand %p2945_p0, %p224_p2 }
   0x7   : > { %228 = sbr.rel (%p225_p3) target bundleno = 1544 (0x608), region = 36 }
   0xc   : > { %p270_p4 = scmp.lt.s32.totalorder %s3256_s18, 1  ;;  %v2952_v2 = vld [vmem:[%s4665_s3 + $0xc] sm:$0xf]  ;;  %vm800_vm0 = vcmask 1043456   ;;  %vm373_vm1 = vcmask 64512  }
   0xd   : > { %v1491_v3 = vsel %vm800_vm0, %v2952_v2, 0  ;;  %v2951_v26 = vld [vmem:[%s4665_s3 + $0x8] sm:$0xf] }
   0xe   : > { %s4706_s18 = smov (!%p270_p4, %s3256_s18), 1  ;;  %1500 = vmatpush.bf16.msra.mxu3 %v1491_v3  ;;  %v1390_v27 = vsel %vm800_vm0, %v2951_v26, 0 }
   0xf   : > { %s3315_s22 = sshll.u32 %s4706_s18, 3  ;;  %1399 = vmatpush.bf16.msra.mxu2 %v1390_v27 }
  0x10   : > { %s3321_s25 = scalar_lea.vmem %s4663_s1, %s3315_s22  ;;  %s3328_s28 = scalar_lea.vmem %s4662_s0, %s3315_s22 }
  0x11   : > { %v300_v0 = vld [vmem:[%s3321_s25] sm:$0xff]  ;;  %s290_s18 = scalar_lea.vmem %s4666_s4, %s3315_s22  ;;  %s297_s26 = scalar_lea.vmem %s4667_s5, %s3315_s22 }
  0x12   : > { %333 = vxpose.xlu0.b32.start.end [1/1] (short) %v300_v0, 128  ;;  %v299_v1 = vld [vmem:[%s3328_s28] sm:$0xff] }
  0x92   : > { %301 = vxpose.xlu0.b32.start.end [1/1] (short) %v299_v1, 128 }
  0xb6   : > { %v3335_v4 = vpop.trf.xlu0 }
  0xb7   : > { %v869_v5 = vsel %vm373_vm1, %v3335_v4, 0.0 }
  0xb8   : > { %870 = vadd.xlane.f32.xlu1 %v869_v5 }
  0xbe   : > { %v3339_v6 = vpop.trf.xlu0 }
  0xbf   : > { %v1457_v7 = vpack.c.bf16 %v3339_v6, %v3335_v4  ;;  %v872_v8 = vsel %vm373_vm1, %v3339_v6, 0.0 }
  0xc0   : > { %873 = vadd.xlane.f32.xlu1 %v872_v8 }
  0xc1   : > { %2977 = vmatmul.msk.bf16.vlgmr.msra.gmra.mxu3 %vm373_vm1, %v1457_v7  ;;  %v3266_v7 = vmov 8.0  }
  0xc2   : > { %3045 = vrcp.f32 %v3266_v7 }
  0xc6   : > { %v3346_v9 = vpop.trf.xlu0 }
  0xc7   : > { %v875_v10 = vsel %vm373_vm1, %v3346_v9, 0.0 }
  0xc8   : > { %876 = vadd.xlane.f32.xlu1 %v875_v10  ;;  %v3046_v10 = vpop.eup %3045 }
  0xc9   : > { %vm427_vm2 = vweird.f32 %v3046_v10 }
  0xce   : > { %v3350_v11 = vpop.trf.xlu0 }
  0xcf   : > { %v1458_v12 = vpack.c.bf16 %v3350_v11, %v3346_v9  ;;  %v878_v39 = vsel %vm373_vm1, %v3350_v11, 0.0 }
  0xd1   : > { %2978 = vmatmul.msk.bf16.gmra.mxu3 %vm373_vm1, %v1458_v12 }
  0xd6   : > { %v3355_v13 = vpop.trf.xlu0 }
  0xd7   : > { %v881_v43 = vsel %vm373_vm1, %v3355_v13, 0.0 }
  0xde   : > { %v3357_v14 = vpop.trf.xlu0 }
  0xdf   : > { %v1459_v15 = vpack.c.bf16 %v3357_v14, %v3355_v13  ;;  %v884_v46 = vsel %vm373_vm1, %v3357_v14, 0.0 }
  0xe1   : > { %2979 = vmatmul.msk.bf16.gmra.mxu3 %vm373_vm1, %v1459_v15 }
  0xe6   : > { %v3362_v16 = vpop.trf.xlu0 }
  0xe7   : > { %v887_v50 = vsel %vm373_vm1, %v3362_v16, 0.0 }
  0xee   : > { %v3364_v17 = vpop.trf.xlu0 }
  0xef   : > { %v1460_v18 = vpack.c.bf16 %v3364_v17, %v3362_v16  ;;  %v890_v53 = vsel %vm373_vm1, %v3364_v17, 0.0 }
  0xf1   : > { %2980 = vmatmul.msk.bf16.gmra.mxu3 %vm373_vm1, %v1460_v18 }
  0xf6   : > { %v3369_v19 = vpop.trf.xlu0 }
  0xf7   : > { %v893_v57 = vsel %vm373_vm1, %v3369_v19, 0.0 }
  0xfe   : > { %v3371_v20 = vpop.trf.xlu0 }
  0xff   : > { %v1461_v21 = vpack.c.bf16 %v3371_v20, %v3369_v19  ;;  %v896_v60 = vsel %vm373_vm1, %v3371_v20, 0.0 }
 0x101   : > { %2981 = vmatmul.msk.bf16.gmra.mxu3 %vm373_vm1, %v1461_v21  ;;  %v423_v21 = vmul.f32 8.0, %v3046_v10 }
 0x106   : > { %v3376_v22 = vpop.trf.xlu0 }
 0x107   : > { %v899_v0 = vsel %vm373_vm1, %v3376_v22, 0.0 }
 0x10e   : > { %v3378_v23 = vpop.trf.xlu0 }
 0x10f   : > { %v1462_v24 = vpack.c.bf16 %v3378_v23, %v3376_v22  ;;  %v902_v3 = vsel %vm373_vm1, %v3378_v23, 0.0 }
 0x111   : > { %2982 = vmatmul.msk.bf16.gmra.mxu3 %vm373_vm1, %v1462_v24  ;;  %v424_v24 = vsub.f32 1.0, %v423_v21 }
 0x116   : > { %v3383_v25 = vpop.trf.xlu0 }
 0x117   : > { %v905_v15 = vsel %vm373_vm1, %v3383_v25, 0.0 }
 0x11e   : > { %v3389_v28 = vpop.trf.xlu0 }
 0x11f   : > { %v1463_v29 = vpack.c.bf16 %v3389_v28, %v3383_v25 }
 0x121   : > { %2983 = vmatmul.msk.bf16.gmra.mxu3 %vm373_vm1, %v1463_v29  ;;  %v908_v29 = vsel %vm373_vm1, %v3389_v28, 0.0 }
 0x126   : > { %v3394_v30 = vpop.trf.xlu0 }
 0x12b   : > { %v871_v26 = vpop.xlane.xlu1 %870 }
 0x12e   : > { %v3396_v31 = vpop.trf.xlu0 }
 0x12f   : > { %v1464_v32 = vpack.c.bf16 %v3396_v31, %v3394_v30 }
 0x131   : > { %2984 = vmatmul.msk.bf16.gmra.mxu3 %vm373_vm1, %v1464_v32 }
 0x136   : > { %v3401_v33 = vpop.trf.xlu0 }
 0x137   : > { %v374_v34 = vsel %vm373_vm1, %v3401_v33, 0.0 }
 0x138   : > { %375 = vadd.xlane.f32.xlu2 %v374_v34  ;;  %v425_v34 = vmul.f32 %v3046_v10, %v424_v24 }
 0x13e   : > { %v3405_v35 = vpop.trf.xlu0 }
 0x13f   : > { %v1356_v36 = vpack.c.bf16 %v3405_v35, %v3401_v33  ;;  %v377_v37 = vsel %vm373_vm1, %v3405_v35, 0.0 }
 0x140   : > { %378 = vadd.xlane.f32.xlu2 %v377_v37 }
 0x141   : > { %2969 = vmatmul.msk.bf16.vlgmr.msra.gmra.mxu2 %vm373_vm1, %v1356_v36  ;;  %v426_v36 = vadd.f32 %v3046_v10, %v425_v34 }
 0x146   : > { %v3412_v38 = vpop.trf.xlu0 }
 0x147   : > { %v380_v40 = vsel %vm373_vm1, %v3412_v38, 0.0 }
 0x148   : > { %879 = vadd.xlane.f32.xlu2 %v878_v39  ;;  %381 = vadd.xlane.f32.xlu1 %v380_v40  ;;  %v911_v40 = vsel %vm373_vm1, %v3394_v30, 0.0 }
 0x14e   : > { %v3418_v41 = vpop.trf.xlu0 }
 0x14f   : > { %v1357_v42 = vpack.c.bf16 %v3418_v41, %v3412_v38  ;;  %v383_v44 = vsel %vm373_vm1, %v3418_v41, 0.0 }
 0x150   : > { %882 = vadd.xlane.f32.xlu1 %v881_v43  ;;  %384 = vadd.xlane.f32.xlu2 %v383_v44  ;;  %v874_v43 = vpop.xlane.xlu1 %873  ;;  %v3502_v44 = vsel %vm427_vm2, %v3046_v10, %v426_v36 }
 0x151   : > { %2970 = vmatmul.msk.bf16.gmra.mxu2 %vm373_vm1, %v1357_v42 }
 0x156   : > { %v3427_v45 = vpop.trf.xlu0 }
 0x157   : > { %v386_v47 = vsel %vm373_vm1, %v3427_v45, 0.0 }
 0x158   : > { %885 = vadd.xlane.f32.xlu2 %v884_v46  ;;  %387 = vadd.xlane.f32.xlu1 %v386_v47  ;;  %v918_v46 = vmul.f32 %v874_v43, %v3502_v44 }
 0x15e   : > { %v3433_v48 = vpop.trf.xlu0 }
 0x15f   : > { %v1358_v49 = vpack.c.bf16 %v3433_v48, %v3427_v45  ;;  %v389_v51 = vsel %vm373_vm1, %v3433_v48, 0.0 }
 0x160   : > { %888 = vadd.xlane.f32.xlu1 %v887_v50  ;;  %390 = vadd.xlane.f32.xlu2 %v389_v51  ;;  %v914_v50 = vsel %vm373_vm1, %v3396_v31, 0.0 }
 0x161   : > { %2971 = vmatmul.msk.bf16.gmra.mxu2 %vm373_vm1, %v1358_v49  ;;  %v3508_v49 = vsub.f32 %v3339_v6, %v918_v46 }
 0x166   : > { %v3442_v52 = vpop.trf.xlu0 }
 0x167   : > { %v392_v54 = vsel %vm373_vm1, %v3442_v52, 0.0 }
 0x168   : > { %891 = vadd.xlane.f32.xlu2 %v890_v53  ;;  %393 = vadd.xlane.f32.xlu1 %v392_v54  ;;  %v917_v53 = vmul.f32 %v871_v26, %v3502_v44 }
 0x16e   : > { %v3448_v55 = vpop.trf.xlu0 }
 0x16f   : > { %v1359_v56 = vpack.c.bf16 %v3448_v55, %v3442_v52  ;;  %v395_v58 = vsel %vm373_vm1, %v3448_v55, 0.0 }
 0x170   : > { %894 = vadd.xlane.f32.xlu1 %v893_v57  ;;  %396 = vadd.xlane.f32.xlu2 %v395_v58  ;;  %v3520_v58 = vsub.f32 %v3335_v4, %v917_v53 }
 0x171   : > { %2972 = vmatmul.msk.bf16.gmra.mxu2 %vm373_vm1, %v1359_v56  ;;  %v950_v56 = vmul.f32 %v3508_v49, %v3508_v49 }
 0x172   : > { %v949_v4 = vmul.f32 %v3520_v58, %v3520_v58 }
 0x174   : > { %v965_v10 = vsel %vm373_vm1, %v949_v4, 0.0 }
 0x176   : > { %v3457_v59 = vpop.trf.xlu0 }
 0x177   : > { %v398_v61 = vsel %vm373_vm1, %v3457_v59, 0.0 }
 0x178   : > { %897 = vadd.xlane.f32.xlu2 %v896_v60  ;;  %399 = vadd.xlane.f32.xlu1 %v398_v61  ;;  %v968_v60 = vsel %vm373_vm1, %v950_v56, 0.0 }
 0x17e   : > { %v3463_v62 = vpop.trf.xlu0 }
 0x17f   : > { %v1360_v63 = vpack.c.bf16 %v3463_v62, %v3457_v59  ;;  %v401_v1 = vsel %vm373_vm1, %v3463_v62, 0.0 }
 0x180   : > { %900 = vadd.xlane.f32.xlu1 %v899_v0  ;;  %402 = vadd.xlane.f32.xlu2 %v401_v1 }
 0x181   : > { %2973 = vmatmul.msk.bf16.gmra.mxu2 %vm373_vm1, %v1360_v63  ;;  %v877_v63 = vpop.xlane.xlu1 %876 }
 0x186   : > { %v3472_v2 = vpop.trf.xlu0 }
 0x187   : > { %v404_v5 = vsel %vm373_vm1, %v3472_v2, 0.0 }
 0x188   : > { %903 = vadd.xlane.f32.xlu2 %v902_v3  ;;  %405 = vadd.xlane.f32.xlu0 %v404_v5 }
 0x18e   : > { %v3478_v8 = vpop.trf.xlu0 }
 0x18f   : > { %v1361_v12 = vpack.c.bf16 %v3478_v8, %v3472_v2  ;;  %v407_v18 = vsel %vm373_vm1, %v3478_v8, 0.0 }
 0x190   : > { %906 = vadd.xlane.f32.xlu2 %v905_v15  ;;  %408 = vadd.xlane.f32.xlu1 %v407_v18  ;;  %v919_v18 = vmul.f32 %v877_v63, %v3502_v44 }
 0x191   : > { %2974 = vmatmul.msk.bf16.gmra.mxu2 %vm373_vm1, %v1361_v12 }
 0x196   : > { %v3487_v27 = vpop.trf.xlu0 }
 0x197   : > { %v410_v32 = vsel %vm373_vm1, %v3487_v27, 0.0 }
 0x198   : > { %909 = vadd.xlane.f32.xlu1 %v908_v29  ;;  %411 = vadd.xlane.f32.xlu2 %v410_v32  ;;  %v3550_v29 = vsub.f32 %v3346_v9, %v919_v18 }
 0x19e   : > { %v3493_v37 = vpop.trf.xlu0 }
 0x19f   : > { %v1362_v39 = vpack.c.bf16 %v3493_v37, %v3487_v27  ;;  %v413_v42 = vsel %vm373_vm1, %v3493_v37, 0.0 }
 0x1a0   : > { %912 = vadd.xlane.f32.xlu2 %v911_v40  ;;  %414 = vadd.xlane.f32.xlu1 %v413_v42 }
 0x1a1   : > { %2975 = vmatmul.msk.bf16.gmra.mxu2 %vm373_vm1, %v1362_v39 }
 0x1a6   : > { %v3505_v47 = vpop.trf.xlu0 }
 0x1a7   : > { %v416_v51 = vsel %vm373_vm1, %v3505_v47, 0.0 }
 0x1a8   : > { %915 = vadd.xlane.f32.xlu1 %v914_v50  ;;  %417 = vadd.xlane.f32.xlu2 %v416_v51 }
 0x1ab   : > { %v376_v54 = vpop.xlane.xlu2 %375 }
 0x1ac   : > { %v429_v0 = vmul.f32 %v3502_v44, %v376_v54 }
 0x1ae   : > { %v3517_v57 = vpop.trf.xlu0  ;;  %v3536_v7 = vsub.f32 %v3401_v33, %v429_v0 }
 0x1af   : > { %v1363_v6 = vpack.c.bf16 %v3517_v57, %v3505_v47  ;;  %v419_v61 = vsel %vm373_vm1, %v3517_v57, 0.0 }
 0x1b0   : > { %969 = vadd.xlane.f32.xlu2 %v968_v60  ;;  %420 = vadd.xlane.f32.xlu1 %v419_v61 }
 0x1b1   : > { %2976 = vmatmul.msk.bf16.gmra.mxu2 %vm373_vm1, %v1363_v6 }
 0x1b3   : > { %v379_v1 = vpop.xlane.xlu2 %378 }
 0x1b4   : > { %v430_v3 = vmul.f32 %v3502_v44, %v379_v1 }
 0x1b6   : > { %v3533_v5 = vsub.f32 %v3405_v35, %v430_v3  ;;  %v461_v35 = vmul.f32 %v3536_v7, %v3536_v7 }
 0x1b8   : > { %966 = vadd.xlane.f32.xlu1 %v965_v10  ;;  %v462_v12 = vmul.f32 %v3533_v5, %v3533_v5  ;;  %v477_v32 = vsel %vm373_vm1, %v461_v35, 0.0 }
 0x1ba   : > { %v480_v15 = vsel %vm373_vm1, %v462_v12, 0.0 }
 0x1bb   : > { %v880_v21 = vpop.xlane.xlu2 %879  ;;  %v382_v24 = vpop.xlane.xlu1 %381  ;;  %481 = vadd.xlane.f32.xlu2 %v480_v15 }
 0x1bc   : > { %v920_v26 = vmul.f32 %v880_v21, %v3502_v44  ;;  %v431_v39 = vmul.f32 %v3502_v44, %v382_v24 }
 0x1be   : > { %v3547_v33 = vsub.f32 %v3350_v11, %v920_v26  ;;  %v951_v11 = vmul.f32 %v3550_v29, %v3550_v29  ;;  %v3566_v50 = vsub.f32 %v3412_v38, %v431_v39 }
 0x1c0   : > { %478 = vadd.xlane.f32.xlu1 %v477_v32  ;;  %v952_v34 = vmul.f32 %v3547_v33, %v3547_v33  ;;  %v971_v51 = vsel %vm373_vm1, %v951_v11, 0.0 }
 0x1c2   : > { %v974_v36 = vsel %vm373_vm1, %v952_v34, 0.0 }
 0x1c3   : > { %v883_v40 = vpop.xlane.xlu1 %882  ;;  %v385_v42 = vpop.xlane.xlu2 %384  ;;  %975 = vadd.xlane.f32.xlu2 %v974_v36 }
 0x1c4   : > { %v432_v43 = vmul.f32 %v3502_v44, %v385_v42  ;;  %v3560_v9 = vpop.f32.mrf.mxu2  ;;  %v921_v56 = vmul.f32 %v883_v40, %v3502_v44 }
 0x1c6   : > { %v3563_v46 = vsub.f32 %v3418_v41, %v432_v43  ;;  %v463_v41 = vmul.f32 %v3566_v50, %v3566_v50  ;;  %v3582_v0 = vsub.f32 %v3355_v13, %v921_v56 }
 0x1c8   : > { %972 = vadd.xlane.f32.xlu1 %v971_v51  ;;  %v464_v53 = vmul.f32 %v3563_v46, %v3563_v46  ;;  %v483_v1 = vsel %vm373_vm1, %v463_v41, 0.0 }
 0x1ca   : > { %v486_v54 = vsel %vm373_vm1, %v464_v53, 0.0 }
 0x1cb   : > { %v886_v6 = vpop.xlane.xlu2 %885  ;;  %v388_v60 = vpop.xlane.xlu1 %387  ;;  %487 = vadd.xlane.f32.xlu2 %v486_v54 }
 0x1cc   : > { %v922_v61 = vmul.f32 %v886_v6, %v3502_v44  ;;  %v3576_v38 = vpop.f32.mrf.mxu2  ;;  %v433_v10 = vmul.f32 %v3502_v44, %v388_v60 }
 0x1ce   : > { %v3579_v63 = vsub.f32 %v3357_v14, %v922_v61  ;;  %v953_v14 = vmul.f32 %v3582_v0, %v3582_v0  ;;  %v3599_v35 = vsub.f32 %v3427_v45, %v433_v10 }
 0x1d0   : > { %484 = vadd.xlane.f32.xlu1 %v483_v1  ;;  %v954_v4 = vmul.f32 %v3579_v63, %v3579_v63  ;;  %v977_v26 = vsel %vm373_vm1, %v953_v14, 0.0 }
 0x1d2   : > { %v980_v3 = vsel %vm373_vm1, %v954_v4, 0.0 }
 0x1d3   : > { %v889_v12 = vpop.xlane.xlu1 %888  ;;  %v391_v15 = vpop.xlane.xlu2 %390  ;;  %981 = vadd.xlane.f32.xlu2 %v980_v3 }
 0x1d4   : > { %v434_v18 = vmul.f32 %v3502_v44, %v391_v15  ;;  %v3592_v13 = vpop.f32.mrf.mxu2  ;;  %v923_v21 = vmul.f32 %v889_v12, %v3502_v44 }
 0x1d5   : > { %4674 = vst [vmem:[#allocation2_spill] sm:$0xff] %v3592_v13 }
 0x1d6   : > { %v3596_v24 = vsub.f32 %v3433_v48, %v434_v18  ;;  %v3605_v34 = vsub.f32 %v3362_v16, %v923_v21  ;;  %v465_v48 = vmul.f32 %v3599_v35, %v3599_v35 }
 0x1d8   : > { %978 = vadd.xlane.f32.xlu1 %v977_v26  ;;  %v466_v32 = vmul.f32 %v3596_v24, %v3596_v24  ;;  %v955_v43 = vmul.f32 %v3605_v34, %v3605_v34  ;;  %v489_v51 = vsel %vm373_vm1, %v465_v48, 0.0 }
 0x1da   : > { %v492_v36 = vsel %vm373_vm1, %v466_v32, 0.0  ;;  %v983_v54 = vsel %vm373_vm1, %v955_v43, 0.0 }
 0x1db   : > { %v892_v39 = vpop.xlane.xlu2 %891  ;;  %v394_v40 = vpop.xlane.xlu1 %393  ;;  %493 = vadd.xlane.f32.xlu2 %v492_v36 }
 0x1dc   : > { %v924_v45 = vmul.f32 %v892_v39, %v3502_v44  ;;  %v3611_v42 = vpop.f32.mrf.mxu2  ;;  %v435_v11 = vmul.f32 %v3502_v44, %v394_v40 }
 0x1dd   : > { %4675 = vst [vmem:[#allocation3_spill] sm:$0xff] %v3611_v42 }
 0x1de   : > { %v3617_v16 = vsub.f32 %v3364_v17, %v924_v45  ;;  %v3621_v53 = vsub.f32 %v3442_v52, %v435_v11 }
 0x1e0   : > { %490 = vadd.xlane.f32.xlu1 %v489_v51  ;;  %v956_v60 = vmul.f32 %v3617_v16, %v3617_v16  ;;  %v467_v1 = vmul.f32 %v3621_v53, %v3621_v53 }
 0x1e2   : > { %v986_v4 = vsel %vm373_vm1, %v956_v60, 0.0  ;;  %v495_v10 = vsel %vm373_vm1, %v467_v1, 0.0 }
 0x1e3   : > { %v895_v56 = vpop.xlane.xlu1 %894  ;;  %v397_v6 = vpop.xlane.xlu2 %396  ;;  %984 = vadd.xlane.f32.xlu2 %v983_v54 }
 0x1e4   : > { %v436_v41 = vmul.f32 %v3502_v44, %v397_v6  ;;  %v3627_v61 = vpop.f32.mrf.mxu2  ;;  %v925_v17 = vmul.f32 %v895_v56, %v3502_v44 }
 0x1e5   : > { %4676 = vst [vmem:[#allocation4_spill] sm:$0xff] %v3627_v61 }
 0x1e6   : > { %v3633_v52 = vsub.f32 %v3448_v55, %v436_v41  ;;  %v3637_v3 = vsub.f32 %v3369_v19, %v925_v17 }
 0x1e8   : > { %987 = vadd.xlane.f32.xlu1 %v986_v4  ;;  %v468_v14 = vmul.f32 %v3633_v52, %v3633_v52  ;;  %v957_v26 = vmul.f32 %v3637_v3, %v3637_v3 }
 0x1ea   : > { %v498_v32 = vsel %vm373_vm1, %v468_v14, 0.0  ;;  %v989_v39 = vsel %vm373_vm1, %v957_v26, 0.0 }
 0x1eb   : > { %v898_v12 = vpop.xlane.xlu2 %897  ;;  %v400_v15 = vpop.xlane.xlu1 %399  ;;  %496 = vadd.xlane.f32.xlu2 %v495_v10 }
 0x1ec   : > { %v926_v18 = vmul.f32 %v898_v12, %v3502_v44  ;;  %v3643_v21 = vpop.f32.mrf.mxu2  ;;  %v437_v55 = vmul.f32 %v3502_v44, %v400_v15 }
 0x1ed   : > { %4677 = vst [vmem:[#allocation5_spill] sm:$0xff] %v3643_v21 }
 0x1ee   : > { %v3649_v19 = vsub.f32 %v3371_v20, %v926_v18  ;;  %v3653_v36 = vsub.f32 %v3457_v59, %v437_v55 }
 0x1f0   : > { %499 = vadd.xlane.f32.xlu1 %v498_v32  ;;  %v958_v45 = vmul.f32 %v3649_v19, %v3649_v19  ;;  %v469_v51 = vmul.f32 %v3653_v36, %v3653_v36 }
 0x1f2   : > { %v992_v54 = vsel %vm373_vm1, %v958_v45, 0.0  ;;  %v501_v6 = vsel %vm373_vm1, %v469_v51, 0.0 }
 0x1f3   : > { %v901_v40 = vpop.xlane.xlu1 %900  ;;  %v403_v48 = vpop.xlane.xlu2 %402  ;;  %990 = vadd.xlane.f32.xlu2 %v989_v39 }
 0x1f4   : > { %v438_v11 = vmul.f32 %v3502_v44, %v403_v48  ;;  %v3659_v43 = vpop.f32.mrf.mxu2  ;;  %v927_v20 = vmul.f32 %v901_v40, %v3502_v44 }
 0x1f5   : > { %4678 = vst [vmem:[#allocation6_spill] sm:$0xff] %v3659_v43 }
 0x1f6   : > { %v3665_v59 = vsub.f32 %v3463_v62, %v438_v11  ;;  %v3669_v56 = vsub.f32 %v3376_v22, %v927_v20 }
 0x1f8   : > { %993 = vadd.xlane.f32.xlu1 %v992_v54  ;;  %v470_v17 = vmul.f32 %v3665_v59, %v3665_v59  ;;  %v959_v10 = vmul.f32 %v3669_v56, %v3669_v56 }
 0x1fa   : > { %v504_v12 = vsel %vm373_vm1, %v470_v17, 0.0  ;;  %v995_v14 = vsel %vm373_vm1, %v959_v10, 0.0 }
 0x1fb   : > { %v904_v60 = vpop.xlane.xlu2 %903  ;;  %502 = vadd.xlane.f32.xlu2 %v501_v6  ;;  %v406_v41 = vpop.xlane.xlu0 %405 }
 0x1fc   : > { %v928_v1 = vmul.f32 %v904_v60, %v3502_v44  ;;  %v3675_v4 = vpop.f32.mrf.mxu2  ;;  %v439_v62 = vmul.f32 %v3502_v44, %v406_v41 }
 0x1fd   : > { %4679 = vst [vmem:[#allocation7_spill] sm:$0xff] %v3675_v4 }
 0x1fe   : > { %v3681_v22 = vsub.f32 %v3378_v23, %v928_v1  ;;  %v3685_v15 = vsub.f32 %v3472_v2, %v439_v62  ;;  %v3694_v23 = vld [vmem:[%s4664_s2] sm:$0xff] }
 0x1ff   : > { %v3700_v48 = vperm.slane %v3694_v23, 6 }
 0x200   : > { %505 = vadd.xlane.f32.xlu1 %v504_v12  ;;  %v960_v26 = vmul.f32 %v3681_v22, %v3681_v22  ;;  %v471_v2 = vmul.f32 %v3685_v15, %v3685_v15 }
 0x202   : > { %v998_v11 = vsel %vm373_vm1, %v960_v26, 0.0  ;;  %v507_v54 = vsel %vm373_vm1, %v471_v2, 0.0 }
 0x203   : > { %v907_v18 = vpop.xlane.xlu2 %906  ;;  %v409_v55 = vpop.xlane.xlu1 %408  ;;  %996 = vadd.xlane.f32.xlu2 %v995_v14 }
 0x204   : > { %v440_v32 = vmul.f32 %v3502_v44, %v409_v55  ;;  %v1421_v39 = vpop.f32.mrf.mxu2  ;;  %v929_v40 = vmul.f32 %v907_v18, %v3502_v44 }
 0x205   : > { %v1422_v20 = vadd.f32 %v1421_v39, %v3700_v48 }
 0x206   : > { %v3703_v45 = vsub.f32 %v3478_v8, %v440_v32  ;;  %v3708_v51 = vsub.f32 %v3383_v25, %v929_v40 }
 0x207   : > { %v1449_v1 = vpack.c.bf16 %v1422_v20, %v1422_v20 }
 0x208   : > { %999 = vadd.xlane.f32.xlu1 %v998_v11  ;;  %v472_v41 = vmul.f32 %v3703_v45, %v3703_v45  ;;  %v961_v25 = vmul.f32 %v3708_v51, %v3708_v51 }
 0x209   : > { %v3722_v55 = vunpack.c.l.b16 %v1449_v1 }
 0x20a   : > { %v510_v18 = vsel %vm373_vm1, %v472_v41, 0.0  ;;  %v1001_v39 = vsel %vm373_vm1, %v961_v25, 0.0 }
 0x20b   : > { %v910_v6 = vpop.xlane.xlu1 %909  ;;  %v412_v60 = vpop.xlane.xlu2 %411  ;;  %508 = vadd.xlane.f32.xlu2 %v507_v54  ;;  %4680 = vst [vmem:[#allocation8_spill] sm:$0xff] %v3722_v55 }
 0x20c   : > { %v930_v17 = vmul.f32 %v910_v6, %v3502_v44  ;;  %v1423_v8 = vpop.f32.mrf.mxu2  ;;  %v441_v10 = vmul.f32 %v3502_v44, %v412_v60 }
 0x20d   : > { %v1424_v62 = vadd.f32 %v1423_v8, %v3700_v48 }
 0x20e   : > { %v3719_v12 = vsub.f32 %v3389_v28, %v930_v17  ;;  %v3727_v32 = vsub.f32 %v3487_v27, %v441_v10 }
 0x20f   : > { %v1450_v14 = vpack.c.bf16 %v1424_v62, %v1424_v62 }
 0x210   : > { %511 = vadd.xlane.f32.xlu1 %v510_v18  ;;  %v962_v28 = vmul.f32 %v3719_v12, %v3719_v12  ;;  %v473_v27 = vmul.f32 %v3727_v32, %v3727_v32 }
 0x211   : > { %v3724_v26 = vunpack.c.l.b16 %v1450_v14 }
 0x212   : > { %v1004_v41 = vsel %vm373_vm1, %v962_v28, 0.0  ;;  %v513_v1 = vsel %vm373_vm1, %v473_v27, 0.0 }
 0x213   : > { %4681 = vst [vmem:[#allocation9_spill] sm:$0xff] %v3724_v26  ;;  %v913_v2 = vpop.xlane.xlu2 %912  ;;  %v415_v11 = vpop.xlane.xlu1 %414  ;;  %1002 = vadd.xlane.f32.xlu2 %v1001_v39 }
 0x214   : > { %v442_v20 = vmul.f32 %v3502_v44, %v415_v11  ;;  %v1426_v54 = vpop.f32.mrf.mxu2  ;;  %v931_v6 = vmul.f32 %v913_v2, %v3502_v44 }
 0x215   : > { %v1427_v17 = vadd.f32 %v1426_v54, %v3700_v48 }
 0x216   : > { %v3739_v60 = vsub.f32 %v3493_v37, %v442_v20  ;;  %v3744_v8 = vsub.f32 %v3394_v30, %v931_v6 }
 0x217   : > { %v1451_v18 = vpack.c.bf16 %v1427_v17, %v1427_v17 }
 0x218   : > { %1005 = vadd.xlane.f32.xlu1 %v1004_v41  ;;  %v474_v25 = vmul.f32 %v3739_v60, %v3739_v60  ;;  %v963_v30 = vmul.f32 %v3744_v8, %v3744_v8 }
 0x219   : > { %v3758_v54 = vunpack.c.l.b16 %v1451_v18  ;;  %v2950_v18 = vld [vmem:[%s4665_s3 + $0x4] sm:$0xf] }
 0x21a   : > { %v516_v20 = vsel %vm373_vm1, %v474_v25, 0.0  ;;  %v1007_v41 = vsel %vm373_vm1, %v963_v30, 0.0  ;;  %v1289_v30 = vsel %vm800_vm0, %v2950_v18, 0 }
 0x21b   : > { %v916_v62 = vpop.xlane.xlu1 %915  ;;  %v418_v10 = vpop.xlane.xlu2 %417  ;;  %514 = vadd.xlane.f32.xlu2 %v513_v1  ;;  %4682 = vst [vmem:[#allocation10_spill] sm:$0xff] %v3758_v54  ;;  %1298 = vmatpush.bf16.msra.mxu1 %v1289_v30 }
 0x21c   : > { %v932_v14 = vmul.f32 %v916_v62, %v3502_v44  ;;  %v1428_v37 = vpop.f32.mrf.mxu2  ;;  %v443_v2 = vmul.f32 %v3502_v44, %v418_v10 }
 0x21d   : > { %v1429_v39 = vadd.f32 %v1428_v37, %v3700_v48 }
 0x21e   : > { %v3755_v11 = vsub.f32 %v3396_v31, %v932_v14  ;;  %v3763_v27 = vsub.f32 %v3505_v47, %v443_v2 }
 0x21f   : > { %v1452_v28 = vpack.c.bf16 %v1429_v39, %v1429_v39 }
 0x220   : > { %517 = vadd.xlane.f32.xlu1 %v516_v20  ;;  %v964_v31 = vmul.f32 %v3755_v11, %v3755_v11  ;;  %v475_v47 = vmul.f32 %v3763_v27, %v3763_v27 }
 0x221   : > { %v3760_v6 = vunpack.c.l.b16 %v1452_v28 }
 0x222   : > { %v1010_v2 = vsel %vm373_vm1, %v964_v31, 0.0  ;;  %v519_v20 = vsel %vm373_vm1, %v475_v47, 0.0 }
 0x223   : > { %4683 = vst [vmem:[#allocation11_spill] sm:$0xff] %v3760_v6  ;;  %v970_v1 = vpop.xlane.xlu2 %969  ;;  %v421_v62 = vpop.xlane.xlu1 %420  ;;  %1008 = vadd.xlane.f32.xlu2 %v1007_v41 }
 0x224   : > { %v1014_v10 = vmul.f32 %v970_v1, %v3502_v44  ;;  %v444_v25 = vmul.f32 %v3502_v44, %v421_v62  ;;  %v1431_v14 = vpop.f32.mrf.mxu2 }
 0x225   : > { %v1432_v28 = vadd.f32 %v1431_v14, %v3700_v48 }
 0x226   : > { %v1030_v37 = vadd.f32 1e-06, %v1014_v10  ;;  %v3778_v39 = vsub.f32 %v3517_v57, %v444_v25 }
 0x227   : > { %v1453_v62 = vpack.c.bf16 %v1432_v28, %v1432_v28  ;;  %v366_v28 = vld [vmem:[%s4665_s3] sm:$0xf] }
 0x228   : > { %3047 = vrsqrt.f32 %v1030_v37  ;;  %1011 = vadd.xlane.f32.xlu1 %v1010_v2  ;;  %v476_v1 = vmul.f32 %v3778_v39, %v3778_v39  ;;  %vm1061_vm4 = vweird.f32 %v1030_v37 }
 0x229   : > { %v3790_v30 = vunpack.c.l.b16 %v1453_v62 }
 0x22a   : > { %v522_v47 = vsel %vm373_vm1, %v476_v1, 0.0 }
 0x22b   : > { %v967_v41 = vpop.xlane.xlu1 %966  ;;  %520 = vadd.xlane.f32.xlu2 %v519_v20  ;;  %4684 = vst [vmem:[#allocation12_spill] sm:$0xff] %v3790_v30 }
 0x22c   : > { %v1013_v57 = vmul.f32 %v967_v41, %v3502_v44  ;;  %v1433_v10 = vpop.f32.mrf.mxu2 }
 0x22d   : > { %v1434_v31 = vadd.f32 %v1433_v10, %v3700_v48 }
 0x22e   : > { %v3048_v25 = vpop.eup %3047  ;;  %v1029_v18 = vadd.f32 1e-06, %v1013_v57  ;;  %v482_v17 = vpop.xlane.xlu2 %481  ;;  %v802_v57 = vsel %vm800_vm0, %v366_v28, 0 }
 0x22f   : > { %v1056_v40 = vmul.f32 %v3048_v25, %v1030_v37  ;;  %v1454_v14 = vpack.c.bf16 %v1434_v31, %v1434_v31  ;;  %v526_v2 = vmul.f32 %v482_v17, %v3502_v44  ;;  %811 = vmatpush.bf16.msra.mxu0 %v802_v57  ;;  %vm1062_vm3 = vweird.f32 %v3048_v25 }
 0x230   : > { %3049 = vrsqrt.f32 %v1029_v18  ;;  %523 = vadd.xlane.f32.xlu1 %v522_v47  ;;  %vm1063_vm5 = vmor %vm1061_vm4, %vm1062_vm3  ;;  %v3812_v37 = vperm.slane %v3694_v23, 2  ;;  %vm1051_vm7 = vweird.f32 %v1029_v18 }
 0x231   : > { %v1057_v20 = vmul.f32 %v3048_v25, %v1056_v40  ;;  %v3795_v41 = vunpack.c.l.b16 %v1454_v14  ;;  %v542_v10 = vadd.f32 1e-06, %v526_v2 }
 0x233   : > { %4685 = vst [vmem:[#allocation13_spill] sm:$0xff] %v3795_v41  ;;  %v1058_v31 = vmul.f32 0.5, %v1057_v20  ;;  %3051 = vrsqrt.f32 %v542_v10  ;;  %v479_v1 = vpop.xlane.xlu1 %478  ;;  %vm573_vm10 = vweird.f32 %v542_v10 }
 0x234   : > { %v525_v62 = vmul.f32 %v479_v1, %v3502_v44 }
 0x235   : > { %v1059_v47 = vsub.f32 1.5, %v1058_v31 }
 0x236   : > { %v3050_v54 = vpop.eup %3049  ;;  %v3801_v6 = vadd.f32 1e-06, %v525_v62  ;;  %v976_v55 = vpop.xlane.xlu2 %975 }
 0x237   : > { %v1046_v40 = vmul.f32 %v3050_v54, %v1029_v18  ;;  %v1060_v14 = vmul.f32 %v3048_v25, %v1059_v47  ;;  %v1016_v2 = vmul.f32 %v976_v55, %v3502_v44  ;;  %vm1052_vm6 = vweird.f32 %v3050_v54 }
 0x238   : > { %3053 = vrsqrt.f32 %v3801_v6  ;;  %vm1053_vm8 = vmor %vm1051_vm7, %vm1052_vm6  ;;  %vm563_vm13 = vweird.f32 %v3801_v6 }
 0x239   : > { %v3052_v28 = vpop.eup %3051  ;;  %v1047_v20 = vmul.f32 %v3050_v54, %v1046_v40  ;;  %v3805_v17 = vadd.f32 1e-06, %v1016_v2  ;;  %v1064_v30 = vsel %vm1063_vm5, %v3048_v25, %v1060_v14 }
 0x23a   : > { %v568_v57 = vmul.f32 %v3052_v28, %v542_v10  ;;  %v1206_v2 = vmul.f32 %v1064_v30, %v3508_v49  ;;  %vm574_vm9 = vweird.f32 %v3052_v28 }
 0x23b   : > { %v1048_v1 = vmul.f32 0.5, %v1047_v20  ;;  %v973_v31 = vpop.xlane.xlu1 %972  ;;  %3055 = vrsqrt.f32 %v3805_v17  ;;  %vm575_vm11 = vmor %vm573_vm10, %vm574_vm9  ;;  %vm1081_vm0 = vweird.f32 %v3805_v17 }
 0x23c   : > { %v569_v62 = vmul.f32 %v3052_v28, %v568_v57  ;;  %v1015_v47 = vmul.f32 %v973_v31, %v3502_v44 }
 0x23d   : > { %v1049_v41 = vsub.f32 1.5, %v1048_v1 }
 0x23e   : > { %v3054_v26 = vpop.eup %3053  ;;  %v570_v43 = vmul.f32 0.5, %v569_v62  ;;  %v3809_v55 = vadd.f32 1e-06, %v1015_v47  ;;  %v488_v40 = vpop.xlane.xlu2 %487 }
 0x23f   : > { %v1050_v20 = vmul.f32 %v3050_v54, %v1049_v41  ;;  %v558_v25 = vmul.f32 %v3054_v26, %v3801_v6  ;;  %v528_v57 = vmul.f32 %v488_v40, %v3502_v44  ;;  %v1223_v40 = vmul.f32 %v3812_v37, %v1206_v2 }
 0x240   : > { %v571_v14 = vsub.f32 1.5, %v570_v43  ;;  %3057 = vrsqrt.f32 %v3809_v55  ;;  %v3823_v43 = vperm.slane %v3694_v23, 3  ;;  %vm564_vm12 = vweird.f32 %v3054_v26 }
 0x241   : > { %v1054_v1 = vsel %vm1053_vm8, %v3050_v54, %v1050_v20  ;;  %v559_v31 = vmul.f32 %v3054_v26, %v558_v25  ;;  %v3056_v62 = vpop.eup %3055  ;;  %v3819_v13 = vadd.f32 1e-06, %v528_v57  ;;  %vm565_vm14 = vmor %vm563_vm13, %vm564_vm12  ;;  %vm1071_vm4 = vweird.f32 %v3809_v55 }
 0x242   : > { %v1205_v47 = vmul.f32 %v1054_v1, %v3520_v58  ;;  %v572_v4 = vmul.f32 %v3052_v28, %v571_v14  ;;  %v1076_v18 = vmul.f32 %v3056_v62, %v3805_v17  ;;  %vm1082_vm15 = vweird.f32 %v3056_v62 }
 0x243   : > { %v560_v49 = vmul.f32 0.5, %v559_v31  ;;  %v485_v30 = vpop.xlane.xlu1 %484  ;;  %3059 = vrsqrt.f32 %v3819_v13  ;;  %v3833_v31 = vperm.slane %v3694_v23, 0  ;;  %vm1083_vm2 = vmor %vm1081_vm0, %vm1082_vm15  ;;  %vm593_vm7 = vweird.f32 %v3819_v13 }
 0x244   : > { %v576_v41 = vsel %vm575_vm11, %v3052_v28, %v572_v4  ;;  %v527_v54 = vmul.f32 %v485_v30, %v3502_v44  ;;  %v1077_v10 = vmul.f32 %v3056_v62, %v1076_v18  ;;  %v1222_v20 = vmul.f32 %v3812_v37, %v1205_v47 }
 0x245   : > { %v561_v58 = vsub.f32 1.5, %v560_v49  ;;  %v718_v14 = vmul.f32 %v576_v41, %v3533_v5  ;;  %v3836_v4 = vperm.slane %v3694_v23, 1  ;;  %v1240_v18 = vadd.f32 %v3823_v43, %v1223_v40 }
 0x246   : > { %v3058_v25 = vpop.eup %3057  ;;  %v3830_v57 = vadd.f32 1e-06, %v527_v54  ;;  %v982_v1 = vpop.xlane.xlu2 %981  ;;  %v1078_v2 = vmul.f32 0.5, %v1077_v10  ;;  %v1239_v47 = vadd.f32 %v3823_v43, %v1222_v20 }
 0x247   : > { %v562_v28 = vmul.f32 %v3054_v26, %v561_v58  ;;  %v1066_v49 = vmul.f32 %v3058_v25, %v3809_v55  ;;  %v1018_v5 = vmul.f32 %v982_v1, %v3502_v44  ;;  %v735_v61 = vmul.f32 %v3833_v31, %v718_v14 }
 0x248   : > { %3061 = vrsqrt.f32 %v3830_v57  ;;  %v1079_v41 = vsub.f32 1.5, %v1078_v2  ;;  %v1255_v10 = vpack.c.bf16 %v1240_v18, %v1239_v47  ;;  %vm1072_vm3 = vweird.f32 %v3058_v25 }
 0x249   : > { %v566_v30 = vsel %vm565_vm14, %v3054_v26, %v562_v28  ;;  %v1067_v23 = vmul.f32 %v3058_v25, %v1066_v49  ;;  %v3060_v54 = vpop.eup %3059  ;;  %v3845_v6 = vadd.f32 1e-06, %v1018_v5  ;;  %v752_v18 = vadd.f32 %v3836_v4, %v735_v61  ;;  %vm1073_vm5 = vmor %vm1071_vm4, %vm1072_vm3 }
 0x24a   : > { %v717_v58 = vmul.f32 %v566_v30, %v3536_v7  ;;  %v1080_v42 = vmul.f32 %v3056_v62, %v1079_v41  ;;  %v588_v20 = vmul.f32 %v3060_v54, %v3819_v13  ;;  %2961 = vmatmul.msk.bf16.vlgmr.msra.gmra.mxu1 %vm373_vm1, %v1255_v10  ;;  %vm594_vm6 = vweird.f32 %v3060_v54 }
 0x24b   : > { %v1068_v1 = vmul.f32 0.5, %v1067_v23  ;;  %v979_v21 = vpop.xlane.xlu1 %978  ;;  %3063 = vrsqrt.f32 %v3845_v6  ;;  %vm595_vm8 = vmor %vm593_vm7, %vm594_vm6  ;;  %vm583_vm10 = vweird.f32 %v3830_v57  ;;  %vm1101_vm13 = vweird.f32 %v3845_v6 }
 0x24c   : > { %v1017_v26 = vmul.f32 %v979_v21, %v3502_v44  ;;  %v734_v7 = vmul.f32 %v3833_v31, %v717_v58  ;;  %v1084_v40 = vsel %vm1083_vm2, %v3056_v62, %v1080_v42  ;;  %v589_v14 = vmul.f32 %v3060_v54, %v588_v20 }
 0x24d   : > { %v1069_v28 = vsub.f32 1.5, %v1068_v1  ;;  %v1208_v17 = vmul.f32 %v1084_v40, %v3547_v33 }
 0x24e   : > { %v3062_v2 = vpop.eup %3061  ;;  %v3855_v49 = vadd.f32 1e-06, %v1017_v26  ;;  %v494_v5 = vpop.xlane.xlu2 %493  ;;  %v751_v47 = vadd.f32 %v3836_v4, %v734_v7  ;;  %v590_v21 = vmul.f32 0.5, %v589_v14 }
 0x24f   : > { %v1070_v30 = vmul.f32 %v3058_v25, %v1069_v28  ;;  %v578_v41 = vmul.f32 %v3062_v2, %v3830_v57  ;;  %v530_v42 = vmul.f32 %v494_v5, %v3502_v44  ;;  %v1225_v55 = vmul.f32 %v3812_v37, %v1208_v17 }
 0x250   : > { %3065 = vrsqrt.f32 %v3855_v49  ;;  %v767_v62 = vpack.c.bf16 %v752_v18, %v751_v47  ;;  %v591_v23 = vsub.f32 1.5, %v590_v21  ;;  %vm584_vm9 = vweird.f32 %v3062_v2 }
 0x251   : > { %v1074_v33 = vsel %vm1073_vm5, %v3058_v25, %v1070_v30  ;;  %v579_v58 = vmul.f32 %v3062_v2, %v578_v41  ;;  %v3064_v10 = vpop.eup %3063  ;;  %v3864_v61 = vadd.f32 1e-06, %v530_v42  ;;  %v1242_v21 = vadd.f32 %v3823_v43, %v1225_v55  ;;  %vm585_vm11 = vmor %vm583_vm10, %vm584_vm9 }
 0x252   : > { %v1207_v1 = vmul.f32 %v1074_v33, %v3550_v29  ;;  %2953 = vmatmul.msk.bf16.vlgmr.msra.gmra.mxu0 %vm373_vm1, %v767_v62  ;;  %v592_v20 = vmul.f32 %v3060_v54, %v591_v23  ;;  %v1096_v7 = vmul.f32 %v3064_v10, %v3845_v6  ;;  %vm1102_vm12 = vweird.f32 %v3064_v10 }
 0x253   : > { %v580_v26 = vmul.f32 0.5, %v579_v58  ;;  %v491_v40 = vpop.xlane.xlu1 %490  ;;  %3067 = vrsqrt.f32 %v3864_v61  ;;  %vm1103_vm14 = vmor %vm1101_vm13, %vm1102_vm12  ;;  %vm1091_vm0 = vweird.f32 %v3855_v49  ;;  %vm613_vm4 = vweird.f32 %v3864_v61 }
 0x254   : > { %v529_v25 = vmul.f32 %v491_v40, %v3502_v44  ;;  %v1224_v29 = vmul.f32 %v3812_v37, %v1207_v1  ;;  %v596_v28 = vsel %vm595_vm8, %v3060_v54, %v592_v20  ;;  %v1097_v5 = vmul.f32 %v3064_v10, %v1096_v7 }
 0x255   : > { %v581_v14 = vsub.f32 1.5, %v580_v26  ;;  %v720_v17 = vmul.f32 %v596_v28, %v3563_v46 }
 0x256   : > { %v3066_v47 = vpop.eup %3065  ;;  %v3874_v18 = vadd.f32 1e-06, %v529_v25  ;;  %v985_v13 = vpop.xlane.xlu2 %984  ;;  %v1241_v30 = vadd.f32 %v3823_v43, %v1224_v29  ;;  %v1098_v42 = vmul.f32 0.5, %v1097_v5 }
 0x257   : > { %v582_v41 = vmul.f32 %v3062_v2, %v581_v14  ;;  %v1086_v62 = vmul.f32 %v3066_v47, %v3855_v49  ;;  %v1019_v54 = vmul.f32 %v985_v13, %v3502_v44  ;;  %v737_v57 = vmul.f32 %v3833_v31, %v720_v17 }
 0x258   : > { %3069 = vrsqrt.f32 %v3874_v18  ;;  %v1256_v33 = vpack.c.bf16 %v1242_v21, %v1241_v30  ;;  %v1099_v23 = vsub.f32 1.5, %v1098_v42  ;;  %vm1092_vm15 = vweird.f32 %v3066_v47 }
 0x259   : > { %v586_v46 = vsel %vm585_vm11, %v3062_v2, %v582_v41  ;;  %v1087_v58 = vmul.f32 %v3066_v47, %v1086_v62  ;;  %v3068_v1 = vpop.eup %3067  ;;  %v3883_v55 = vadd.f32 1e-06, %v1019_v54  ;;  %v754_v21 = vadd.f32 %v3836_v4, %v737_v57  ;;  %vm1093_vm2 = vmor %vm1091_vm0, %vm1092_vm15 }
 0x25a   : > { %v719_v20 = vmul.f32 %v586_v46, %v3566_v50  ;;  %v1100_v26 = vmul.f32 %v3064_v10, %v1099_v23  ;;  %v608_v40 = vmul.f32 %v3068_v1, %v3864_v61  ;;  %2962 = vmatmul.msk.bf16.gmra.mxu1 %vm373_vm1, %v1256_v33  ;;  %vm614_vm3 = vweird.f32 %v3068_v1 }
 0x25b   : > { %v1088_v7 = vmul.f32 0.5, %v1087_v58  ;;  %v988_v25 = vpop.xlane.xlu1 %987  ;;  %3071 = vrsqrt.f32 %v3883_v55  ;;  %vm615_vm5 = vmor %vm613_vm4, %vm614_vm3  ;;  %vm603_vm7 = vweird.f32 %v3874_v18  ;;  %vm1111_vm10 = vweird.f32 %v3883_v55 }
 0x25c   : > { %v1020_v2 = vmul.f32 %v988_v25, %v3502_v44  ;;  %v736_v50 = vmul.f32 %v3833_v31, %v719_v20  ;;  %v1104_v29 = vsel %vm1103_vm14, %v3064_v10, %v1100_v26  ;;  %v609_v14 = vmul.f32 %v3068_v1, %v608_v40 }
 0x25d   : > { %v1089_v28 = vsub.f32 1.5, %v1088_v7  ;;  %v1210_v6 = vmul.f32 %v1104_v29, %v3579_v63 }
 0x25e   : > { %v3070_v5 = vpop.eup %3069  ;;  %v3893_v17 = vadd.f32 1e-06, %v1020_v2  ;;  %v497_v13 = vpop.xlane.xlu2 %496  ;;  %v753_v30 = vadd.f32 %v3836_v4, %v736_v50  ;;  %v610_v42 = vmul.f32 0.5, %v609_v14 }
 0x25f   : > { %v1090_v41 = vmul.f32 %v3066_v47, %v1089_v28  ;;  %v598_v62 = vmul.f32 %v3070_v5, %v3874_v18  ;;  %v531_v10 = vmul.f32 %v497_v13, %v3502_v44  ;;  %v1227_v49 = vmul.f32 %v3812_v37, %v1210_v6 }
 0x260   : > { %3073 = vrsqrt.f32 %v3893_v17  ;;  %v768_v54 = vpack.c.bf16 %v754_v21, %v753_v30  ;;  %v611_v33 = vsub.f32 1.5, %v610_v42  ;;  %vm604_vm6 = vweird.f32 %v3070_v5 }
 0x261   : > { %v1094_v63 = vsel %vm1093_vm2, %v3066_v47, %v1090_v41  ;;  %v599_v46 = vmul.f32 %v3070_v5, %v598_v62  ;;  %v3072_v23 = vpop.eup %3071  ;;  %v3902_v20 = vadd.f32 1e-06, %v531_v10  ;;  %v1244_v13 = vadd.f32 %v3823_v43, %v1227_v49  ;;  %vm605_vm8 = vmor %vm603_vm7, %vm604_vm6 }
 0x262   : > { %v1209_v58 = vmul.f32 %v1094_v63, %v3582_v0  ;;  %2954 = vmatmul.msk.bf16.gmra.mxu0 %vm373_vm1, %v768_v54  ;;  %v612_v57 = vmul.f32 %v3068_v1, %v611_v33  ;;  %v1106_v7 = vmul.f32 %v3072_v23, %v3883_v55  ;;  %vm1112_vm9 = vweird.f32 %v3072_v23 }
 0x263   : > { %v600_v26 = vmul.f32 0.5, %v599_v46  ;;  %v500_v40 = vpop.xlane.xlu1 %499  ;;  %3075 = vrsqrt.f32 %v3902_v20  ;;  %vm1113_vm11 = vmor %vm1111_vm10, %vm1112_vm9  ;;  %vm1121_vm13 = vweird.f32 %v3893_v17  ;;  %vm623_vm0 = vweird.f32 %v3902_v20 }
 0x264   : > { %v532_v47 = vmul.f32 %v500_v40, %v3502_v44  ;;  %v1226_v0 = vmul.f32 %v3812_v37, %v1209_v58  ;;  %v616_v25 = vsel %vm615_vm5, %v3068_v1, %v612_v57  ;;  %v1107_v50 = vmul.f32 %v3072_v23, %v1106_v7 }
 0x265   : > { %v601_v2 = vsub.f32 1.5, %v600_v26  ;;  %v722_v28 = vmul.f32 %v616_v25, %v3596_v24 }
 0x266   : > { %v3074_v29 = vpop.eup %3073  ;;  %v3912_v14 = vadd.f32 1e-06, %v532_v47  ;;  %v991_v61 = vpop.xlane.xlu2 %990  ;;  %v1243_v6 = vadd.f32 %v3823_v43, %v1226_v0  ;;  %v1108_v21 = vmul.f32 0.5, %v1107_v50 }
 0x267   : > { %v602_v30 = vmul.f32 %v3070_v5, %v601_v2  ;;  %v1116_v41 = vmul.f32 %v3074_v29, %v3893_v17  ;;  %v1021_v1 = vmul.f32 %v991_v61, %v3502_v44  ;;  %v739_v18 = vmul.f32 %v3833_v31, %v722_v28 }
 0x268   : > { %3077 = vrsqrt.f32 %v3912_v14  ;;  %v1257_v42 = vpack.c.bf16 %v1244_v13, %v1243_v6  ;;  %v1109_v62 = vsub.f32 1.5, %v1108_v21  ;;  %vm1122_vm12 = vweird.f32 %v3074_v29 }
 0x269   : > { %v606_v24 = vsel %vm605_vm8, %v3070_v5, %v602_v30  ;;  %v1117_v10 = vmul.f32 %v3074_v29, %v1116_v41  ;;  %v3076_v54 = vpop.eup %3075  ;;  %v3921_v33 = vadd.f32 1e-06, %v1021_v1  ;;  %v756_v50 = vadd.f32 %v3836_v4, %v739_v18  ;;  %vm1123_vm14 = vmor %vm1121_vm13, %vm1122_vm12 }
 0x26a   : > { %v721_v63 = vmul.f32 %v606_v24, %v3599_v35  ;;  %v1110_v46 = vmul.f32 %v3072_v23, %v1109_v62  ;;  %v618_v49 = vmul.f32 %v3076_v54, %v3902_v20  ;;  %2963 = vmatmul.msk.bf16.gmra.mxu1 %vm373_vm1, %v1257_v42  ;;  %vm624_vm15 = vweird.f32 %v3076_v54 }
 0x26b   : > { %v1118_v58 = vmul.f32 0.5, %v1117_v10  ;;  %v994_v57 = vpop.xlane.xlu1 %993  ;;  %3079 = vrsqrt.f32 %v3921_v33  ;;  %vm625_vm2 = vmor %vm623_vm0, %vm624_vm15  ;;  %vm633_vm4 = vweird.f32 %v3912_v14  ;;  %vm1131_vm7 = vweird.f32 %v3921_v33 }
 0x26c   : > { %v1022_v5 = vmul.f32 %v994_v57, %v3502_v44  ;;  %v738_v35 = vmul.f32 %v3833_v31, %v721_v63  ;;  %v1114_v26 = vsel %vm1113_vm11, %v3072_v23, %v1110_v46  ;;  %v619_v40 = vmul.f32 %v3076_v54, %v618_v49 }
 0x26d   : > { %v1119_v7 = vsub.f32 1.5, %v1118_v58  ;;  %v1211_v55 = vmul.f32 %v1114_v26, %v3605_v34 }
 0x26e   : > { %v3078_v47 = vpop.eup %3077  ;;  %v3931_v0 = vadd.f32 1e-06, %v1022_v5  ;;  %v503_v25 = vpop.xlane.xlu2 %502  ;;  %v755_v2 = vadd.f32 %v3836_v4, %v738_v35  ;;  %v620_v61 = vmul.f32 0.5, %v619_v40 }
 0x26f   : > { %v1120_v28 = vmul.f32 %v3074_v29, %v1119_v7  ;;  %v628_v6 = vmul.f32 %v3078_v47, %v3912_v14  ;;  %v533_v23 = vmul.f32 %v503_v25, %v3502_v44  ;;  %v1228_v17 = vmul.f32 %v3812_v37, %v1211_v55 }
 0x270   : > { %3081 = vrsqrt.f32 %v3931_v0  ;;  %v769_v13 = vpack.c.bf16 %v756_v50, %v755_v2  ;;  %v621_v30 = vsub.f32 1.5, %v620_v61  ;;  %vm634_vm3 = vweird.f32 %v3078_v47 }
 0x271   : > { %v1124_v34 = vsel %vm1123_vm14, %v3074_v29, %v1120_v28  ;;  %v629_v21 = vmul.f32 %v3078_v47, %v628_v6  ;;  %v3080_v41 = vpop.eup %3079  ;;  %v3940_v42 = vadd.f32 1e-06, %v533_v23  ;;  %v1245_v35 = vadd.f32 %v3823_v43, %v1228_v17  ;;  %vm635_vm5 = vmor %vm633_vm4, %vm634_vm3 }
 0x272   : > { %v1212_v1 = vmul.f32 %v1124_v34, %v3617_v16  ;;  %2955 = vmatmul.msk.bf16.gmra.mxu0 %vm373_vm1, %v769_v13  ;;  %v622_v24 = vmul.f32 %v3076_v54, %v621_v30  ;;  %v1126_v10 = vmul.f32 %v3080_v41, %v3921_v33  ;;  %vm1132_vm6 = vweird.f32 %v3080_v41 }
 0x273   : > { %v630_v62 = vmul.f32 0.5, %v629_v21  ;;  %v506_v63 = vpop.xlane.xlu1 %505  ;;  %3083 = vrsqrt.f32 %v3940_v42  ;;  %vm1133_vm8 = vmor %vm1131_vm7, %vm1132_vm6  ;;  %vm1141_vm10 = vweird.f32 %v3931_v0  ;;  %vm643_vm13 = vweird.f32 %v3940_v42 }
 0x274   : > { %v534_v29 = vmul.f32 %v506_v63, %v3502_v44  ;;  %v1229_v16 = vmul.f32 %v3812_v37, %v1212_v1  ;;  %v626_v18 = vsel %vm625_vm2, %v3076_v54, %v622_v24  ;;  %v1127_v58 = vmul.f32 %v3080_v41, %v1126_v10 }
 0x275   : > { %v631_v46 = vsub.f32 1.5, %v630_v62  ;;  %v723_v57 = vmul.f32 %v626_v18, %v3621_v53 }
 0x276   : > { %v3082_v49 = vpop.eup %3081  ;;  %v3950_v5 = vadd.f32 1e-06, %v534_v29  ;;  %v997_v20 = vpop.xlane.xlu2 %996  ;;  %v1246_v26 = vadd.f32 %v3823_v43, %v1229_v16  ;;  %v1128_v40 = vmul.f32 0.5, %v1127_v58 }
 0x277   : > { %v632_v7 = vmul.f32 %v3078_v47, %v631_v46  ;;  %v1136_v55 = vmul.f32 %v3082_v49, %v3931_v0  ;;  %v1023_v54 = vmul.f32 %v997_v20, %v3502_v44  ;;  %v740_v14 = vmul.f32 %v3833_v31, %v723_v57 }
 0x278   : > { %3085 = vrsqrt.f32 %v3950_v5  ;;  %v1258_v25 = vpack.c.bf16 %v1246_v26, %v1245_v35  ;;  %v1129_v2 = vsub.f32 1.5, %v1128_v40  ;;  %vm1142_vm9 = vweird.f32 %v3082_v49 }
 0x279   : > { %v636_v53 = vsel %vm635_vm5, %v3078_v47, %v632_v7  ;;  %v1137_v50 = vmul.f32 %v3082_v49, %v1136_v55  ;;  %v3084_v28 = vpop.eup %3083  ;;  %v3959_v6 = vadd.f32 1e-06, %v1023_v54  ;;  %v757_v63 = vadd.f32 %v3836_v4, %v740_v14  ;;  %vm1143_vm11 = vmor %vm1141_vm10, %vm1142_vm9 }
 0x27a   : > { %v724_v61 = vmul.f32 %v636_v53, %v3633_v52  ;;  %v1130_v23 = vmul.f32 %v3080_v41, %v1129_v2  ;;  %v638_v34 = vmul.f32 %v3084_v28, %v3940_v42  ;;  %2964 = vmatmul.msk.bf16.gmra.mxu1 %vm373_vm1, %v1258_v25  ;;  %vm644_vm12 = vweird.f32 %v3084_v28 }
 0x27b   : > { %v1138_v13 = vmul.f32 0.5, %v1137_v50  ;;  %v1000_v30 = vpop.xlane.xlu1 %999  ;;  %3087 = vrsqrt.f32 %v3959_v6  ;;  %vm645_vm14 = vmor %vm643_vm13, %vm644_vm12  ;;  %vm653_vm0 = vweird.f32 %v3950_v5  ;;  %vm1151_vm4 = vweird.f32 %v3959_v6 }
 0x27c   : > { %v1024_v47 = vmul.f32 %v1000_v30, %v3502_v44  ;;  %v741_v52 = vmul.f32 %v3833_v31, %v724_v61  ;;  %v1134_v21 = vsel %vm1133_vm8, %v3080_v41, %v1130_v23  ;;  %v639_v17 = vmul.f32 %v3084_v28, %v638_v34 }
 0x27d   : > { %v1139_v1 = vsub.f32 1.5, %v1138_v13  ;;  %v1213_v33 = vmul.f32 %v1134_v21, %v3637_v3 }
 0x27e   : > { %v3086_v24 = vpop.eup %3085  ;;  %v3969_v62 = vadd.f32 1e-06, %v1024_v47  ;;  %v509_v10 = vpop.xlane.xlu2 %508  ;;  %v758_v29 = vadd.f32 %v3836_v4, %v741_v52  ;;  %v640_v18 = vmul.f32 0.5, %v639_v17 }
 0x27f   : > { %v1140_v16 = vmul.f32 %v3082_v49, %v1139_v1  ;;  %v648_v46 = vmul.f32 %v3086_v24, %v3950_v5  ;;  %v535_v41 = vmul.f32 %v509_v10, %v3502_v44  ;;  %v1230_v0 = vmul.f32 %v3812_v37, %v1213_v33 }
 0x280   : > { %3089 = vrsqrt.f32 %v3969_v62  ;;  %v770_v58 = vpack.c.bf16 %v758_v29, %v757_v63  ;;  %v641_v57 = vsub.f32 1.5, %v640_v18  ;;  %vm654_vm15 = vweird.f32 %v3086_v24 }
 0x281   : > { %v1144_v3 = vsel %vm1143_vm11, %v3082_v49, %v1140_v16  ;;  %v649_v20 = vmul.f32 %v3086_v24, %v648_v46  ;;  %v3088_v35 = vpop.eup %3087  ;;  %v3978_v7 = vadd.f32 1e-06, %v535_v41  ;;  %v1247_v13 = vadd.f32 %v3823_v43, %v1230_v0  ;;  %vm655_vm2 = vmor %vm653_vm0, %vm654_vm15 }
 0x282   : > { %v1214_v26 = vmul.f32 %v1144_v3, %v3649_v19  ;;  %2956 = vmatmul.msk.bf16.gmra.mxu0 %vm373_vm1, %v770_v58  ;;  %v642_v40 = vmul.f32 %v3084_v28, %v641_v57  ;;  %v1146_v54 = vmul.f32 %v3088_v35, %v3959_v6  ;;  %vm1152_vm3 = vweird.f32 %v3088_v35 }
 0x283   : > { %v650_v55 = vmul.f32 0.5, %v649_v20  ;;  %v512_v25 = vpop.xlane.xlu1 %511  ;;  %3091 = vrsqrt.f32 %v3978_v7  ;;  %vm1153_vm5 = vmor %vm1151_vm4, %vm1152_vm3  ;;  %vm1161_vm7 = vweird.f32 %v3969_v62  ;;  %vm663_vm10 = vweird.f32 %v3978_v7 }
 0x284   : > { %v536_v49 = vmul.f32 %v512_v25, %v3502_v44  ;;  %v1231_v19 = vmul.f32 %v3812_v37, %v1214_v26  ;;  %v646_v53 = vsel %vm645_vm14, %v3084_v28, %v642_v40  ;;  %v1147_v50 = vmul.f32 %v3088_v35, %v1146_v54 }
 0x285   : > { %v651_v2 = vsub.f32 1.5, %v650_v55  ;;  %v725_v14 = vmul.f32 %v646_v53, %v3653_v36 }
 0x286   : > { %v3090_v61 = vpop.eup %3089  ;;  %v3988_v23 = vadd.f32 1e-06, %v536_v49  ;;  %v1003_v42 = vpop.xlane.xlu2 %1002  ;;  %v1248_v34 = vadd.f32 %v3823_v43, %v1231_v19  ;;  %v1148_v47 = vmul.f32 0.5, %v1147_v50 }
 0x287   : > { %v652_v30 = vmul.f32 %v3086_v24, %v651_v2  ;;  %v1156_v52 = vmul.f32 %v3090_v61, %v3969_v62  ;;  %v1025_v28 = vmul.f32 %v1003_v42, %v3502_v44  ;;  %v742_v5 = vmul.f32 %v3833_v31, %v725_v14 }
 0x288   : > { %3093 = vrsqrt.f32 %v3988_v23  ;;  %v1259_v21 = vpack.c.bf16 %v1248_v34, %v1247_v13  ;;  %v1149_v1 = vsub.f32 1.5, %v1148_v47  ;;  %vm1162_vm6 = vweird.f32 %v3090_v61 }
 0x289   : > { %v656_v36 = vsel %vm655_vm2, %v3086_v24, %v652_v30  ;;  %v1157_v17 = vmul.f32 %v3090_v61, %v1156_v52  ;;  %v3092_v33 = vpop.eup %3091  ;;  %v3997_v63 = vadd.f32 1e-06, %v1025_v28  ;;  %v759_v0 = vadd.f32 %v3836_v4, %v742_v5  ;;  %vm1163_vm8 = vmor %vm1161_vm7, %vm1162_vm6 }
 0x28a   : > { %v726_v10 = vmul.f32 %v656_v36, %v3665_v59  ;;  %v1150_v29 = vmul.f32 %v3088_v35, %v1149_v1  ;;  %v658_v18 = vmul.f32 %v3092_v33, %v3978_v7  ;;  %2965 = vmatmul.msk.bf16.gmra.mxu1 %vm373_vm1, %v1259_v21  ;;  %vm664_vm9 = vweird.f32 %v3092_v33 }
 0x28b   : > { %v1158_v16 = vmul.f32 0.5, %v1157_v17  ;;  %v1006_v46 = vpop.xlane.xlu1 %1005  ;;  %3095 = vrsqrt.f32 %v3997_v63  ;;  %vm665_vm11 = vmor %vm663_vm10, %vm664_vm9  ;;  %vm673_vm13 = vweird.f32 %v3988_v23  ;;  %vm1171_vm0 = vweird.f32 %v3997_v63 }
 0x28c   : > { %v1026_v24 = vmul.f32 %v1006_v46, %v3502_v44  ;;  %v743_v59 = vmul.f32 %v3833_v31, %v726_v10  ;;  %v1154_v41 = vsel %vm1153_vm5, %v3088_v35, %v1150_v29  ;;  %v659_v3 = vmul.f32 %v3092_v33, %v658_v18 }
 0x28d   : > { %v1159_v58 = vsub.f32 1.5, %v1158_v16  ;;  %v1215_v6 = vmul.f32 %v1154_v41, %v3669_v56 }
 0x28e   : > { %v3094_v57 = vpop.eup %3093  ;;  %v4007_v20 = vadd.f32 1e-06, %v1026_v24  ;;  %v515_v26 = vpop.xlane.xlu2 %514  ;;  %v760_v40 = vadd.f32 %v3836_v4, %v743_v59  ;;  %v660_v54 = vmul.f32 0.5, %v659_v3 }
 0x28f   : > { %v1160_v55 = vmul.f32 %v3090_v61, %v1159_v58  ;;  %v668_v25 = vmul.f32 %v3094_v57, %v3988_v23  ;;  %v537_v35 = vmul.f32 %v515_v26, %v3502_v44  ;;  %v1232_v62 = vmul.f32 %v3812_v37, %v1215_v6 }
 0x290   : > { %3097 = vrsqrt.f32 %v4007_v20  ;;  %v771_v49 = vpack.c.bf16 %v760_v40, %v759_v0  ;;  %v661_v19 = vsub.f32 1.5, %v660_v54  ;;  %vm674_vm12 = vweird.f32 %v3094_v57 }
 0x291   : > { %v1164_v56 = vsel %vm1163_vm8, %v3090_v61, %v1160_v55  ;;  %v669_v53 = vmul.f32 %v3094_v57, %v668_v25  ;;  %v3096_v2 = vpop.eup %3095  ;;  %v4016_v14 = vadd.f32 1e-06, %v537_v35  ;;  %v1249_v17 = vadd.f32 %v3823_v43, %v1232_v62  ;;  %vm675_vm14 = vmor %vm673_vm13, %vm674_vm12 }
 0x292   : > { %v1216_v50 = vmul.f32 %v1164_v56, %v3681_v22  ;;  %2957 = vmatmul.msk.bf16.gmra.mxu0 %vm373_vm1, %v771_v49  ;;  %v662_v42 = vmul.f32 %v3092_v33, %v661_v19  ;;  %v1166_v34 = vmul.f32 %v3096_v2, %v3997_v63  ;;  %vm1172_vm15 = vweird.f32 %v3096_v2 }
 0x293   : > { %v670_v13 = vmul.f32 0.5, %v669_v53  ;;  %v518_v30 = vpop.xlane.xlu1 %517  ;;  %3099 = vrsqrt.f32 %v4016_v14  ;;  %vm1173_vm2 = vmor %vm1171_vm0, %vm1172_vm15  ;;  %vm1181_vm4 = vweird.f32 %v4007_v20  ;;  %vm683_vm7 = vweird.f32 %v4016_v14 }
 0x294   : > { %v538_v61 = vmul.f32 %v518_v30, %v3502_v44  ;;  %v1233_v22 = vmul.f32 %v3812_v37, %v1216_v50  ;;  %v666_v47 = vsel %vm665_vm11, %v3092_v33, %v662_v42  ;;  %v1167_v28 = vmul.f32 %v3096_v2, %v1166_v34 }
 0x295   : > { %v671_v52 = vsub.f32 1.5, %v670_v13  ;;  %v727_v36 = vmul.f32 %v666_v47, %v3685_v15 }
 0x296   : > { %v3098_v21 = vpop.eup %3097  ;;  %v4026_v1 = vadd.f32 1e-06, %v538_v61  ;;  %v1009_v7 = vpop.xlane.xlu2 %1008  ;;  %v1250_v10 = vadd.f32 %v3823_v43, %v1233_v22  ;;  %v1168_v29 = vmul.f32 0.5, %v1167_v28 }
 0x297   : > { %v672_v5 = vmul.f32 %v3094_v57, %v671_v52  ;;  %v1176_v16 = vmul.f32 %v3098_v21, %v4007_v20  ;;  %v1027_v33 = vmul.f32 %v1009_v7, %v3502_v44  ;;  %v744_v23 = vmul.f32 %v3833_v31, %v727_v36 }
 0x298   : > { %3101 = vrsqrt.f32 %v4026_v1  ;;  %v1260_v18 = vpack.c.bf16 %v1250_v10, %v1249_v17  ;;  %v1169_v46 = vsub.f32 1.5, %v1168_v29  ;;  %vm1182_vm3 = vweird.f32 %v3098_v21 }
 0x299   : > { %v676_v15 = vsel %vm675_vm14, %v3094_v57, %v672_v5  ;;  %v1177_v24 = vmul.f32 %v3098_v21, %v1176_v16  ;;  %v3100_v59 = vpop.eup %3099  ;;  %v4035_v58 = vadd.f32 1e-06, %v1027_v33  ;;  %v761_v56 = vadd.f32 %v3836_v4, %v744_v23  ;;  %vm1183_vm5 = vmor %vm1181_vm4, %vm1182_vm3 }
 0x29a   : > { %v728_v41 = vmul.f32 %v676_v15, %v3703_v45  ;;  %v1170_v3 = vmul.f32 %v3096_v2, %v1169_v46  ;;  %v678_v26 = vmul.f32 %v3100_v59, %v4016_v14  ;;  %2966 = vmatmul.msk.bf16.gmra.mxu1 %vm373_vm1, %v1260_v18  ;;  %vm684_vm6 = vweird.f32 %v3100_v59 }
 0x29b   : > { %v1178_v6 = vmul.f32 0.5, %v1177_v24  ;;  %v1012_v0 = vpop.xlane.xlu1 %1011  ;;  %3103 = vrsqrt.f32 %v4035_v58  ;;  %vm685_vm8 = vmor %vm683_vm7, %vm684_vm6  ;;  %vm693_vm10 = vweird.f32 %v4026_v1  ;;  %vm1191_vm13 = vweird.f32 %v4035_v58 }
 0x29c   : > { %v1028_v57 = vmul.f32 %v1012_v0, %v3502_v44  ;;  %v745_v45 = vmul.f32 %v3833_v31, %v728_v41  ;;  %v1174_v40 = vsel %vm1173_vm2, %v3096_v2, %v1170_v3  ;;  %v679_v54 = vmul.f32 %v3100_v59, %v678_v26 }
 0x29d   : > { %v1179_v55 = vsub.f32 1.5, %v1178_v6  ;;  %v1217_v63 = vmul.f32 %v1174_v40, %v3708_v51 }
 0x29e   : > { %v3102_v25 = vpop.eup %3101  ;;  %v4045_v35 = vadd.f32 1e-06, %v1028_v57  ;;  %v521_v49 = vpop.xlane.xlu2 %520  ;;  %v762_v19 = vadd.f32 %v3836_v4, %v745_v45  ;;  %v680_v50 = vmul.f32 0.5, %v679_v54 }
 0x29f   : > { %v1180_v53 = vmul.f32 %v3098_v21, %v1179_v55  ;;  %v688_v62 = vmul.f32 %v3102_v25, %v4026_v1  ;;  %v539_v2 = vmul.f32 %v521_v49, %v3502_v44  ;;  %v1234_v20 = vmul.f32 %v3812_v37, %v1217_v63 }
 0x2a0   : > { %3105 = vrsqrt.f32 %v4045_v35  ;;  %v772_v42 = vpack.c.bf16 %v762_v19, %v761_v56  ;;  %v681_v13 = vsub.f32 1.5, %v680_v50  ;;  %vm694_vm9 = vweird.f32 %v3102_v25 }
 0x2a1   : > { %v1184_v51 = vsel %vm1183_vm5, %v3098_v21, %v1180_v53  ;;  %v689_v34 = vmul.f32 %v3102_v25, %v688_v62  ;;  %v3104_v30 = vpop.eup %3103  ;;  %v4054_v22 = vadd.f32 1e-06, %v539_v2  ;;  %v1251_v14 = vadd.f32 %v3823_v43, %v1234_v20  ;;  %vm695_vm11 = vmor %vm693_vm10, %vm694_vm9 }
 0x2a2   : > { %v1218_v61 = vmul.f32 %v1184_v51, %v3719_v12  ;;  %2958 = vmatmul.msk.bf16.gmra.mxu0 %vm373_vm1, %v772_v42  ;;  %v682_v47 = vmul.f32 %v3100_v59, %v681_v13  ;;  %v1186_v28 = vmul.f32 %v3104_v30, %v4035_v58  ;;  %vm1192_vm12 = vweird.f32 %v3104_v30 }
 0x2a3   : > { %v690_v52 = vmul.f32 0.5, %v689_v34  ;;  %v524_v36 = vpop.xlane.xlu1 %523  ;;  %3107 = vrsqrt.f32 %v4054_v22  ;;  %vm1193_vm14 = vmor %vm1191_vm13, %vm1192_vm12  ;;  %vm1201_vm0 = vweird.f32 %v4045_v35  ;;  %vm703_vm4 = vweird.f32 %v4054_v22 }
 0x2a4   : > { %v540_v21 = vmul.f32 %v524_v36, %v3502_v44  ;;  %v1235_v12 = vmul.f32 %v3812_v37, %v1218_v61  ;;  %v686_v7 = vsel %vm685_vm8, %v3100_v59, %v682_v47  ;;  %v1187_v10 = vmul.f32 %v3104_v30, %v1186_v28 }
 0x2a5   : > { %v691_v17 = vsub.f32 1.5, %v690_v52  ;;  %v729_v29 = vmul.f32 %v686_v7, %v3727_v32  ;;  %vm1910_vm9 = vcmask 130048  }
 0x2a6   : > { %v3106_v5 = vpop.eup %3105  ;;  %v556_v16 = vadd.f32 1e-06, %v540_v21  ;;  %v1252_v33 = vadd.f32 %v3823_v43, %v1235_v12  ;;  %v1188_v15 = vmul.f32 0.5, %v1187_v10  ;;  %v4096_v21 = vld [vmem:[%s4664_s2] sm:$0xff]  ;;  %v4101_v12 = vpop.f32.mrf.mxu3 }
 0x2a7   : > { %v692_v18 = vmul.f32 %v3102_v25, %v691_v17  ;;  %v1196_v44 = vmul.f32 %v3106_v5, %v4045_v35  ;;  %v746_v3 = vmul.f32 %v3833_v31, %v729_v29  ;;  %vm1202_vm15 = vweird.f32 %v3106_v5 }
 0x2a8   : > { %3109 = vrsqrt.f32 %v556_v16  ;;  %v1261_v46 = vpack.c.bf16 %v1252_v33, %v1251_v14  ;;  %v1189_v59 = vsub.f32 1.5, %v1188_v15  ;;  %vm1203_vm2 = vmor %vm1201_vm0, %vm1202_vm15  ;;  %vm713_vm7 = vweird.f32 %v556_v16 }
 0x2a9   : > { %v696_v24 = vsel %vm695_vm11, %v3102_v25, %v692_v18  ;;  %v1197_v41 = vmul.f32 %v3106_v5, %v1196_v44  ;;  %v3108_v23 = vpop.eup %3107  ;;  %v763_v54 = vadd.f32 %v3836_v4, %v746_v3  ;;  %v4105_v17 = vperm.slane %v4096_v21, 4 }
 0x2aa   : > { %v730_v32 = vmul.f32 %v696_v24, %v3739_v60  ;;  %v1190_v6 = vmul.f32 %v3104_v30, %v1189_v59  ;;  %v698_v1 = vmul.f32 %v3108_v23, %v4054_v22  ;;  %2967 = vmatmul.msk.bf16.gmra.mxu1 %vm373_vm1, %v1261_v46  ;;  %vm704_vm3 = vweird.f32 %v3108_v23 }
 0x2ab   : > { %v1198_v26 = vmul.f32 0.5, %v1197_v41  ;;  %vm705_vm5 = vmor %vm703_vm4, %vm704_vm3 }
 0x2ac   : > { %v747_v0 = vmul.f32 %v3833_v31, %v730_v32  ;;  %v1194_v57 = vsel %vm1193_vm14, %v3104_v30, %v1190_v6  ;;  %v699_v40 = vmul.f32 %v3108_v23, %v698_v1 }
 0x2ad   : > { %v1199_v45 = vsub.f32 1.5, %v1198_v26  ;;  %v1219_v60 = vmul.f32 %v1194_v57, %v3744_v8 }
 0x2ae   : > { %v3110_v55 = vpop.eup %3109  ;;  %v764_v25 = vadd.f32 %v3836_v4, %v747_v0  ;;  %v700_v63 = vmul.f32 0.5, %v699_v40  ;;  %v4109_v14 = vpop.f32.mrf.mxu3 }
 0x2af   : > { %v1200_v58 = vmul.f32 %v3106_v5, %v1199_v45  ;;  %v708_v49 = vmul.f32 %v3110_v55, %v556_v16  ;;  %v1236_v8 = vmul.f32 %v3812_v37, %v1219_v60  ;;  %vm714_vm6 = vweird.f32 %v3110_v55 }
 0x2b0   : > { %v773_v56 = vpack.c.bf16 %v764_v25, %v763_v54  ;;  %v701_v53 = vsub.f32 1.5, %v700_v63  ;;  %vm715_vm8 = vmor %vm713_vm7, %vm714_vm6 }
 0x2b1   : > { %v1204_v19 = vsel %vm1203_vm2, %v3106_v5, %v1200_v58  ;;  %v709_v50 = vmul.f32 %v3110_v55, %v708_v49  ;;  %v1253_v30 = vadd.f32 %v3823_v43, %v1236_v8 }
 0x2b2   : > { %v1220_v62 = vmul.f32 %v1204_v19, %v3755_v11  ;;  %2959 = vmatmul.msk.bf16.gmra.mxu0 %vm373_vm1, %v773_v56  ;;  %v702_v2 = vmul.f32 %v3108_v23, %v701_v53 }
 0x2b3   : > { %v710_v42 = vmul.f32 0.5, %v709_v50 }
 0x2b4   : > { %v1237_v35 = vmul.f32 %v3812_v37, %v1220_v62  ;;  %v706_v51 = vsel %vm705_vm5, %v3108_v23, %v702_v2 }
 0x2b5   : > { %v711_v13 = vsub.f32 1.5, %v710_v42  ;;  %v731_v34 = vmul.f32 %v706_v51, %v3763_v27 }
 0x2b6   : > { %v1254_v11 = vadd.f32 %v3823_v43, %v1237_v35  ;;  %v4119_v0 = vpop.f32.mrf.mxu3 }
 0x2b7   : > { %v712_v61 = vmul.f32 %v3110_v55, %v711_v13  ;;  %v748_v52 = vmul.f32 %v3833_v31, %v731_v34 }
 0x2b8   : > { %v1262_v20 = vpack.c.bf16 %v1254_v11, %v1253_v30 }
 0x2b9   : > { %v716_v47 = vsel %vm715_vm8, %v3110_v55, %v712_v61  ;;  %v765_v28 = vadd.f32 %v3836_v4, %v748_v52 }
 0x2ba   : > { %v732_v22 = vmul.f32 %v716_v47, %v3778_v39  ;;  %2968 = vmatmul.msk.bf16.gmra.mxu1 %vm373_vm1, %v1262_v20  ;;  %v4099_v39 = vperm.slane %v4096_v21, 5 }
 0x2bc   : > { %v749_v37 = vmul.f32 %v3833_v31, %v732_v22 }
 0x2be   : > { %v766_v27 = vadd.f32 %v3836_v4, %v749_v37  ;;  %v4128_v53 = vpop.f32.mrf.mxu3 }
 0x2c0   : > { %v774_v36 = vpack.c.bf16 %v766_v27, %v765_v28 }
 0x2c2   : > { %2960 = vmatmul.msk.bf16.gmra.mxu0 %vm373_vm1, %v774_v36 }
 0x2c6   : > { %v4138_v11 = vpop.f32.mrf.mxu3 }
 0x2c7   : > { %v1300_v43 = vpop.f32.mrf.mxu1 }
 0x2c8   : > { %v1301_v31 = vadd.f32 %v1300_v43, %v4099_v39 }
 0x2ca   : > { %v1340_v10 = vpack.c.bf16 %v1301_v31, %v1301_v31 }
 0x2cc   : > { %v1565_v33 = vunpack.c.l.b16 %v1340_v10 }
 0x2ce   : > { %v4146_v10 = vpop.f32.mrf.mxu3 }
 0x2cf   : > { %v813_v7 = vpop.f32.mrf.mxu0  ;;  %v1302_v4 = vpop.f32.mrf.mxu1 }
 0x2d0   : > { %v1303_v5 = vadd.f32 %v1302_v4, %v4099_v39  ;;  %v814_v29 = vadd.f32 %v813_v7, %v4105_v17 }
 0x2d2   : > { %v1341_v16 = vpack.c.bf16 %v1303_v5, %v1303_v5  ;;  %v853_v44 = vpack.c.bf16 %v814_v29, %v814_v29 }
 0x2d4   : > { %v1566_v18 = vunpack.c.l.b16 %v1341_v16  ;;  %v1560_v32 = vunpack.c.l.b16 %v853_v44 }
 0x2d6   : > { %v4112_v24 = vpack.c.b16 %v1566_v18, %v1565_v33 }
 0x2d7   : > { %v815_v15 = vpop.f32.mrf.mxu0  ;;  %v1305_v59 = vpop.f32.mrf.mxu1 }
 0x2d8   : > { %v816_v46 = vadd.f32 %v815_v15, %v4105_v17  ;;  %v1572_v23 = vsel %vm373_vm1, %v4112_v24, 0  ;;  %v1306_v26 = vadd.f32 %v1305_v59, %v4099_v39 }
 0x2d9   : > { %1581 = vmatpush.bf16.xpose.msrb.mxu0 %v1572_v23 }
 0x2da   : > { %v854_v41 = vpack.c.bf16 %v816_v46, %v816_v46  ;;  %v1342_v45 = vpack.c.bf16 %v1306_v26, %v1306_v26 }
 0x2dc   : > { %v1561_v3 = vunpack.c.l.b16 %v854_v41  ;;  %v1595_v54 = vunpack.c.l.b16 %v1342_v45 }
 0x2de   : > { %v4116_v6 = vpack.c.b16 %v1561_v3, %v1560_v32  ;;  %v4155_v32 = vpop.f32.mrf.mxu3 }
 0x2df   : > { %v818_v1 = vpop.f32.mrf.mxu0  ;;  %v1307_v57 = vpop.f32.mrf.mxu1 }
 0x2e0   : > { %v1308_v40 = vadd.f32 %v1307_v57, %v4099_v39  ;;  %2985 = vmatmul.msk.bf16.vlgmr.msrb.gmra.mxu0 %vm373_vm1, %v4116_v6  ;;  %v819_v55 = vadd.f32 %v818_v1, %v4105_v17 }
 0x2e2   : > { %v1343_v60 = vpack.c.bf16 %v1308_v40, %v1308_v40  ;;  %v855_v63 = vpack.c.bf16 %v819_v55, %v819_v55 }
 0x2e4   : > { %v1596_v25 = vunpack.c.l.b16 %v1343_v60  ;;  %v1590_v8 = vunpack.c.l.b16 %v855_v63 }
 0x2e6   : > { %v4126_v56 = vpack.c.b16 %v1596_v25, %v1595_v54 }
 0x2e7   : > { %v820_v58 = vpop.f32.mrf.mxu0  ;;  %v1310_v19 = vpop.f32.mrf.mxu1 }
 0x2e8   : > { %v821_v49 = vadd.f32 %v820_v58, %v4105_v17  ;;  %v1602_v62 = vsel %vm373_vm1, %v4126_v56, 0  ;;  %v1311_v35 = vadd.f32 %v1310_v19, %v4099_v39 }
 0x2e9   : > { %1611 = vmatpush.bf16.xpose.msrb.mxu1 %v1602_v62 }
 0x2ea   : > { %v856_v50 = vpack.c.bf16 %v821_v49, %v821_v49  ;;  %v1344_v34 = vpack.c.bf16 %v1311_v35, %v1311_v35  ;;  %v4165_v49 = vpop.f32.mrf.mxu3 }
 0x2ec   : > { %v1591_v2 = vunpack.c.l.b16 %v856_v50  ;;  %v1625_v47 = vunpack.c.l.b16 %v1344_v34 }
 0x2ee   : > { %v4132_v42 = vpack.c.b16 %v1591_v2, %v1590_v8 }
 0x2ef   : > { %v823_v51 = vpop.f32.mrf.mxu0  ;;  %v1312_v13 = vpop.f32.mrf.mxu1 }
 0x2f0   : > { %v1313_v30 = vadd.f32 %v1312_v13, %v4099_v39  ;;  %2986 = vmatmul.msk.bf16.vlgmr.msrb.gmra.mxu1 %vm373_vm1, %v4132_v42  ;;  %v824_v61 = vadd.f32 %v823_v51, %v4105_v17 }
 0x2f2   : > { %v1345_v20 = vpack.c.bf16 %v1313_v30, %v1313_v30  ;;  %v857_v37 = vpack.c.bf16 %v824_v61, %v824_v61 }
 0x2f4   : > { %v1626_v22 = vunpack.c.l.b16 %v1345_v20  ;;  %v1620_v7 = vunpack.c.l.b16 %v857_v37 }
 0x2f6   : > { %v4142_v27 = vpack.c.b16 %v1626_v22, %v1625_v47  ;;  %v1569_v22 = vsel %vm373_vm1, %v4116_v6, 0 }
 0x2f7   : > { %v825_v52 = vpop.f32.mrf.mxu0  ;;  %v1315_v36 = vpop.f32.mrf.mxu1 }
 0x2f8   : > { %v826_v28 = vadd.f32 %v825_v52, %v4105_v17  ;;  %v1632_v31 = vsel %vm373_vm1, %v4142_v27, 0  ;;  %v1316_v29 = vadd.f32 %v1315_v36, %v4099_v39  ;;  %v1522_v52 = vpop.f32.mrf.mxu3 }
 0x2f9   : > { %1641 = vmatpush.bf16.xpose.msrb.mxu2 %v1632_v31 }
 0x2fa   : > { %v858_v43 = vpack.c.bf16 %v826_v28, %v826_v28  ;;  %v1346_v18 = vpack.c.bf16 %v1316_v29, %v1316_v29 }
 0x2fc   : > { %v1621_v4 = vunpack.c.l.b16 %v858_v43  ;;  %v1655_v59 = vunpack.c.l.b16 %v1346_v18 }
 0x2fe   : > { %v4148_v5 = vpack.c.b16 %v1621_v4, %v1620_v7 }
 0x2ff   : > { %v828_v16 = vpop.f32.mrf.mxu0  ;;  %v1317_v33 = vpop.f32.mrf.mxu1 }
 0x300   : > { %v1318_v15 = vadd.f32 %v1317_v33, %v4099_v39  ;;  %2987 = vmatmul.msk.bf16.vlgmr.msrb.gmra.mxu2 %vm373_vm1, %v4148_v5  ;;  %v829_v44 = vadd.f32 %v828_v16, %v4105_v17  ;;  %v4183_v33 = vperm.slane %v4096_v21, 7 }
 0x302   : > { %v1347_v46 = vpack.c.bf16 %v1318_v15, %v1318_v15  ;;  %v859_v3 = vpack.c.bf16 %v829_v44, %v829_v44  ;;  %v1505_v15 = vadd.f32 %v4109_v14, %v4183_v33  ;;  %v1524_v44 = vpop.f32.mrf.mxu3  ;;  %v1599_v14 = vsel %vm373_vm1, %v4132_v42, 0 }
 0x304   : > { %v1656_v41 = vunpack.c.l.b16 %v1347_v46  ;;  %v1650_v55 = vunpack.c.l.b16 %v859_v3 }
 0x306   : > { %v4158_v1 = vpack.c.b16 %v1656_v41, %v1655_v59  ;;  %v1503_v41 = vadd.f32 %v4101_v12, %v4183_v33 }
 0x307   : > { %v830_v23 = vpop.f32.mrf.mxu0  ;;  %v1320_v57 = vpop.f32.mrf.mxu1 }
 0x308   : > { %v831_v26 = vadd.f32 %v830_v23, %v4105_v17  ;;  %v1662_v40 = vsel %vm373_vm1, %v4158_v1, 0  ;;  %v1321_v25 = vadd.f32 %v1320_v57, %v4099_v39  ;;  %v1543_v57 = vpack.c.bf16 %v1505_v15, %v1505_v15 }
 0x309   : > { %1671 = vmatpush.bf16.xpose.msrb.mxu3 %v1662_v40 }
 0x30a   : > { %v860_v45 = vpack.c.bf16 %v831_v26, %v831_v26  ;;  %v1348_v19 = vpack.c.bf16 %v1321_v25, %v1321_v25  ;;  %v2303_v12 = vunpack.c.l.b16 %v1543_v57 }
 0x30c   : > { %v1651_v60 = vunpack.c.l.b16 %v860_v45  ;;  %v1685_v2 = vunpack.c.l.b16 %v1348_v19 }
 0x30e   : > { %v4162_v54 = vpack.c.b16 %v1651_v60, %v1650_v55  ;;  %v1542_v60 = vpack.c.bf16 %v1503_v41, %v1503_v41 }
 0x30f   : > { %v833_v58 = vpop.f32.mrf.mxu0  ;;  %v1322_v63 = vpop.f32.mrf.mxu1 }
 0x310   : > { %v1323_v50 = vadd.f32 %v1322_v63, %v4099_v39  ;;  %2988 = vmatmul.msk.bf16.vlgmr.msrb.gmra.mxu3 %vm373_vm1, %v4162_v54  ;;  %v834_v62 = vadd.f32 %v833_v58, %v4105_v17 }
 0x312   : > { %v1349_v8 = vpack.c.bf16 %v1323_v50, %v1323_v50  ;;  %v861_v13 = vpack.c.bf16 %v834_v62, %v834_v62  ;;  %v2302_v50 = vunpack.c.l.b16 %v1542_v60 }
 0x314   : > { %v1686_v35 = vunpack.c.l.b16 %v1349_v8  ;;  %v1680_v37 = vunpack.c.l.b16 %v861_v13  ;;  %v4198_v8 = vpop.f32.mrf.mxu3 }
 0x316   : > { %v4171_v34 = vpack.c.b16 %v1686_v35, %v1685_v2  ;;  %v2304_v35 = vpack.c.b16 %v2303_v12, %v2302_v50 }
 0x317   : > { %v835_v51 = vpop.f32.mrf.mxu0  ;;  %v1325_v61 = vpop.f32.mrf.mxu1 }
 0x318   : > { %v836_v30 = vadd.f32 %v835_v51, %v4105_v17  ;;  %v1692_v47 = vsel %vm373_vm1, %v4171_v34, 0  ;;  %v1326_v43 = vadd.f32 %v1325_v61, %v4099_v39 }
 0x319   : > { %1701 = vmatpush.bf16.xpose.msra.mxu0 %v1692_v47  ;;  %v1525_v47 = vadd.f32 %v1524_v44, %v4183_v33 }
 0x31a   : > { %v862_v20 = vpack.c.bf16 %v836_v30, %v836_v30  ;;  %v1350_v29 = vpack.c.bf16 %v1326_v43, %v1326_v43  ;;  %v1523_v43 = vadd.f32 %v1522_v52, %v4183_v33 }
 0x31c   : > { %v1681_v28 = vunpack.c.l.b16 %v862_v20  ;;  %v1715_v46 = vunpack.c.l.b16 %v1350_v29  ;;  %v1510_v20 = vadd.f32 %v4128_v53, %v4183_v33  ;;  %v1550_v44 = vpack.c.bf16 %v1523_v43, %v1523_v43 }
 0x31e   : > { %v1682_v36 = vpack.c.b16 %v1681_v28, %v1680_v37  ;;  %v1508_v28 = vadd.f32 %v4119_v0, %v4183_v33  ;;  %v1629_v0 = vsel %vm373_vm1, %v4148_v5, 0 }
 0x31f   : > { %v838_v31 = vpop.f32.mrf.mxu0  ;;  %v1327_v4 = vpop.f32.mrf.mxu1 }
 0x320   : > { %v1689_v7 = vsel %vm373_vm1, %v1682_v36, 0  ;;  %v1328_v16 = vadd.f32 %v1327_v4, %v4099_v39  ;;  %2989 = vmatmul.msk.bf16.vlgmr.msra.gmra.mxu0 %vm373_vm1, %v1682_v36  ;;  %v839_v6 = vadd.f32 %v838_v31, %v4105_v17  ;;  %v1545_v4 = vpack.c.bf16 %v1510_v20, %v1510_v20 }
 0x321   : > { %1805 = vmatpush.bf16.xpose.msrb.mxu0 %v1569_v22  ;;  %v1544_v15 = vpack.c.bf16 %v1508_v28, %v1508_v28 }
 0x322   : > { %v1351_v18 = vpack.c.bf16 %v1328_v16, %v1328_v16  ;;  %v863_v3 = vpack.c.bf16 %v839_v6, %v839_v6  ;;  %v1551_v16 = vpack.c.bf16 %v1525_v47, %v1525_v47  ;;  %v1529_v6 = vpop.f32.mrf.mxu3 }
 0x324   : > { %v1716_v59 = vunpack.c.l.b16 %v1351_v18  ;;  %v1710_v25 = vunpack.c.l.b16 %v863_v3  ;;  %v2415_v41 = vunpack.c.l.b16 %v1551_v16 }
 0x326   : > { %v4190_v26 = vpack.c.b16 %v1716_v59, %v1715_v46  ;;  %v2331_v59 = vunpack.c.l.b16 %v1545_v4 }
 0x327   : > { %v840_v23 = vpop.f32.mrf.mxu0  ;;  %v1330_v45 = vpop.f32.mrf.mxu1 }
 0x328   : > { %v841_v21 = vadd.f32 %v840_v23, %v4105_v17  ;;  %v1722_v55 = vsel %vm373_vm1, %v4190_v26, 0  ;;  %v1331_v19 = vadd.f32 %v1330_v45, %v4099_v39  ;;  %v2414_v45 = vunpack.c.l.b16 %v1550_v44 }
 0x329   : > { %1861 = vmatpush.bf16.xpose.msra.mxu0 %v1689_v7  ;;  %1731 = vmatpush.bf16.xpose.msra.mxu1 %v1722_v55 }
 0x32a   : > { %v864_v40 = vpack.c.bf16 %v841_v21, %v841_v21  ;;  %v1352_v13 = vpack.c.bf16 %v1331_v19, %v1331_v19  ;;  %v2330_v21 = vunpack.c.l.b16 %v1544_v15  ;;  %v1515_v19 = vadd.f32 %v4146_v10, %v4183_v33 }
 0x32c   : > { %v1711_v58 = vunpack.c.l.b16 %v864_v40  ;;  %v1745_v22 = vunpack.c.l.b16 %v1352_v13  ;;  %v2332_v40 = vpack.c.b16 %v2331_v59, %v2330_v21 }
 0x32e   : > { %v1712_v63 = vpack.c.b16 %v1711_v58, %v1710_v25  ;;  %v1532_v58 = vpop.f32.mrf.mxu3 }
 0x32f   : > { %v843_v62 = vpop.f32.mrf.mxu0  ;;  %v1332_v51 = vpop.f32.mrf.mxu1 }
 0x330   : > { %v1719_v2 = vsel %vm373_vm1, %v1712_v63, 0  ;;  %v1333_v30 = vadd.f32 %v1332_v51, %v4099_v39  ;;  %2990 = vmatmul.msk.bf16.vlgmr.msra.gmra.mxu1 %vm373_vm1, %v1712_v63  ;;  %2993 = vmatmul.msk.bf16.vlgmr.msrb.gmra.mxu0 %vm373_vm1, %v4112_v24  ;;  %v844_v42 = vadd.f32 %v843_v62, %v4105_v17 }
 0x331   : > { %1819 = vmatpush.bf16.xpose.msrb.mxu1 %v1599_v14  ;;  %2316 = vmatpush.bf16.msrb.mxu0 %v2304_v35  ;;  %v2416_v14 = vpack.c.b16 %v2415_v41, %v2414_v45 }
 0x332   : > { %v1353_v61 = vpack.c.bf16 %v1333_v30, %v1333_v30  ;;  %v865_v31 = vpack.c.bf16 %v844_v42, %v844_v42  ;;  %v1547_v30 = vpack.c.bf16 %v1515_v19, %v1515_v19 }
 0x334   : > { %v1746_v37 = vunpack.c.l.b16 %v1353_v61  ;;  %v1740_v52 = vunpack.c.l.b16 %v865_v31 }
 0x336   : > { %v4212_v24 = vpack.c.b16 %v1746_v37, %v1745_v22 }
 0x337   : > { %v845_v36 = vpop.f32.mrf.mxu0  ;;  %v1335_v29 = vpop.f32.mrf.mxu1 }
 0x338   : > { %v846_v7 = vadd.f32 %v845_v36, %v4105_v17  ;;  %v1752_v18 = vsel %vm373_vm1, %v4212_v24, 0  ;;  %v1336_v3 = vadd.f32 %v1335_v29, %v4099_v39  ;;  %v1534_v36 = vpop.f32.mrf.mxu3 }
 0x339   : > { %1875 = vmatpush.bf16.xpose.msra.mxu1 %v1719_v2  ;;  %1761 = vmatpush.bf16.xpose.msra.mxu2 %v1752_v18  ;;  %v1535_v16 = vadd.f32 %v1534_v36, %v4183_v33 }
 0x33a   : > { %v866_v53 = vpack.c.bf16 %v846_v7, %v846_v7  ;;  %v1354_v25 = vpack.c.bf16 %v1336_v3, %v1336_v3 }
 0x33c   : > { %v1741_v46 = vunpack.c.l.b16 %v866_v53  ;;  %v1775_v50 = vunpack.c.l.b16 %v1354_v25  ;;  %v1533_v53 = vadd.f32 %v1532_v58, %v4183_v33 }
 0x33e   : > { %v1742_v23 = vpack.c.b16 %v1741_v46, %v1740_v52  ;;  %v1554_v44 = vpack.c.bf16 %v1533_v53, %v1533_v53 }
 0x33f   : > { %v848_v57 = vpop.f32.mrf.mxu0  ;;  %v1337_v55 = vpop.f32.mrf.mxu1 }
 0x340   : > { %v1749_v60 = vsel %vm373_vm1, %v1742_v23, 0  ;;  %v1338_v5 = vadd.f32 %v1337_v55, %v4099_v39  ;;  %2991 = vmatmul.msk.bf16.vlgmr.msra.gmra.mxu2 %vm373_vm1, %v1742_v23  ;;  %2994 = vmatmul.msk.bf16.vlgmr.msrb.gmra.mxu1 %vm373_vm1, %v4126_v56  ;;  %v849_v12 = vadd.f32 %v848_v57, %v4105_v17  ;;  %v1530_v39 = vadd.f32 %v1529_v6, %v4183_v33  ;;  %v1537_v18 = vpop.f32.mrf.mxu3 }
 0x341   : > { %1833 = vmatpush.bf16.xpose.msrb.mxu2 %v1629_v0  ;;  %2997 = vmatmul.msk.bf16.vlgmr.msra.gmra.mxu0 %vm373_vm1, %v4171_v34  ;;  %v1513_v56 = vadd.f32 %v4138_v11, %v4183_v33  ;;  %v1528_v34 = vadd.f32 %v4198_v8, %v4183_v33  ;;  %v1659_v11 = vsel %vm373_vm1, %v4162_v54, 0  ;;  %v2359_v8 = vunpack.c.l.b16 %v1547_v30 }
 0x342   : > { %2344 = vmatpush.bf16.msrb.mxu1 %v2332_v40  ;;  %v1355_v63 = vpack.c.bf16 %v1338_v5, %v1338_v5  ;;  %2428 = vmatpush.bf16.msra.mxu0 %v2416_v14  ;;  %v867_v35 = vpack.c.bf16 %v849_v12, %v849_v12  ;;  %v1553_v42 = vpack.c.bf16 %v1530_v39, %v1530_v39  ;;  %v2470_v59 = vunpack.c.l.b16 %v1554_v44 }
 0x343   : > { %v1546_v20 = vpack.c.bf16 %v1513_v56, %v1513_v56  ;;  %v1552_v47 = vpack.c.bf16 %v1528_v34, %v1528_v34  ;;  %v1520_v54 = vadd.f32 %v4165_v49, %v4183_v33  ;;  %v1518_v6 = vadd.f32 %v4155_v32, %v4183_v33 }
 0x344   : > { %v1776_v62 = vunpack.c.l.b16 %v1355_v63  ;;  %v1770_v22 = vunpack.c.l.b16 %v867_v35  ;;  %v2443_v28 = vunpack.c.l.b16 %v1553_v42  ;;  %v1555_v0 = vpack.c.bf16 %v1535_v16, %v1535_v16 }
 0x345   : > { %v2442_v31 = vunpack.c.l.b16 %v1552_v47  ;;  %v1549_v15 = vpack.c.bf16 %v1520_v54, %v1520_v54  ;;  %v1538_v57 = vadd.f32 %v1537_v18, %v4183_v33 }
 0x346   : > { %v4235_v51 = vpack.c.b16 %v1776_v62, %v1775_v50 }
 0x347   : > { %v850_v2 = vpop.f32.mrf.mxu0  ;;  %v2444_v29 = vpack.c.b16 %v2443_v28, %v2442_v31  ;;  %v2387_v52 = vunpack.c.l.b16 %v1549_v15 }
 0x348   : > { %v851_v13 = vadd.f32 %v850_v2, %v4105_v17  ;;  %v1782_v10 = vsel %vm373_vm1, %v4235_v51, 0  ;;  %v2358_v17 = vunpack.c.l.b16 %v1546_v20  ;;  %v1539_v32 = vpop.f32.mrf.mxu3 }
 0x349   : > { %1889 = vmatpush.bf16.xpose.msra.mxu2 %v1749_v60  ;;  %1791 = vmatpush.bf16.xpose.msra.mxu3 %v1782_v10  ;;  %v1540_v21 = vadd.f32 %v1539_v32, %v4183_v33  ;;  %v1556_v60 = vpack.c.bf16 %v1538_v57, %v1538_v57  ;;  %v4274_v33 = vpop.f32.mrf.mxu2 }
 0x34a   : > { %v868_v61 = vpack.c.bf16 %v851_v13, %v851_v13  ;;  %v2360_v7 = vpack.c.b16 %v2359_v8, %v2358_v17 }
 0x34b   : > { %v1557_v55 = vpack.c.bf16 %v1540_v21, %v1540_v21  ;;  %v2498_v25 = vunpack.c.l.b16 %v1556_v60 }
 0x34c   : > { %v1771_v37 = vunpack.c.l.b16 %v868_v61 }
 0x34d   : > { %v2499_v14 = vunpack.c.l.b16 %v1557_v55 }
 0x34e   : > { %v1772_v43 = vpack.c.b16 %v1771_v37, %v1770_v22 }
 0x34f   : > { %v2500_v5 = vpack.c.b16 %v2499_v14, %v2498_v25 }
 0x350   : > { %v1779_v4 = vsel %vm373_vm1, %v1772_v43, 0  ;;  %2992 = vmatmul.msk.bf16.vlgmr.msra.gmra.mxu3 %vm373_vm1, %v1772_v43  ;;  %2995 = vmatmul.msk.bf16.vlgmr.msrb.gmra.mxu2 %vm373_vm1, %v4142_v27  ;;  %v1548_v27 = vpack.c.bf16 %v1518_v6, %v1518_v6 }
 0x351   : > { %1847 = vmatpush.bf16.xpose.msrb.mxu3 %v1659_v11  ;;  %2998 = vmatmul.msk.bf16.vlgmr.msra.gmra.mxu1 %vm373_vm1, %v4190_v26  ;;  %v2471_v26 = vunpack.c.l.b16 %v1555_v0  ;;  %v4280_v63 = vpop.f32.mrf.mxu2 }
 0x352   : > { %2372 = vmatpush.bf16.msrb.mxu2 %v2360_v7  ;;  %2456 = vmatpush.bf16.msra.mxu1 %v2444_v29  ;;  %v2386_v46 = vunpack.c.l.b16 %v1548_v27 }
 0x353   : > { %v2472_v3 = vpack.c.b16 %v2471_v26, %v2470_v59 }
 0x354   : > { %v2388_v23 = vpack.c.b16 %v2387_v52, %v2386_v46 }
 0x359   : > { %1903 = vmatpush.bf16.xpose.msra.mxu3 %v1779_v4 }
 0x35d   : > { %v4254_v41 = vpop.f32.mrf.mxu0 }
 0x35e   : > { %v1911_v49 = vsel %vm1910_vm9, %v4254_v41, -inf }
 0x35f   : > { %1912 = vmax.xlane.f32.xlu2 %v1911_v49 }
 0x360   : > { %2996 = vmatmul.msk.bf16.vlgmr.msrb.gmra.mxu3 %vm373_vm1, %v4158_v1  ;;  %2999 = vmatmul.msk.bf16.vlgmr.msra.gmra.mxu2 %vm373_vm1, %v4212_v24 }
 0x361   : > { %2400 = vmatpush.bf16.msrb.mxu3 %v2388_v23  ;;  %2484 = vmatpush.bf16.msra.mxu2 %v2472_v3 }
 0x365   : > { %v4264_v45 = vpop.f32.mrf.mxu0 }
 0x366   : > { %v1914_v40 = vsel %vm1910_vm9, %v4264_v45, -inf }
 0x367   : > { %1915 = vmax.xlane.f32.xlu1 %v1914_v40 }
 0x36d   : > { %v4268_v1 = vpop.f32.mrf.mxu1 }
 0x36e   : > { %v1917_v24 = vsel %vm1910_vm9, %v4268_v1, -inf }
 0x36f   : > { %1918 = vmax.xlane.f32.xlu2 %v1917_v24 }
 0x370   : > { %3000 = vmatmul.msk.bf16.vlgmr.msra.gmra.mxu3 %vm373_vm1, %v4235_v51 }
 0x371   : > { %2512 = vmatpush.bf16.msra.mxu3 %v2500_v5 }
 0x375   : > { %v4276_v58 = vpop.f32.mrf.mxu1 }
 0x376   : > { %v1920_v12 = vsel %vm1910_vm9, %v4276_v58, -inf }
 0x377   : > { %1921 = vmax.xlane.f32.xlu1 %v1920_v12 }
 0x383   : > { %v4282_v19 = vpop.f32.mrf.mxu2 }
 0x384   : > { %v1923_v39 = vsel %vm1910_vm9, %v4282_v19, -inf }
 0x385   : > { %1924 = vmax.xlane.f32.xlu2 %v1923_v39 }
 0x38b   : > { %v4286_v50 = vpop.f32.mrf.mxu2 }
 0x38c   : > { %v1926_v62 = vsel %vm1910_vm9, %v4286_v50, -inf }
 0x38d   : > { %1927 = vmax.xlane.f32.xlu1 %v1926_v62 }
 0x393   : > { %v4290_v56 = vpop.f32.mrf.mxu3 }
 0x394   : > { %v1929_v2 = vsel %vm1910_vm9, %v4290_v56, -inf }
 0x395   : > { %1930 = vmax.xlane.f32.xlu2 %v1929_v2 }
 0x39b   : > { %v4294_v34 = vpop.f32.mrf.mxu3 }
 0x39c   : > { %v1932_v35 = vsel %vm1910_vm9, %v4294_v34, -inf }
 0x39d   : > { %1933 = vmax.xlane.f32.xlu1 %v1932_v35  ;;  %v4298_v51 = vpop.f32.mrf.mxu0 }
 0x39e   : > { %v1935_v13 = vsel %vm1910_vm9, %v4298_v51, -inf }
 0x39f   : > { %1936 = vmax.xlane.f32.xlu2 %v1935_v13 }
 0x3a5   : > { %v4302_v30 = vpop.f32.mrf.mxu0 }
 0x3a6   : > { %v1938_v42 = vsel %vm1910_vm9, %v4302_v30, -inf }
 0x3a7   : > { %1939 = vmax.xlane.f32.xlu1 %v1938_v42 }
 0x3ad   : > { %v4306_v61 = vpop.f32.mrf.mxu1  ;;  %v4308_v10 = vpop.f32.mrf.mxu0 }
 0x3ae   : > { %v1941_v20 = vsel %vm1910_vm9, %v4306_v61, -inf  ;;  %v2103_v22 = vsel %vm1910_vm9, %v4308_v10, -inf }
 0x3af   : > { %1942 = vmax.xlane.f32.xlu2 %v1941_v20 }
 0x3b5   : > { %v4312_v11 = vpop.f32.mrf.mxu1  ;;  %v4318_v37 = vpop.f32.mrf.mxu0 }
 0x3b6   : > { %v1944_v47 = vsel %vm1910_vm9, %v4312_v11, -inf  ;;  %v2106_v36 = vsel %vm1910_vm9, %v4318_v37, -inf }
 0x3b7   : > { %1945 = vmax.xlane.f32.xlu1 %v1944_v47  ;;  %2104 = vmax.xlane.f32.xlu2 %v2103_v22 }
 0x3bd   : > { %v4320_v8 = vpop.f32.mrf.mxu1 }
 0x3be   : > { %v2109_v28 = vsel %vm1910_vm9, %v4320_v8, -inf  ;;  %v4326_v43 = vpop.f32.mrf.mxu0 }
 0x3bf   : > { %2110 = vmax.xlane.f32.xlu2 %v2109_v28  ;;  %2107 = vmax.xlane.f32.xlu1 %v2106_v36  ;;  %v2127_v4 = vsel %vm1910_vm9, %v4326_v43, -inf }
 0x3c3   : > { %v4328_v17 = vpop.f32.mrf.mxu2 }
 0x3c4   : > { %v1947_v16 = vsel %vm1910_vm9, %v4328_v17, -inf }
 0x3c5   : > { %v4330_v31 = vpop.f32.mrf.mxu1 }
 0x3c6   : > { %v2112_v7 = vsel %vm1910_vm9, %v4330_v31, -inf  ;;  %v4336_v29 = vpop.f32.mrf.mxu0 }
 0x3c7   : > { %2113 = vmax.xlane.f32.xlu1 %v2112_v7  ;;  %2128 = vmax.xlane.f32.xlu2 %v2127_v4  ;;  %v2130_v6 = vsel %vm1910_vm9, %v4336_v29, -inf }
 0x3cb   : > { %v4338_v54 = vpop.f32.mrf.mxu2 }
 0x3cc   : > { %v1950_v15 = vsel %vm1910_vm9, %v4338_v54, -inf }
 0x3ce   : > { %v4352_v27 = vpop.f32.mrf.mxu1 }
 0x3cf   : > { %1948 = vmax.xlane.f32.xlu2 %v1947_v16  ;;  %2131 = vmax.xlane.f32.xlu1 %v2130_v6  ;;  %v2133_v59 = vsel %vm1910_vm9, %v4352_v27, -inf }
 0x3d2   : > { %v1913_v44 = vpop.xlane.xlu2 %1912 }
 0x3d3   : > { %v4344_v53 = vpop.f32.mrf.mxu3  ;;  %v4346_v18 = vpop.f32.mrf.mxu2  ;;  %v1959_v46 = vsub.f32 %v4254_v41, %v1913_v44 }
 0x3d4   : > { %v1953_v0 = vsel %vm1910_vm9, %v4344_v53, -inf  ;;  %v2115_v49 = vsel %vm1910_vm9, %v4346_v18, -inf }
 0x3d5   : > { %v1975_v23 = vmul.f32 1.442695, %v1959_v46 }
 0x3d6   : > { %v4363_v3 = vpop.f32.mrf.mxu1 }
 0x3d7   : > { %1951 = vmax.xlane.f32.xlu1 %v1950_v15  ;;  %1954 = vmax.xlane.f32.xlu2 %v1953_v0  ;;  %3111 = vpow2.f32 %v1975_v23  ;;  %v2136_v55 = vsel %vm1910_vm9, %v4363_v3, -inf }
 0x3da   : > { %v1916_v32 = vpop.xlane.xlu1 %1915 }
 0x3db   : > { %v4354_v52 = vpop.f32.mrf.mxu3  ;;  %v4356_v26 = vpop.f32.mrf.mxu2  ;;  %v1960_v41 = vsub.f32 %v4264_v45, %v1916_v32 }
 0x3dc   : > { %v1956_v60 = vsel %vm1910_vm9, %v4354_v52, -inf  ;;  %v2118_v39 = vsel %vm1910_vm9, %v4356_v26, -inf }
 0x3dd   : > { %v1977_v14 = vmul.f32 1.442695, %v1960_v41  ;;  %v4376_v24 = vpop.eup %3111 }
 0x3de   : > { %v2007_v45 = vsel %vm1910_vm9, %v4376_v24, 0.0 }
 0x3df   : > { %2134 = vmax.xlane.f32.xlu1 %v2133_v59  ;;  %2116 = vmax.xlane.f32.xlu2 %v2115_v49  ;;  %3113 = vpow2.f32 %v1977_v14 }
 0x3e2   : > { %v1919_v25 = vpop.xlane.xlu2 %1918 }
 0x3e3   : > { %v4365_v21 = vpop.f32.mrf.mxu3  ;;  %v4367_v57 = vpop.f32.mrf.mxu2  ;;  %v1961_v12 = vsub.f32 %v4268_v1, %v1919_v25 }
 0x3e4   : > { %v2139_v40 = vsel %vm1910_vm9, %v4367_v57, -inf  ;;  %v2121_v42 = vsel %vm1910_vm9, %v4365_v21, -inf }
 0x3e5   : > { %2140 = vmax.xlane.f32.xlu0 %v2139_v40  ;;  %v1979_v62 = vmul.f32 1.442695, %v1961_v12  ;;  %v4385_v2 = vpop.eup %3113 }
 0x3e6   : > { %v2010_v1 = vsel %vm1910_vm9, %v4385_v2, 0.0 }
 0x3e7   : > { %2137 = vmax.xlane.f32.xlu2 %v2136_v55  ;;  %1957 = vmax.xlane.f32.xlu1 %v1956_v60  ;;  %3115 = vpow2.f32 %v1979_v62 }
 0x3ea   : > { %v1922_v20 = vpop.xlane.xlu1 %1921 }
 0x3eb   : > { %v4378_v5 = vpop.f32.mrf.mxu3  ;;  %v1962_v7 = vsub.f32 %v4276_v58, %v1922_v20 }
 0x3ec   : > { %v2124_v16 = vsel %vm1910_vm9, %v4378_v5, -inf }
 0x3ed   : > { %v4396_v28 = vpop.eup %3115  ;;  %v1981_v6 = vmul.f32 1.442695, %v1962_v7 }
 0x3ee   : > { %v2013_v4 = vsel %vm1910_vm9, %v4396_v28, 0.0 }
 0x3ef   : > { %2008 = vadd.xlane.f32.xlu2 %v2007_v45  ;;  %2119 = vmax.xlane.f32.xlu1 %v2118_v39 }
 0x3f3   : > { %v4387_v35 = vpop.f32.mrf.mxu3 }
 0x3f4   : > { %v2145_v13 = vsel %vm1910_vm9, %v4387_v35, -inf }
 0x3f5   : > { %2146 = vmax.xlane.f32.xlu0 %v2145_v13 }
 0x3f7   : > { %2011 = vadd.xlane.f32.xlu1 %v2010_v1  ;;  %2122 = vmax.xlane.f32.xlu2 %v2121_v42 }
 0x3f8   : > { %v1925_v47 = vpop.xlane.xlu2 %1924 }
 0x3f9   : > { %v1963_v22 = vsub.f32 %v4282_v19, %v1925_v47  ;;  %v4406_v19 = vpop.f32.mrf.mxu2 }
 0x3fa   : > { %v2142_v59 = vsel %vm1910_vm9, %v4406_v19, -inf }
 0x3fb   : > { %v1983_v36 = vmul.f32 1.442695, %v1963_v22 }
 0x3fd   : > { %3117 = vpow2.f32 %v1983_v36 }
 0x3fe   : > { %3119 = vpow2.f32 %v1981_v6 }
 0x3ff   : > { %2014 = vadd.xlane.f32.xlu2 %v2013_v4  ;;  %2125 = vmax.xlane.f32.xlu1 %v2124_v16 }
 0x400   : > { %v1928_v15 = vpop.xlane.xlu1 %1927 }
 0x401   : > { %v1964_v0 = vsub.f32 %v4286_v50, %v1928_v15 }
 0x403   : > { %v4404_v44 = vpop.eup %3117  ;;  %v1985_v46 = vmul.f32 1.442695, %v1964_v0 }
 0x404   : > { %v2019_v58 = vsel %vm1910_vm9, %v4404_v44, 0.0  ;;  %v4413_v32 = vpop.eup %3119 }
 0x405   : > { %3121 = vpow2.f32 %v1985_v46  ;;  %v2016_v55 = vsel %vm1910_vm9, %v4413_v32, 0.0 }
 0x407   : > { %2020 = vadd.xlane.f32.xlu2 %v2019_v58  ;;  %2143 = vmax.xlane.f32.xlu1 %v2142_v59 }
 0x408   : > { %v1931_v49 = vpop.xlane.xlu2 %1930 }
 0x409   : > { %v1965_v23 = vsub.f32 %v4290_v56, %v1931_v49  ;;  %v4424_v56 = vpop.f32.mrf.mxu3 }
 0x40a   : > { %v2148_v1 = vsel %vm1910_vm9, %v4424_v56, -inf }
 0x40b   : > { %v4415_v50 = vpop.eup %3121  ;;  %v1987_v40 = vmul.f32 1.442695, %v1965_v23 }
 0x40c   : > { %v2022_v41 = vsel %vm1910_vm9, %v4415_v50, 0.0 }
 0x40d   : > { %3123 = vpow2.f32 %v1987_v40  ;;  %2023 = vadd.xlane.f32.xlu0 %v2022_v41 }
 0x40f   : > { %2017 = vadd.xlane.f32.xlu1 %v2016_v55 }
 0x410   : > { %v1934_v60 = vpop.xlane.xlu1 %1933 }
 0x411   : > { %v1966_v14 = vsub.f32 %v4294_v34, %v1934_v60 }
 0x412   : > { %v1937_v25 = vpop.xlane.xlu2 %1936 }
 0x413   : > { %v4422_v12 = vpop.eup %3123  ;;  %v1989_v45 = vmul.f32 1.442695, %v1966_v14  ;;  %v1967_v39 = vsub.f32 %v4298_v51, %v1937_v25 }
 0x414   : > { %v2025_v62 = vsel %vm1910_vm9, %v4422_v12, 0.0 }
 0x415   : > { %3125 = vpow2.f32 %v1989_v45  ;;  %v1991_v13 = vmul.f32 1.442695, %v1967_v39  ;;  %2026 = vadd.xlane.f32.xlu2 %v2025_v62 }
 0x417   : > { %3127 = vpow2.f32 %v1991_v13  ;;  %2149 = vmax.xlane.f32.xlu1 %v2148_v1 }
 0x41a   : > { %v1940_v34 = vpop.xlane.xlu1 %1939 }
 0x41b   : > { %v4431_v42 = vpop.eup %3125  ;;  %v1968_v20 = vsub.f32 %v4302_v30, %v1940_v34 }
 0x41c   : > { %v2028_v47 = vsel %vm1910_vm9, %v4431_v42, 0.0 }
 0x41d   : > { %v4436_v51 = vpop.eup %3127  ;;  %v1993_v22 = vmul.f32 1.442695, %v1968_v20  ;;  %2029 = vadd.xlane.f32.xlu0 %v2028_v47 }
 0x41e   : > { %v2031_v36 = vsel %vm1910_vm9, %v4436_v51, 0.0 }
 0x41f   : > { %3129 = vpow2.f32 %v1993_v22  ;;  %2032 = vadd.xlane.f32.xlu1 %v2031_v36 }
 0x422   : > { %v1943_v7 = vpop.xlane.xlu2 %1942 }
 0x423   : > { %v1969_v4 = vsub.f32 %v4306_v61, %v1943_v7 }
 0x425   : > { %v4441_v16 = vpop.eup %3129  ;;  %v1995_v6 = vmul.f32 1.442695, %v1969_v4 }
 0x426   : > { %v2034_v30 = vsel %vm1910_vm9, %v4441_v16, 0.0 }
 0x427   : > { %3131 = vpow2.f32 %v1995_v6  ;;  %2035 = vadd.xlane.f32.xlu2 %v2034_v30 }
 0x42a   : > { %v1946_v15 = vpop.xlane.xlu1 %1945  ;;  %v2105_v0 = vpop.xlane.xlu2 %2104 }
 0x42b   : > { %v1970_v46 = vsub.f32 %v4312_v11, %v1946_v15  ;;  %v2151_v36 = vsub.f32 %v4308_v10, %v2105_v0 }
 0x42d   : > { %v4446_v58 = vpop.eup %3131  ;;  %v1997_v59 = vmul.f32 1.442695, %v1970_v46 }
 0x42e   : > { %v2037_v49 = vsel %vm1910_vm9, %v4446_v58, 0.0 }
 0x42f   : > { %3133 = vpow2.f32 %v1997_v59  ;;  %2038 = vadd.xlane.f32.xlu2 %v2037_v49 }
 0x432   : > { %v2111_v61 = vpop.xlane.xlu2 %2110  ;;  %v2108_v23 = vpop.xlane.xlu1 %2107 }
 0x433   : > { %v2152_v40 = vsub.f32 %v4318_v37, %v2108_v23 }
 0x435   : > { %v4451_v41 = vpop.eup %3133  ;;  %v2169_v55 = vmul.f32 1.442695, %v2152_v40 }
 0x436   : > { %v2040_v60 = vsel %vm1910_vm9, %v4451_v41, 0.0 }
 0x437   : > { %2041 = vadd.xlane.f32.xlu0 %v2040_v60  ;;  %3135 = vpow2.f32 %v2169_v55 }
 0x43a   : > { %v2114_v11 = vpop.xlane.xlu1 %2113  ;;  %v4455_v14 = vpop.xlane.xlu2 %2128 }
 0x43d   : > { %v4457_v25 = vpop.eup %3135 }
 0x43e   : > { %v2202_v45 = vsel %vm1910_vm9, %v4457_v25, 0.0 }
 0x43f   : > { %2203 = vadd.xlane.f32.xlu0 %v2202_v45  ;;  %v2153_v45 = vsub.f32 %v4320_v8, %v2111_v61 }
 0x442   : > { %v1949_v39 = vpop.xlane.xlu2 %1948  ;;  %v4461_v62 = vpop.xlane.xlu1 %2131 }
 0x443   : > { %v1971_v37 = vsub.f32 %v4328_v17, %v1949_v39  ;;  %v2167_v17 = vmul.f32 1.442695, %v2151_v36 }
 0x445   : > { %v1999_v13 = vmul.f32 1.442695, %v1971_v37 }
 0x447   : > { %3137 = vpow2.f32 %v1999_v13  ;;  %v2171_v13 = vmul.f32 1.442695, %v2153_v45 }
 0x44a   : > { %v1952_v1 = vpop.xlane.xlu1 %1951  ;;  %v1955_v34 = vpop.xlane.xlu2 %1954 }
 0x44b   : > { %v1972_v20 = vsub.f32 %v4338_v54, %v1952_v1  ;;  %v1973_v47 = vsub.f32 %v4344_v53, %v1955_v34  ;;  %v2154_v53 = vsub.f32 %v4330_v31, %v2114_v11 }
 0x44d   : > { %v4466_v22 = vpop.eup %3137  ;;  %v2001_v7 = vmul.f32 1.442695, %v1972_v20  ;;  %v2003_v4 = vmul.f32 1.442695, %v1973_v47  ;;  %v2173_v23 = vmul.f32 1.442695, %v2154_v53  ;;  %v2160_v53 = vsub.f32 %v4336_v29, %v4461_v62 }
 0x44e   : > { %v2043_v6 = vsel %vm1910_vm9, %v4466_v22, 0.0 }
 0x44f   : > { %3139 = vpow2.f32 %v2001_v7  ;;  %2044 = vadd.xlane.f32.xlu1 %v2043_v6 }
 0x450   : > { %3141 = vpow2.f32 %v2003_v4 }
 0x451   : > { %3143 = vpow2.f32 %v2167_v17 }
 0x452   : > { %v4471_v30 = vpop.xlane.xlu1 %2134  ;;  %v2117_v15 = vpop.xlane.xlu2 %2116 }
 0x453   : > { %v2155_v54 = vsub.f32 %v4346_v18, %v2117_v15  ;;  %v2161_v29 = vsub.f32 %v4352_v27, %v4471_v30 }
 0x455   : > { %v4474_v46 = vpop.eup %3139  ;;  %v2175_v10 = vmul.f32 1.442695, %v2155_v54  ;;  %v1404_v54 = vadd.f32 %v3576_v38, %v3700_v48  ;;  %v2185_v38 = vmul.f32 1.442695, %v2160_v53 }
 0x456   : > { %v4477_v0 = vpop.eup %3141  ;;  %v2046_v59 = vsel %vm1910_vm9, %v4474_v46, 0.0 }
 0x457   : > { %2047 = vadd.xlane.f32.xlu2 %v2046_v59  ;;  %v2049_v49 = vsel %vm1910_vm9, %v4477_v0, 0.0  ;;  %3145 = vpow2.f32 %v2175_v10  ;;  %v4485_v55 = vpop.eup %3143 }
 0x458   : > { %2050 = vadd.xlane.f32.xlu0 %v2049_v49  ;;  %3147 = vpow2.f32 %v2173_v23  ;;  %v2199_v39 = vsel %vm1910_vm9, %v4485_v55, 0.0  ;;  %v1402_v49 = vadd.f32 %v3560_v9, %v3700_v48 }
 0x45a   : > { %v4483_v40 = vpop.xlane.xlu2 %2137  ;;  %v1958_v18 = vpop.xlane.xlu1 %1957  ;;  %v1441_v45 = vpack.c.bf16 %v1402_v49, %v1402_v49 }
 0x45b   : > { %v1974_v31 = vsub.f32 %v4354_v52, %v1958_v18  ;;  %v2141_v18 = vpop.xlane.xlu0 %2140 }
 0x45d   : > { %v2005_v60 = vmul.f32 1.442695, %v1974_v31  ;;  %v4488_v11 = vpop.eup %3145 }
 0x45e   : > { %v2211_v37 = vsel %vm1910_vm9, %v4488_v11, 0.0  ;;  %v4495_v20 = vpop.eup %3147 }
 0x45f   : > { %2200 = vadd.xlane.f32.xlu2 %v2199_v39  ;;  %3149 = vpow2.f32 %v2005_v60  ;;  %v2208_v61 = vsel %vm1910_vm9, %v4495_v20, 0.0 }
 0x460   : > { %2212 = vadd.xlane.f32.xlu0 %v2211_v37  ;;  %v2163_v37 = vsub.f32 %v4367_v57, %v2141_v18 }
 0x462   : > { %v2009_v1 = vpop.xlane.xlu2 %2008  ;;  %v2120_v34 = vpop.xlane.xlu1 %2119 }
 0x463   : > { %3151 = vrcp.f32 %v2009_v1  ;;  %v2156_v8 = vsub.f32 %v4356_v26, %v2120_v34  ;;  %v2159_v26 = vsub.f32 %v4326_v43, %v4455_v14  ;;  %v1442_v14 = vpack.c.bf16 %v1404_v54, %v1404_v54 }
 0x464   : > { %3153 = vpow2.f32 %v2171_v13 }
 0x465   : > { %v4497_v52 = vpop.eup %3149  ;;  %v2177_v36 = vmul.f32 1.442695, %v2156_v8  ;;  %v2183_v23 = vmul.f32 1.442695, %v2159_v26  ;;  %v2527_v34 = vunpack.c.l.b16 %v1442_v14  ;;  %v2187_v8 = vmul.f32 1.442695, %v2161_v29 }
 0x466   : > { %v2052_v47 = vsel %vm1910_vm9, %v4497_v52, 0.0 }
 0x467   : > { %2209 = vadd.xlane.f32.xlu2 %v2208_v61  ;;  %2053 = vadd.xlane.f32.xlu1 %v2052_v47  ;;  %v2526_v47 = vunpack.c.l.b16 %v1441_v45 }
 0x469   : > { %v3152_v6 = vpop.eup %3151 }
 0x46a   : > { %v2012_v7 = vpop.xlane.xlu1 %2011  ;;  %v2123_v4 = vpop.xlane.xlu2 %2122  ;;  %v2071_v59 = vmul.f32 %v3152_v6, %v4376_v24  ;;  %v2528_v6 = vpack.c.b16 %v2527_v34, %v2526_v47 }
 0x46b   : > { %3155 = vrcp.f32 %v2012_v7  ;;  %v2157_v17 = vsub.f32 %v4365_v21, %v2123_v4  ;;  %v4505_v15 = vpop.eup %3153  ;;  %v2147_v7 = vpop.xlane.xlu0 %2146 }
 0x46c   : > { %3157 = vpow2.f32 %v2177_v36  ;;  %v2205_v21 = vsel %vm1910_vm9, %v4505_v15, 0.0  ;;  %v2087_v62 = vpack.c.bf16 %v2071_v59, %v2071_v59  ;;  %v2191_v36 = vmul.f32 1.442695, %v2163_v37 }
 0x46d   : > { %v2179_v10 = vmul.f32 1.442695, %v2157_v17  ;;  %v2165_v59 = vsub.f32 %v4387_v35, %v2147_v7 }
 0x46e   : > { %v2297_v30 = vunpack.c.l.b16 %v2087_v62 }
 0x46f   : > { %3159 = vpow2.f32 %v2179_v10  ;;  %2206 = vadd.xlane.f32.xlu1 %v2205_v21  ;;  %v2195_v35 = vmul.f32 1.442695, %v2165_v59 }
 0x470   : > { %3161 = vpow2.f32 %v2183_v23 }
 0x471   : > { %v3156_v43 = vpop.eup %3155  ;;  %3163 = vpow2.f32 %v2185_v38 }
 0x472   : > { %v2072_v24 = vmul.f32 %v3156_v43, %v4385_v2  ;;  %v2015_v31 = vpop.xlane.xlu2 %2014  ;;  %v2126_v60 = vpop.xlane.xlu1 %2125  ;;  %v2162_v2 = vsub.f32 %v4363_v3, %v4483_v40 }
 0x473   : > { %v2158_v9 = vsub.f32 %v4378_v5, %v2126_v60  ;;  %v4522_v39 = vpop.eup %3157 }
 0x474   : > { %v2088_v13 = vpack.c.bf16 %v2072_v24, %v2072_v24  ;;  %v2214_v57 = vsel %vm1910_vm9, %v4522_v39, 0.0  ;;  %v2189_v3 = vmul.f32 1.442695, %v2162_v2  ;;  %v4686_v24 = vld [vmem:[#allocation5_spill] sm:$0xff] }
 0x475   : > { %v4525_v1 = vpop.eup %3159  ;;  %v2181_v27 = vmul.f32 1.442695, %v2158_v9  ;;  %v4687_v9 = vld [vmem:[#allocation3_spill] sm:$0xff] }
 0x476   : > { %v2298_v61 = vunpack.c.l.b16 %v2088_v13  ;;  %v2217_v5 = vsel %vm1910_vm9, %v4525_v1, 0.0  ;;  %v4533_v17 = vpop.eup %3161  ;;  %v1409_v37 = vadd.f32 %v4687_v9, %v3700_v48  ;;  %v4688_v13 = vld [vmem:[#allocation4_spill] sm:$0xff] }
 0x477   : > { %3165 = vpow2.f32 %v2181_v27  ;;  %2218 = vadd.xlane.f32.xlu2 %v2217_v5  ;;  %2215 = vadd.xlane.f32.xlu1 %v2214_v57  ;;  %v4536_v54 = vpop.eup %3163  ;;  %v2223_v23 = vsel %vm1910_vm9, %v4533_v17, 0.0  ;;  %v1412_v34 = vadd.f32 %v4688_v13, %v3700_v48 }
 0x478   : > { %v2299_v4 = vpack.c.b16 %v2298_v61, %v2297_v30  ;;  %3167 = vpow2.f32 %v2187_v8  ;;  %v2226_v49 = vsel %vm1910_vm9, %v4536_v54, 0.0  ;;  %v4689_v61 = vld [vmem:[#allocation2_spill] sm:$0xff] }
 0x47a   : > { %3001 = vmatmul.msk.bf16.vlgmr.msrb.gmra.mxu0 %vm1910_vm9, %v2299_v4  ;;  %v2021_v40 = vpop.xlane.xlu2 %2020  ;;  %v2144_v26 = vpop.xlane.xlu1 %2143  ;;  %v1444_v4 = vpack.c.bf16 %v1409_v37, %v1409_v37 }
 0x47b   : > { %2540 = vmatpush.bf16.msrb.mxu0 %v2528_v6  ;;  %3169 = vrcp.f32 %v2021_v40  ;;  %v2164_v10 = vsub.f32 %v4406_v19, %v2144_v26  ;;  %v1445_v6 = vpack.c.bf16 %v1412_v34, %v1412_v34 }
 0x47c   : > { %3171 = vpow2.f32 %v2191_v36 }
 0x47d   : > { %v4538_v53 = vpop.eup %3165  ;;  %3173 = vrcp.f32 %v2015_v31  ;;  %v2193_v19 = vmul.f32 1.442695, %v2164_v10  ;;  %v1414_v31 = vadd.f32 %v4686_v24, %v3700_v48 }
 0x47e   : > { %3175 = vpow2.f32 %v2189_v3  ;;  %v2220_v21 = vsel %vm1910_vm9, %v4538_v53, 0.0  ;;  %v4548_v18 = vpop.eup %3167 }
 0x47f   : > { %2227 = vadd.xlane.f32.xlu2 %v2226_v49  ;;  %2221 = vadd.xlane.f32.xlu0 %v2220_v21  ;;  %v2229_v2 = vsel %vm1910_vm9, %v4548_v18, 0.0  ;;  %v1446_v5 = vpack.c.bf16 %v1414_v31, %v1414_v31 }
 0x480   : > { %2224 = vadd.xlane.f32.xlu1 %v2223_v23  ;;  %v2024_v43 = vpop.xlane.xlu0 %2023 }
 0x481   : > { %v3170_v14 = vpop.eup %3169  ;;  %3177 = vrcp.f32 %v2024_v43  ;;  %v2583_v21 = vunpack.c.l.b16 %v1446_v5 }
 0x482   : > { %v4550_v38 = vpop.eup %3171  ;;  %v2018_v29 = vpop.xlane.xlu1 %2017  ;;  %v2075_v45 = vmul.f32 %v3170_v14, %v4404_v44  ;;  %v1407_v44 = vadd.f32 %v4689_v61, %v3700_v48 }
 0x483   : > { %v3174_v62 = vpop.eup %3173  ;;  %3179 = vrcp.f32 %v2018_v29  ;;  %v2235_v27 = vsel %vm1910_vm9, %v4550_v38, 0.0  ;;  %v2582_v29 = vunpack.c.l.b16 %v1445_v6 }
 0x484   : > { %v4554_v60 = vpop.eup %3175  ;;  %3181 = vpow2.f32 %v2193_v19  ;;  %v2073_v8 = vmul.f32 %v3174_v62, %v4396_v28  ;;  %v2091_v57 = vpack.c.bf16 %v2075_v45, %v2075_v45  ;;  %v1443_v49 = vpack.c.bf16 %v1407_v44, %v1407_v44 }
 0x485   : > { %3183 = vpow2.f32 %v2195_v35  ;;  %v2232_v47 = vsel %vm1910_vm9, %v4554_v60, 0.0  ;;  %v2555_v35 = vunpack.c.l.b16 %v1444_v4  ;;  %v2584_v37 = vpack.c.b16 %v2583_v21, %v2582_v29 }
 0x486   : > { %v2089_v3 = vpack.c.bf16 %v2073_v8, %v2073_v8  ;;  %v2554_v9 = vunpack.c.l.b16 %v1443_v49 }
 0x487   : > { %v3178_v30 = vpop.eup %3177  ;;  %2236 = vadd.xlane.f32.xlu2 %v2235_v27  ;;  %2230 = vadd.xlane.f32.xlu0 %v2229_v2 }
 0x488   : > { %v2076_v36 = vmul.f32 %v3178_v30, %v4415_v50  ;;  %2233 = vadd.xlane.f32.xlu1 %v2232_v47  ;;  %v2027_v28 = vpop.xlane.xlu2 %2026  ;;  %v2353_v50 = vunpack.c.l.b16 %v2091_v57  ;;  %v2325_v24 = vunpack.c.l.b16 %v2089_v3  ;;  %v2556_v27 = vpack.c.b16 %v2555_v35, %v2554_v9  ;;  %v4690_v30 = vld [vmem:[#allocation7_spill] sm:$0xff]  ;;  %v4691_v47 = vld [vmem:[#allocation6_spill] sm:$0xff] }
 0x489   : > { %v3180_v7 = vpop.eup %3179  ;;  %3185 = vrcp.f32 %v2027_v28  ;;  %v1419_v61 = vadd.f32 %v4690_v30, %v3700_v48  ;;  %v1417_v57 = vadd.f32 %v4691_v47, %v3700_v48  ;;  %v4695_v47 = vld [vmem:[#allocation11_spill] sm:$0xff] }
 0x48a   : > { %v2092_v40 = vpack.c.bf16 %v2076_v36, %v2076_v36  ;;  %v2074_v26 = vmul.f32 %v3180_v7, %v4413_v32  ;;  %v2150_v10 = vpop.xlane.xlu1 %2149  ;;  %v4572_v59 = vpop.eup %3181 }
 0x48b   : > { %v2166_v23 = vsub.f32 %v4424_v56, %v2150_v10  ;;  %v4575_v43 = vpop.eup %3183  ;;  %v2238_v32 = vsel %vm1910_vm9, %v4572_v59, 0.0  ;;  %v1448_v7 = vpack.c.bf16 %v1419_v61, %v1419_v61  ;;  %v1447_v3 = vpack.c.bf16 %v1417_v57, %v1417_v57  ;;  %v4696_v57 = vld [vmem:[#allocation10_spill] sm:$0xff] }
 0x48c   : > { %v2354_v14 = vunpack.c.l.b16 %v2092_v40  ;;  %v2090_v19 = vpack.c.bf16 %v2074_v26, %v2074_v26  ;;  %v2241_v56 = vsel %vm1910_vm9, %v4575_v43, 0.0 }
 0x48d   : > { %v2197_v62 = vmul.f32 1.442695, %v2166_v23  ;;  %v2610_v23 = vunpack.c.l.b16 %v1447_v3 }
 0x48e   : > { %v2355_v31 = vpack.c.b16 %v2354_v14, %v2353_v50  ;;  %v2326_v45 = vunpack.c.l.b16 %v2090_v19 }
 0x48f   : > { %3187 = vpow2.f32 %v2197_v62  ;;  %2239 = vadd.xlane.f32.xlu0 %v2238_v32  ;;  %v3186_v8 = vpop.eup %3185 }
 0x490   : > { %v2327_v13 = vpack.c.b16 %v2326_v45, %v2325_v24  ;;  %2242 = vadd.xlane.f32.xlu1 %v2241_v56  ;;  %3003 = vmatmul.msk.bf16.vlgmr.msrb.gmra.mxu2 %vm1910_vm9, %v2355_v31  ;;  %v2030_v34 = vpop.xlane.xlu0 %2029  ;;  %v2077_v44 = vmul.f32 %v3186_v8, %v4422_v12  ;;  %v2611_v12 = vunpack.c.l.b16 %v1448_v7  ;;  %v4693_v56 = vld [vmem:[#allocation8_spill] sm:$0xff] }
 0x491   : > { %2596 = vmatpush.bf16.msrb.mxu2 %v2584_v37  ;;  %3189 = vrcp.f32 %v2030_v34 }
 0x492   : > { %3002 = vmatmul.msk.bf16.vlgmr.msrb.gmra.mxu1 %vm1910_vm9, %v2327_v13  ;;  %v2033_v2 = vpop.xlane.xlu1 %2032  ;;  %v2093_v4 = vpack.c.bf16 %v2077_v44, %v2077_v44  ;;  %v2612_v19 = vpack.c.b16 %v2611_v12, %v2610_v23 }
 0x493   : > { %2568 = vmatpush.bf16.msrb.mxu1 %v2556_v27  ;;  %3191 = vrcp.f32 %v2033_v2 }
 0x494   : > { %v2381_v49 = vunpack.c.l.b16 %v2093_v4 }
 0x495   : > { %v4586_v5 = vpop.eup %3187 }
 0x496   : > { %v2244_v36 = vsel %vm1910_vm9, %v4586_v5, 0.0 }
 0x497   : > { %v3190_v28 = vpop.eup %3189  ;;  %2245 = vadd.xlane.f32.xlu2 %v2244_v36  ;;  %v4697_v36 = vpack.c.b16 %v4695_v47, %v4696_v57 }
 0x498   : > { %v2078_v6 = vmul.f32 %v3190_v28, %v4431_v42 }
 0x499   : > { %v3192_v10 = vpop.eup %3191 }
 0x49a   : > { %v2094_v40 = vpack.c.bf16 %v2078_v6, %v2078_v6  ;;  %v2036_v26 = vpop.xlane.xlu2 %2035  ;;  %v2079_v14 = vmul.f32 %v3192_v10, %v4436_v51  ;;  %v4692_v51 = vld [vmem:[#allocation9_spill] sm:$0xff] }
 0x49b   : > { %3193 = vrcp.f32 %v2036_v26  ;;  %v4694_v13 = vpack.c.b16 %v4692_v51, %v4693_v56 }
 0x49c   : > { %v2382_v21 = vunpack.c.l.b16 %v2094_v40  ;;  %v2095_v29 = vpack.c.bf16 %v2079_v14, %v2079_v14 }
 0x49e   : > { %v2383_v50 = vpack.c.b16 %v2382_v21, %v2381_v49  ;;  %v2409_v31 = vunpack.c.l.b16 %v2095_v29 }
 0x4a0   : > { %3004 = vmatmul.msk.bf16.vlgmr.msrb.gmra.mxu3 %vm1910_vm9, %v2383_v50 }
 0x4a1   : > { %v3194_v35 = vpop.eup %3193  ;;  %2624 = vmatpush.bf16.msrb.mxu3 %v2612_v19 }
 0x4a2   : > { %v2080_v42 = vmul.f32 %v3194_v35, %v4441_v16  ;;  %v2039_v62 = vpop.xlane.xlu2 %2038 }
 0x4a3   : > { %3195 = vrcp.f32 %v2039_v62 }
 0x4a4   : > { %v2096_v24 = vpack.c.bf16 %v2080_v42, %v2080_v42  ;;  %v4698_v42 = vld [vmem:[#allocation13_spill] sm:$0xff] }
 0x4a6   : > { %v2410_v45 = vunpack.c.l.b16 %v2096_v24 }
 0x4a8   : > { %v2411_v32 = vpack.c.b16 %v2410_v45, %v2409_v31 }
 0x4a9   : > { %v3196_v37 = vpop.eup %3195 }
 0x4aa   : > { %v2042_v9 = vpop.xlane.xlu0 %2041  ;;  %3005 = vmatmul.msk.bf16.vlgmr.msra.gmra.mxu0 %vm1910_vm9, %v2411_v32  ;;  %v2081_v34 = vmul.f32 %v3196_v37, %v4446_v58 }
 0x4ab   : > { %3197 = vrcp.f32 %v2042_v9  ;;  %2652 = vmatpush.bf16.msra.mxu0 %v4694_v13 }
 0x4ac   : > { %v2097_v27 = vpack.c.bf16 %v2081_v34, %v2081_v34 }
 0x4ae   : > { %v2437_v30 = vunpack.c.l.b16 %v2097_v27 }
 0x4b1   : > { %v3198_v8 = vpop.eup %3197 }
 0x4b2   : > { %v2082_v16 = vmul.f32 %v3198_v8, %v4451_v41  ;;  %v2204_v7 = vpop.xlane.xlu0 %2203 }
 0x4b4   : > { %v2098_v2 = vpack.c.bf16 %v2082_v16, %v2082_v16 }
 0x4b6   : > { %v2438_v61 = vunpack.c.l.b16 %v2098_v2 }
 0x4b8   : > { %v2439_v44 = vpack.c.b16 %v2438_v61, %v2437_v30 }
 0x4ba   : > { %3006 = vmatmul.msk.bf16.vlgmr.msra.gmra.mxu1 %vm1910_vm9, %v2439_v44 }
 0x4bb   : > { %2680 = vmatpush.bf16.msra.mxu1 %v4697_v36 }
 0x4c2   : > { %v2045_v28 = vpop.xlane.xlu1 %2044 }
 0x4c3   : > { %3199 = vrcp.f32 %v2045_v28 }
 0x4c9   : > { %v3200_v6 = vpop.eup %3199 }
 0x4ca   : > { %v2048_v4 = vpop.xlane.xlu2 %2047  ;;  %v2083_v58 = vmul.f32 %v3200_v6, %v4466_v22 }
 0x4cb   : > { %3201 = vrcp.f32 %v2048_v4  ;;  %v2051_v12 = vpop.xlane.xlu0 %2050 }
 0x4cc   : > { %3203 = vrcp.f32 %v2204_v7  ;;  %v2099_v3 = vpack.c.bf16 %v2083_v58, %v2083_v58 }
 0x4ce   : > { %v2465_v23 = vunpack.c.l.b16 %v2099_v3 }
 0x4d1   : > { %v3202_v41 = vpop.eup %3201 }
 0x4d2   : > { %v2084_v40 = vmul.f32 %v3202_v41, %v4474_v46  ;;  %v2201_v26 = vpop.xlane.xlu2 %2200  ;;  %v3204_v10 = vpop.eup %3203  ;;  %v4699_v46 = vld [vmem:[#allocation12_spill] sm:$0xff] }
 0x4d3   : > { %3205 = vrcp.f32 %v2201_v26  ;;  %v2264_v21 = vmul.f32 %v3204_v10, %v4457_v25  ;;  %v4700_v62 = vpack.c.b16 %v4698_v42, %v4699_v46  ;;  %v1439_v25 = vadd.f32 %v4280_v63, %v3700_v48  ;;  %v2213_v8 = vpop.xlane.xlu0 %2212 }
 0x4d4   : > { %v2100_v49 = vpack.c.bf16 %v2084_v40, %v2084_v40  ;;  %3207 = vrcp.f32 %v2051_v12 }
 0x4d5   : > { %v2280_v35 = vpack.c.bf16 %v2264_v21, %v2264_v21  ;;  %v1456_v13 = vpack.c.bf16 %v1439_v25, %v1439_v25 }
 0x4d6   : > { %v2466_v50 = vunpack.c.l.b16 %v2100_v49 }
 0x4d7   : > { %v2522_v32 = vunpack.c.l.b16 %v2280_v35  ;;  %v2723_v61 = vunpack.c.l.b16 %v1456_v13 }
 0x4d8   : > { %v2467_v14 = vpack.c.b16 %v2466_v50, %v2465_v23 }
 0x4d9   : > { %v3206_v19 = vpop.eup %3205 }
 0x4da   : > { %v2263_v29 = vmul.f32 %v3206_v19, %v4485_v55  ;;  %3007 = vmatmul.msk.bf16.vlgmr.msra.gmra.mxu2 %vm1910_vm9, %v2467_v14  ;;  %v2210_v22 = vpop.xlane.xlu2 %2209  ;;  %v2054_v24 = vpop.xlane.xlu1 %2053  ;;  %v1437_v55 = vadd.f32 %v4274_v33, %v3700_v48 }
 0x4db   : > { %2708 = vmatpush.bf16.msra.mxu2 %v4700_v62  ;;  %v3208_v31 = vpop.eup %3207  ;;  %3209 = vrcp.f32 %v2054_v24 }
 0x4dc   : > { %v2279_v45 = vpack.c.bf16 %v2263_v29, %v2263_v29  ;;  %3211 = vrcp.f32 %v2210_v22  ;;  %v2085_v37 = vmul.f32 %v3208_v31, %v4477_v0  ;;  %v1455_v63 = vpack.c.bf16 %v1437_v55, %v1437_v55 }
 0x4de   : > { %v2521_v9 = vunpack.c.l.b16 %v2279_v45  ;;  %v2101_v34 = vpack.c.bf16 %v2085_v37, %v2085_v37  ;;  %v2722_v33 = vunpack.c.l.b16 %v1455_v63 }
 0x4e0   : > { %v2523_v51 = vpack.c.b16 %v2522_v32, %v2521_v9  ;;  %v2493_v0 = vunpack.c.l.b16 %v2101_v34  ;;  %v2724_v36 = vpack.c.b16 %v2723_v61, %v2722_v33 }
 0x4e1   : > { %v3210_v56 = vpop.eup %3209 }
 0x4e2   : > { %3009 = vmatmul.msk.bf16.vlgmr.msrb.gmra.mxu0 %vm1910_vm9, %v2523_v51  ;;  %v2086_v27 = vmul.f32 %v3210_v56, %v4497_v52  ;;  %v2207_v16 = vpop.xlane.xlu1 %2206  ;;  %v3212_v2 = vpop.eup %3211 }
 0x4e3   : > { %3213 = vrcp.f32 %v2207_v16  ;;  %v2266_v44 = vmul.f32 %v3212_v2, %v4495_v20 }
 0x4e4   : > { %v2102_v30 = vpack.c.bf16 %v2086_v27, %v2086_v27  ;;  %3215 = vrcp.f32 %v2213_v8 }
 0x4e5   : > { %v2282_v7 = vpack.c.bf16 %v2266_v44, %v2266_v44 }
 0x4e6   : > { %v2494_v48 = vunpack.c.l.b16 %v2102_v30 }
 0x4e7   : > { %v2550_v20 = vunpack.c.l.b16 %v2282_v7 }
 0x4e8   : > { %v2495_v47 = vpack.c.b16 %v2494_v48, %v2493_v0 }
 0x4e9   : > { %v3214_v57 = vpop.eup %3213 }
 0x4ea   : > { %v2219_v28 = vpop.xlane.xlu2 %2218  ;;  %v2265_v4 = vmul.f32 %v3214_v57, %v4505_v15  ;;  %3008 = vmatmul.msk.bf16.vlgmr.msra.gmra.mxu3 %vm1910_vm9, %v2495_v47  ;;  %v2216_v52 = vpop.xlane.xlu1 %2215 }
 0x4eb   : > { %v3216_v6 = vpop.eup %3215  ;;  %2736 = vmatpush.bf16.msra.mxu3 %v2724_v36  ;;  %3217 = vrcp.f32 %v2216_v52 }
 0x4ec   : > { %v2281_v58 = vpack.c.bf16 %v2265_v4, %v2265_v4  ;;  %3219 = vrcp.f32 %v2219_v28  ;;  %v2267_v41 = vmul.f32 %v3216_v6, %v4488_v11 }
 0x4ee   : > { %v2549_v3 = vunpack.c.l.b16 %v2281_v58  ;;  %v2283_v49 = vpack.c.bf16 %v2267_v41, %v2267_v41 }
 0x4f0   : > { %v2551_v40 = vpack.c.b16 %v2550_v20, %v2549_v3  ;;  %v2577_v14 = vunpack.c.l.b16 %v2283_v49 }
 0x4f1   : > { %v3218_v26 = vpop.eup %3217 }
 0x4f2   : > { %v2228_v10 = vpop.xlane.xlu2 %2227  ;;  %v2222_v12 = vpop.xlane.xlu0 %2221  ;;  %v2268_v21 = vmul.f32 %v3218_v26, %v4522_v39  ;;  %3010 = vmatmul.msk.bf16.vlgmr.msrb.gmra.mxu1 %vm1910_vm9, %v2551_v40 }
 0x4f3   : > { %3221 = vrcp.f32 %v2228_v10  ;;  %v2225_v15 = vpop.xlane.xlu1 %2224  ;;  %v3220_v23 = vpop.eup %3219 }
 0x4f4   : > { %3223 = vrcp.f32 %v2222_v12  ;;  %v2284_v50 = vpack.c.bf16 %v2268_v21, %v2268_v21  ;;  %v2269_v11 = vmul.f32 %v3220_v23, %v4525_v1 }
 0x4f5   : > { %3225 = vrcp.f32 %v2225_v15 }
 0x4f6   : > { %v2578_v19 = vunpack.c.l.b16 %v2284_v50  ;;  %v2285_v31 = vpack.c.bf16 %v2269_v11, %v2269_v11 }
 0x4f7   : > { %v2318_v35 = vpop.f32.mrf.mxu0 }
 0x4f8   : > { %2743 = vxpose.xlu0.b32.start [1/16] (narrow) %v2318_v35, 8  ;;  %v2579_v22 = vpack.c.b16 %v2578_v19, %v2577_v14  ;;  %v2605_v51 = vunpack.c.l.b16 %v2285_v31 }
 0x4f9   : > { %v3222_v29 = vpop.eup %3221 }
 0x4fa   : > { %v3224_v42 = vpop.eup %3223  ;;  %v2272_v46 = vmul.f32 %v3222_v29, %v4536_v54  ;;  %v2237_v39 = vpop.xlane.xlu2 %2236  ;;  %3011 = vmatmul.msk.bf16.vlgmr.msrb.gmra.mxu2 %vm1910_vm9, %v2579_v22 }
 0x4fb   : > { %v2231_v62 = vpop.xlane.xlu0 %2230  ;;  %v3226_v24 = vpop.eup %3225  ;;  %v2270_v45 = vmul.f32 %v3224_v42, %v4538_v53  ;;  %3227 = vrcp.f32 %v2237_v39 }
 0x4fc   : > { %v2234_v25 = vpop.xlane.xlu1 %2233  ;;  %v2288_v32 = vpack.c.bf16 %v2272_v46, %v2272_v46  ;;  %v2271_v1 = vmul.f32 %v3226_v24, %v4533_v17  ;;  %3229 = vrcp.f32 %v2231_v62 }
 0x4fd   : > { %v2286_v9 = vpack.c.bf16 %v2270_v45, %v2270_v45  ;;  %3231 = vrcp.f32 %v2234_v25 }
 0x4fe   : > { %v2634_v37 = vunpack.c.l.b16 %v2288_v32  ;;  %v2287_v55 = vpack.c.bf16 %v2271_v1, %v2271_v1 }
 0x4ff   : > { %v2606_v54 = vunpack.c.l.b16 %v2286_v9  ;;  %v2320_v56 = vpop.f32.mrf.mxu0 }
 0x500   : > { %v2633_v13 = vunpack.c.l.b16 %v2287_v55  ;;  %2744 = vxpose.xlu0.b32.cont [2/16] (narrow) %v2320_v56, 8  ;;  %v3240_v55 = vld [vmem:[%s3328_s28] sm:$0xff] }
 0x501   : > { %v3228_v34 = vpop.eup %3227  ;;  %v2607_v8 = vpack.c.b16 %v2606_v54, %v2605_v51 }
 0x502   : > { %v3230_v53 = vpop.eup %3229  ;;  %v2635_v27 = vpack.c.b16 %v2634_v37, %v2633_v13  ;;  %v2275_v0 = vmul.f32 %v3228_v34, %v4550_v38 }
 0x503   : > { %v2240_v16 = vpop.xlane.xlu0 %2239  ;;  %v3232_v2 = vpop.eup %3231  ;;  %v2273_v63 = vmul.f32 %v3230_v53, %v4548_v18  ;;  %3012 = vmatmul.msk.bf16.vlgmr.msrb.gmra.mxu3 %vm1910_vm9, %v2607_v8  ;;  %v3241_v53 = vld [vmem:[%s3321_s25] sm:$0xff] }
 0x504   : > { %3233 = vrcp.f32 %v2240_v16  ;;  %v2243_v17 = vpop.xlane.xlu1 %2242  ;;  %v2274_v30 = vmul.f32 %v3232_v2, %v4554_v60  ;;  %3013 = vmatmul.msk.bf16.vlgmr.msra.gmra.mxu0 %vm1910_vm9, %v2635_v27  ;;  %v2291_v57 = vpack.c.bf16 %v2275_v0, %v2275_v0 }
 0x505   : > { %v2289_v61 = vpack.c.bf16 %v2273_v63, %v2273_v63  ;;  %3235 = vrcp.f32 %v2243_v17 }
 0x506   : > { %v2290_v44 = vpack.c.bf16 %v2274_v30, %v2274_v30  ;;  %v2689_v60 = vunpack.c.l.b16 %v2291_v57 }
 0x507   : > { %v2661_v48 = vunpack.c.l.b16 %v2289_v61 }
 0x508   : > { %v2662_v33 = vunpack.c.l.b16 %v2290_v44 }
 0x50a   : > { %v3234_v47 = vpop.eup %3233  ;;  %v2663_v36 = vpack.c.b16 %v2662_v33, %v2661_v48  ;;  %v2246_v28 = vpop.xlane.xlu2 %2245 }
 0x50b   : > { %v2276_v18 = vmul.f32 %v3234_v47, %v4572_v59  ;;  %v3236_v7 = vpop.eup %3235  ;;  %3237 = vrcp.f32 %v2246_v28 }
 0x50c   : > { %3014 = vmatmul.msk.bf16.vlgmr.msra.gmra.mxu1 %vm1910_vm9, %v2663_v36  ;;  %v2277_v6 = vmul.f32 %v3236_v7, %v4575_v43 }
 0x50d   : > { %v2292_v4 = vpack.c.bf16 %v2276_v18, %v2276_v18 }
 0x50e   : > { %v2293_v20 = vpack.c.bf16 %v2277_v6, %v2277_v6 }
 0x50f   : > { %v2690_v52 = vunpack.c.l.b16 %v2292_v4  ;;  %v2346_v58 = vpop.f32.mrf.mxu1 }
 0x510   : > { %2745 = vxpose.xlu0.b32.cont [3/16] (narrow) %v2346_v58, 8  ;;  %v2717_v40 = vunpack.c.l.b16 %v2293_v20 }
 0x511   : > { %v2691_v38 = vpack.c.b16 %v2690_v52, %v2689_v60  ;;  %v3238_v41 = vpop.eup %3237 }
 0x512   : > { %v2278_v3 = vmul.f32 %v3238_v41, %v4586_v5 }
 0x513   : > { %3015 = vmatmul.msk.bf16.vlgmr.msra.gmra.mxu2 %vm1910_vm9, %v2691_v38  ;;  %v2374_v49 = vpop.f32.mrf.mxu2 }
 0x514   : > { %v2294_v59 = vpack.c.bf16 %v2278_v3, %v2278_v3 }
 0x516   : > { %v2718_v26 = vunpack.c.l.b16 %v2294_v59 }
 0x517   : > { %v2348_v10 = vpop.f32.mrf.mxu1 }
 0x518   : > { %v2719_v12 = vpack.c.b16 %v2718_v26, %v2717_v40  ;;  %2746 = vxpose.xlu0.b32.cont [4/16] (narrow) %v2348_v10, 8 }
 0x51a   : > { %3016 = vmatmul.msk.bf16.vlgmr.msra.gmra.mxu3 %vm1910_vm9, %v2719_v12 }
 0x51b   : > { %v2376_v43 = vpop.f32.mrf.mxu2 }
 0x520   : > { %2747 = vxpose.xlu0.b32.cont [5/16] (narrow) %v2374_v49, 8 }
 0x523   : > { %v2402_v21 = vpop.f32.mrf.mxu3 }
 0x527   : > { %v2430_v23 = vpop.f32.mrf.mxu0 }
 0x528   : > { %2748 = vxpose.xlu0.b32.cont [6/16] (narrow) %v2376_v43, 8 }
 0x52b   : > { %v2404_v15 = vpop.f32.mrf.mxu3 }
 0x52f   : > { %v2432_v5 = vpop.f32.mrf.mxu0 }
 0x530   : > { %2749 = vxpose.xlu0.b32.cont [7/16] (narrow) %v2402_v21, 8 }
 0x537   : > { %v2458_v50 = vpop.f32.mrf.mxu1 }
 0x538   : > { %2750 = vxpose.xlu0.b32.cont [8/16] (narrow) %v2404_v15, 8 }
 0x53f   : > { %v2460_v14 = vpop.f32.mrf.mxu1 }
 0x540   : > { %2751 = vxpose.xlu0.b32.cont [9/16] (narrow) %v2430_v23, 8 }
 0x548   : > { %2752 = vxpose.xlu0.b32.cont [10/16] (narrow) %v2432_v5, 8 }
 0x550   : > { %2753 = vxpose.xlu0.b32.cont [11/16] (narrow) %v2458_v50, 8 }
 0x558   : > { %2754 = vxpose.xlu0.b32.cont [12/16] (narrow) %v2460_v14, 8 }
 0x55d   : > { %v2486_v11 = vpop.f32.mrf.mxu2 }
 0x55f   : > { %v2542_v19 = vpop.f32.mrf.mxu0 }
 0x560   : > { %2777 = vxpose.xlu1.b32.start [1/16] (narrow) %v2542_v19, 8  ;;  %2755 = vxpose.xlu0.b32.cont [13/16] (narrow) %v2486_v11, 8 }
 0x565   : > { %v2488_v35 = vpop.f32.mrf.mxu2 }
 0x567   : > { %v2544_v29 = vpop.f32.mrf.mxu0 }
 0x568   : > { %2778 = vxpose.xlu1.b32.cont [2/16] (narrow) %v2544_v29, 8  ;;  %2756 = vxpose.xlu0.b32.cont [14/16] (narrow) %v2488_v35, 8 }
 0x56d   : > { %v2514_v22 = vpop.f32.mrf.mxu3 }
 0x56f   : > { %v2570_v42 = vpop.f32.mrf.mxu1 }
 0x570   : > { %2757 = vxpose.xlu0.b32.cont [15/16] (narrow) %v2514_v22, 8  ;;  %2779 = vxpose.xlu1.b32.cont [3/16] (narrow) %v2570_v42, 8 }
 0x575   : > { %v2516_v46 = vpop.f32.mrf.mxu3 }
 0x577   : > { %v2572_v39 = vpop.f32.mrf.mxu1 }
 0x578   : > { %2758 = vxpose.xlu0.b32.end [16/16] (narrow) %v2516_v46, 8  ;;  %2780 = vxpose.xlu1.b32.cont [4/16] (narrow) %v2572_v39, 8 }
 0x57d   : > { %v2598_v62 = vpop.f32.mrf.mxu2 }
 0x580   : > { %2781 = vxpose.xlu1.b32.cont [5/16] (narrow) %v2598_v62, 8 }
 0x581   : > { %v2654_v25 = vpop.f32.mrf.mxu0 }
 0x585   : > { %v2600_v24 = vpop.f32.mrf.mxu2 }
 0x586   : > { %v2626_v31 = vpop.f32.mrf.mxu3 }
 0x588   : > { %2782 = vxpose.xlu1.b32.cont [6/16] (narrow) %v2600_v24, 8 }
 0x589   : > { %v2656_v32 = vpop.f32.mrf.mxu0  ;;  %v2682_v1 = vpop.f32.mrf.mxu1 }
 0x58e   : > { %v2628_v45 = vpop.f32.mrf.mxu3 }
 0x590   : > { %2783 = vxpose.xlu1.b32.cont [7/16] (narrow) %v2626_v31, 8 }
 0x591   : > { %v2684_v9 = vpop.f32.mrf.mxu1 }
 0x596   : > { %v2710_v54 = vpop.f32.mrf.mxu2 }
 0x598   : > { %2784 = vxpose.xlu1.b32.cont [8/16] (narrow) %v2628_v45, 8 }
 0x59d   : > { %v2738_v13 = vpop.f32.mrf.mxu3 }
 0x59e   : > { %v2712_v56 = vpop.f32.mrf.mxu2 }
 0x5a0   : > { %2785 = vxpose.xlu1.b32.cont [9/16] (narrow) %v2654_v25, 8 }
 0x5a4   : > { %v2759_v37 = vpop.trf.xlu0 }
 0x5a5   : > { %v2775_v51 = vadd.f32 %v3240_v55, %v2759_v37  ;;  %v2740_v34 = vpop.f32.mrf.mxu3 }
 0x5a7   : > { %2776 = vst [vmem:[%s290_s18] sm:$0xff] %v2775_v51 }
 0x5a8   : > { %2786 = vxpose.xlu1.b32.cont [10/16] (narrow) %v2656_v32, 8 }
 0x5b0   : > { %2787 = vxpose.xlu1.b32.cont [11/16] (narrow) %v2682_v1, 8 }
 0x5b8   : > { %2788 = vxpose.xlu1.b32.cont [12/16] (narrow) %v2684_v9, 8 }
 0x5c0   : > { %2789 = vxpose.xlu1.b32.cont [13/16] (narrow) %v2710_v54, 8 }
 0x5c8   : > { %2790 = vxpose.xlu1.b32.cont [14/16] (narrow) %v2712_v56, 8 }
 0x5d0   : > { %2791 = vxpose.xlu1.b32.cont [15/16] (narrow) %v2738_v13, 8 }
 0x5d8   : > { %2792 = vxpose.xlu1.b32.end [16/16] (narrow) %v2740_v34, 8 }
 0x604   : > { %v2793_v8 = vpop.trf.xlu1 }
 0x605   : > { %v2809_v27 = vadd.f32 %v3241_v53, %v2793_v8 }
 0x607   : > { %2810 = vst [vmem:[%s297_s26] sm:$0xff] %v2809_v27 }
 0x608 PF: > { %s16_s20 = sadd.s32 1, %s3264_s20   ;;  %s4701_s18 = smov %s3260_s19 }
 0x609   : > { %p13_p5 = scmp.ge.s32.totalorder %s16_s20, 4   ;;  %s4702_s19 = smov %s4704_s21 }
 0x60b   :  { %15 = sbr.rel (!%p13_p5) target bundleno = 2 (0x2), region = 84 }

</bundles_post_ra>
